<compile_context>
chip_gen: v5e
topology: v5e:2x2
jax: 0.10.0
libtpu: 0.0.40
codegen_flags: <defaults>
</compile_context>

<pallas_src>
import functools

import jax
import jax.numpy as jnp
from jax.experimental import pallas as pl
from jax.experimental.pallas import tpu as pltpu


def bilstm_kernel(len_ref, xf_ref, xr_ref,
                  wih_f_ref, wih_r_ref, b_f_ref, b_r_ref, whh_ref,
                  out_f_ref, out_r_ref,
                  gf_s, gr_s, hf_s, cf_s, hr_s, cr_s,
                  *, tt, bp, fuse, unroll):
    """One grid step = one time tile processed in both directions.

    len_ref:  (Bp, 1)           int32  per-sequence valid lengths (whole array, VMEM)
    xf_ref:   (Tt*Bp, Dp)       cdt    forward time tile g, rows ordered (t, b)
    xr_ref:   (Tt*Bp, Dp)       cdt    reverse time tile nt-1-g
    wih_*:    (Dp, 4Hp)         cdt    input->gates (gate k on lanes [k*Hp, k*Hp+H))
    b_*:      (1, 4Hp)          f32    b_ih + b_hh
    whh_ref:  fuse: (2Hp, 8Hp)  cdt    [[whh_f, 0], [0, whh_r]]
              else: (2, Hp, 4Hp) cdt   stacked whh_f / whh_r
    out_*:    (Tt, Bp, Hp)      f32    per-direction outputs for the tile
    gf_s/gr_s:(Tt*Bp, 4Hp)      f32    hoisted x-projection scratch
    h*_s/c*_s:(Bp, Hp)          f32    recurrent state carried across grid steps
    """
    g = pl.program_id(0)
    nt = pl.num_programs(0)
    Hp = out_f_ref.shape[-1]
    cdt = xf_ref.dtype                         # MXU operand dtype (bf16 or f32)

    # Zero the carried recurrent state on the first time tile.
    @pl.when(g == 0)
    def _():
        hf_s[...] = jnp.zeros_like(hf_s)
        cf_s[...] = jnp.zeros_like(cf_s)
        hr_s[...] = jnp.zeros_like(hr_s)
        cr_s[...] = jnp.zeros_like(cr_s)

    # ---- hoisted input projection: one big MXU matmul per direction per tile ----
    gf_s[...] = (jnp.dot(xf_ref[...], wih_f_ref[...],
                         preferred_element_type=jnp.float32) + b_f_ref[...])
    gr_s[...] = (jnp.dot(xr_ref[...], wih_r_ref[...],
                         preferred_element_type=jnp.float32) + b_r_ref[...])

    lengths = len_ref[...]                     # (Bp, 1) int32

    def cell(gates, h, c, t_glob):
        # PyTorch gate order i, f, g, o; each gate sits on its own 128-lane block.
        i_g = jax.nn.sigmoid(gates[:, 0 * Hp:1 * Hp])
        f_g = jax.nn.sigmoid(gates[:, 1 * Hp:2 * Hp])
        g_g = jnp.tanh(gates[:, 2 * Hp:3 * Hp])
        o_g = jax.nn.sigmoid(gates[:, 3 * Hp:4 * Hp])
        c_cand = f_g * c + i_g * g_g
        h_cand = o_g * jnp.tanh(c_cand)
        # pack_padded_sequence semantics: padded steps freeze state, outputs are zero.
        m = (t_glob < lengths).astype(jnp.float32)        # (Bp, 1)
        h_new = m * h_cand + (1.0 - m) * h
        c_new = m * c_cand + (1.0 - m) * c
        return h_new, c_new, m * h_cand

    t0_f = g * tt                   # first global timestep of the forward tile
    t0_r = (nt - 1 - g) * tt        # first global timestep of the reverse tile

    def body(s, carry):
        hf, cf, hr, cr = carry
        row_f = pl.multiple_of(s * bp, 8)
        row_r = pl.multiple_of((tt - 1 - s) * bp, 8)
        gfx = gf_s[pl.ds(row_f, bp), :]                   # (Bp, 4Hp) f32
        grx = gr_s[pl.ds(row_r, bp), :]
        if fuse:
            # Block-diagonal fwd+rev fusion: one (Bp, 2Hp) @ (2Hp, 8Hp) push fills the
            # 256-deep MXU K dim on v6e/v7x; W_hh is streamed from VMEM every step.
            h_cat = jnp.concatenate([hf.astype(cdt), hr.astype(cdt)], axis=1)
            rec = jnp.dot(h_cat, whh_ref[...], preferred_element_type=jnp.float32)
            gates_f = gfx + rec[:, :4 * Hp]
            gates_r = grx + rec[:, 4 * Hp:]
        else:
            gates_f = gfx + jnp.dot(hf.astype(cdt), whh_ref[0],
                                    preferred_element_type=jnp.float32)
            gates_r = grx + jnp.dot(hr.astype(cdt), whh_ref[1],
                                    preferred_element_type=jnp.float32)
        # Two independent recurrences per iteration -> MXU/EUP/VPU co-issue.
        hf, cf, of_t = cell(gates_f, hf, cf, t0_f + s)
        hr, cr, or_t = cell(gates_r, hr, cr, t0_r + (tt - 1 - s))
        out_f_ref[s] = of_t                               # lane-dense (Bp, Hp) store
        out_r_ref[tt - 1 - s] = or_t
        return (hf, cf, hr, cr)

    hf, cf, hr, cr = jax.lax.fori_loop(
        0, tt, body,
        (hf_s[...], cf_s[...], hr_s[...], cr_s[...]),
        unroll=unroll)

    hf_s[...] = hf
    cf_s[...] = cf
    hr_s[...] = hr
    cr_s[...] = cr


def _round_up(n, m):
    return ((n + m - 1) // m) * m


def _pad_gates(w, rows_p, h, hp):
    """(rows, 4h) -> (rows_p, 4hp), placing gate k at lanes [k*hp, k*hp + h)."""
    rows = w.shape[0]
    out = jnp.zeros((rows_p, 4 * hp), jnp.float32)
    for k in range(4):
        out = out.at[:rows, k * hp:k * hp + h].set(
            w[:, k * h:(k + 1) * h].astype(jnp.float32))
    return out


def bilstm_forward(x, mask, params, *, time_tile=32,
                   compute_dtype=jnp.bfloat16, fuse_directions=None):
    """x: (B, T, D) f32, mask: (B, T) {0,1} prefix mask. Returns (B, T, 2H) f32.

    compute_dtype: dtype of the MXU operands (x, W_ih, W_hh). Accumulation, h/c state,
    gate nonlinearities and outputs are always f32.
    """
    B, T, D = x.shape
    H = params["whh_f"].shape[0]
    cdt = jnp.dtype(compute_dtype)
    c_bytes = cdt.itemsize

    Hp = _round_up(H, 128)                           # lane-dense hidden / gate blocks
    Dp = _round_up(D, 128)                           # lane-dense input
    Bp = _round_up(B, 16 if c_bytes < 4 else 8)      # sublane(-packing)-aligned batch
    Tt = max(1, min(time_tile, T))                   # time tile
    Tp = _round_up(T, Tt)
    nt = Tp // Tt
    if fuse_directions is None:
        # Only worthwhile when a single direction would leave K = 128 (v6e/v7x MXU).
        fuse_directions = (Hp == 128)
    unroll = True if Tt <= 16 else 8                 # full unroll spills vregs at large Tt

    # Time-major, padded, (t, b)-flattened input in the MXU operand dtype.
    x_tm = jnp.transpose(x.astype(jnp.float32), (1, 0, 2))              # (T, B, D)
    x_tm = jnp.pad(x_tm, ((0, Tp - T), (0, Bp - B), (0, Dp - D)))
    x_flat = x_tm.reshape(Tp * Bp, Dp).astype(cdt)

    # Per-sequence lengths (prefix-mask / pack_padded_sequence semantics).
    lengths = jnp.sum(mask.astype(jnp.int32), axis=1)                   # (B,)
    lengths = jnp.pad(lengths, (0, Bp - B)).reshape(Bp, 1)

    wih_f = _pad_gates(params["wih_f"], Dp, H, Hp).astype(cdt)
    wih_r = _pad_gates(params["wih_r"], Dp, H, Hp).astype(cdt)
    b_f = _pad_gates(params["b_f"], 1, H, Hp)                           # stays f32
    b_r = _pad_gates(params["b_r"], 1, H, Hp)
    whh_f = _pad_gates(params["whh_f"], Hp, H, Hp)
    whh_r = _pad_gates(params["whh_r"], Hp, H, Hp)
    if fuse_directions:
        whh = jnp.zeros((2 * Hp, 8 * Hp), jnp.float32)
        whh = whh.at[:Hp, :4 * Hp].set(whh_f).at[Hp:, 4 * Hp:].set(whh_r)
    else:
        whh = jnp.stack([whh_f, whh_r], axis=0)                         # (2, Hp, 4Hp)
    whh = whh.astype(cdt)

    # Scoped-VMEM budget derived from the actual buffers (cap is v7x-safe).
    weight_bytes = (2 * Dp * 4 * Hp) * c_bytes + whh.size * c_bytes + 2 * 4 * Hp * 4
    x_bytes = 2 * 2 * (Tt * Bp * Dp) * c_bytes           # 2 dirs x double buffer
    out_bytes = 2 * 2 * (Tt * Bp * Hp) * 4               # 2 dirs x double buffer
    scratch_bytes = 2 * (Tt * Bp * 4 * Hp) * 4 + 4 * Bp * Hp * 4
    vmem_limit = int(1.3 * (weight_bytes + x_bytes + out_bytes + scratch_bytes)) + (2 << 20)
    vmem_limit = max(16 << 20, min(vmem_limit, 64 << 20))

    vmem_whole = lambda: pl.BlockSpec(memory_space=pltpu.MemorySpace.VMEM)

    kernel = functools.partial(bilstm_kernel, tt=Tt, bp=Bp,
                               fuse=fuse_directions, unroll=unroll)

    out_f, out_r = pl.pallas_call(
        kernel,
        grid=(nt,),
        in_specs=[
            vmem_whole(),                                               # lengths
            pl.BlockSpec((Tt * Bp, Dp), lambda g: (g, 0)),              # x, fwd tile
            pl.BlockSpec((Tt * Bp, Dp), lambda g: (nt - 1 - g, 0)),     # x, rev tile
            vmem_whole(),                                               # wih_f  (single copy,
            vmem_whole(),                                               # wih_r   no double
            vmem_whole(),                                               # b_f     buffering)
            vmem_whole(),                                               # b_r
            vmem_whole(),                                               # whh (fused/stacked)
        ],
        out_specs=(
            pl.BlockSpec((Tt, Bp, Hp), lambda g: (g, 0, 0)),            # out fwd
            pl.BlockSpec((Tt, Bp, Hp), lambda g: (nt - 1 - g, 0, 0)),   # out rev
        ),
        out_shape=(jax.ShapeDtypeStruct((Tp, Bp, Hp), jnp.float32),
                   jax.ShapeDtypeStruct((Tp, Bp, Hp), jnp.float32)),
        scratch_shapes=[
            pltpu.VMEM((Tt * Bp, 4 * Hp), jnp.float32),   # fwd x-projection (tile)
            pltpu.VMEM((Tt * Bp, 4 * Hp), jnp.float32),   # rev x-projection (tile)
            pltpu.VMEM((Bp, Hp), jnp.float32),            # h fwd
            pltpu.VMEM((Bp, Hp), jnp.float32),            # c fwd
            pltpu.VMEM((Bp, Hp), jnp.float32),            # h rev
            pltpu.VMEM((Bp, Hp), jnp.float32),            # c rev
        ],
        compiler_params=pltpu.CompilerParams(
            dimension_semantics=("arbitrary",),
            vmem_limit_bytes=vmem_limit),
    )(lengths, x_flat, x_flat, wih_f, wih_r, b_f, b_r, whh)

    # TODO(synk): this concat+transpose is one extra HBM round-trip; consumers that can
    # take the two time-major halves directly should skip it.
    out = jnp.concatenate([out_f[:T, :B, :H], out_r[:T, :B, :H]], axis=-1)  # (T, B, 2H)
    return jnp.transpose(out, (1, 0, 2))                                    # (B, T, 2H)


def init_params(key, input_dim, hidden_dim):
    """Deterministic init mimicking nn.LSTM default U(-1/sqrt(H), 1/sqrt(H))."""
    k = 1.0 / jnp.sqrt(hidden_dim)
    keys = jax.random.split(key, 8)

    def u(kk, shape):
        return jax.random.uniform(kk, shape, jnp.float32, -k, k)

    H4 = 4 * hidden_dim
    # PyTorch: weight_ih (4H, D), weight_hh (4H, H); we store them transposed.
    return {
        "wih_f": u(keys[0], (input_dim, H4)),
        "whh_f": u(keys[1], (hidden_dim, H4)),
        "b_f":   (u(keys[2], (1, H4)) + u(keys[3], (1, H4))),   # b_ih + b_hh
        "wih_r": u(keys[4], (input_dim, H4)),
        "whh_r": u(keys[5], (hidden_dim, H4)),
        "b_r":   (u(keys[6], (1, H4)) + u(keys[7], (1, H4))),
    }


def bilstm_reference(x, mask, params):
    """Pure-JAX f32 reference (lax.scan) mirroring packed BiLSTM semantics."""
    B, T, D = x.shape
    H = params["whh_f"].shape[0]
    m = mask.astype(jnp.float32)[:, :, None]   # (B, T, 1)

    def make_scan(wih, whh, b):
        def step(carry, inp):
            h, c = carry
            x_t, m_t = inp
            gates = x_t @ wih + h @ whh + b
            i_g = jax.nn.sigmoid(gates[:, 0 * H:1 * H])
            f_g = jax.nn.sigmoid(gates[:, 1 * H:2 * H])
            g_g = jnp.tanh(gates[:, 2 * H:3 * H])
            o_g = jax.nn.sigmoid(gates[:, 3 * H:4 * H])
            c_cand = f_g * c + i_g * g_g
            h_cand = o_g * jnp.tanh(c_cand)
            h_new = m_t * h_cand + (1.0 - m_t) * h
            c_new = m_t * c_cand + (1.0 - m_t) * c
            return (h_new, c_new), m_t * h_cand
        return step

    h0 = jnp.zeros((B, H), jnp.float32)
    c0 = jnp.zeros((B, H), jnp.float32)
    x_tm = jnp.transpose(x, (1, 0, 2))
    m_tm = jnp.transpose(m, (1, 0, 2))

    _, out_f = jax.lax.scan(make_scan(params["wih_f"], params["whh_f"], params["b_f"]),
                            (h0, c0), (x_tm, m_tm))
    _, out_r = jax.lax.scan(make_scan(params["wih_r"], params["whh_r"], params["b_r"]),
                            (h0, c0), (x_tm[::-1], m_tm[::-1]))
    out_r = out_r[::-1]
    out = jnp.concatenate([out_f, out_r], axis=-1)
    return jnp.transpose(out, (1, 0, 2))


if __name__ == "__main__":
    B, T, D, H = 2, 8, 16, 32
    key = jax.random.PRNGKey(0)
    k_x, k_p = jax.random.split(key)

    x = jax.random.normal(k_x, (B, T, D), jnp.float32)
    # Contiguous-prefix masks (pack_padded_sequence semantics), lengths [8, 5].
    seq_lens = jnp.array([T, 5], jnp.int32)
    mask = (jnp.arange(T)[None, :] < seq_lens[:, None]).astype(jnp.float32)

    params = init_params(k_p, D, H)
    ref = bilstm_reference(x, mask, params)

    # 1) Exact path: f32 MXU operands, un-fused recurrent matmuls, time_tile=4 -> 2 grid
    #    steps (exercises cross-tile state carry and the reverse-direction BlockSpec).
    out_f32 = bilstm_forward(x, mask, params, time_tile=4,
                             compute_dtype=jnp.float32, fuse_directions=False)
    out_f32 = jax.block_until_ready(out_f32)
    assert out_f32.shape == (B, T, 2 * H)
    assert jnp.allclose(out_f32, ref, atol=1e-4, rtol=1e-4), "f32 path mismatch vs. reference"

    # 2) Performance path: bf16 MXU operands (f32 accumulation / state) with the fused
    #    block-diagonal fwd+rev recurrent matmul. Looser tolerance for bf16 rounding.
    out_bf16 = bilstm_forward(x, mask, params, time_tile=4,
                              compute_dtype=jnp.bfloat16)
    out_bf16 = jax.block_until_ready(out_bf16)
    assert out_bf16.shape == (B, T, 2 * H)
    max_err = float(jnp.max(jnp.abs(out_bf16 - ref)))
    assert max_err < 5e-2, f"bf16 path mismatch vs. reference (max abs err {max_err})"

    print("KERNEL_OK")
</pallas_src>

<mosaic_0001>
module attributes {stable_mosaic.version = 11 : i64} {
  func.func @bilstm_kernel(%arg0: i32, %arg1: memref<8x1xi32, #tpu.memory_space<vmem>>, %arg2: memref<32x128xf32, #tpu.memory_space<vmem>>, %arg3: memref<32x128xf32, #tpu.memory_space<vmem>>, %arg4: memref<128x512xf32, #tpu.memory_space<vmem>>, %arg5: memref<128x512xf32, #tpu.memory_space<vmem>>, %arg6: memref<1x512xf32, #tpu.memory_space<vmem>>, %arg7: memref<1x512xf32, #tpu.memory_space<vmem>>, %arg8: memref<2x128x512xf32, #tpu.memory_space<vmem>>, %arg9: memref<4x8x128xf32, #tpu.memory_space<vmem>>, %arg10: memref<4x8x128xf32, #tpu.memory_space<vmem>>, %arg11: memref<32x512xf32, #tpu.memory_space<vmem>>, %arg12: memref<32x512xf32, #tpu.memory_space<vmem>>, %arg13: memref<8x128xf32, #tpu.memory_space<vmem>>, %arg14: memref<8x128xf32, #tpu.memory_space<vmem>>, %arg15: memref<8x128xf32, #tpu.memory_space<vmem>>, %arg16: memref<8x128xf32, #tpu.memory_space<vmem>>) attributes {dimension_semantics = [#tpu.dimension_semantics<arbitrary>], iteration_bounds = array<i64: 2>, scalar_prefetch = 0 : i64, scratch_operands = 6 : i64, tpu.core_type = #tpu.core_type<tc>, window_params = [{pipeline_mode = #tpu.pipeline_mode<synchronous>, transform_indices = @transform_0, window_bounds = array<i64: 8, 1>}, {transform_indices = @transform_1, window_bounds = array<i64: 32, 128>}, {transform_indices = @transform_2, window_bounds = array<i64: 32, 128>}, {pipeline_mode = #tpu.pipeline_mode<synchronous>, transform_indices = @transform_3, window_bounds = array<i64: 128, 512>}, {pipeline_mode = #tpu.pipeline_mode<synchronous>, transform_indices = @transform_4, window_bounds = array<i64: 128, 512>}, {pipeline_mode = #tpu.pipeline_mode<synchronous>, transform_indices = @transform_5, window_bounds = array<i64: 1, 512>}, {pipeline_mode = #tpu.pipeline_mode<synchronous>, transform_indices = @transform_6, window_bounds = array<i64: 1, 512>}, {pipeline_mode = #tpu.pipeline_mode<synchronous>, transform_indices = @transform_7, window_bounds = array<i64: 2, 128, 512>}, {transform_indices = @transform_8, window_bounds = array<i64: 4, 8, 128>}, {transform_indices = @transform_9, window_bounds = array<i64: 4, 8, 128>}]} {
    %c0_i32 = arith.constant 0 : i32
    %0 = arith.cmpi eq, %arg0, %c0_i32 : i32
    %1 = arith.extui %0 : i1 to i32
    %c0_i32_0 = arith.constant 0 : i32
    %2 = arith.cmpi ne, %1, %c0_i32_0 : i32
    scf.if %2 {
      %cst_153 = arith.constant 0.000000e+00 : f32
      %505 = vector.broadcast %cst_153 : f32 to vector<8x128xf32>
      %c0_154 = arith.constant 0 : index
      %c0_155 = arith.constant 0 : index
      %506 = vector.load %arg13[%c0_154, %c0_155] : memref<8x128xf32, #tpu.memory_space<vmem>>, vector<8x128xf32>
      tpu.vector_store %arg13[%c0_154, %c0_155], %505 {strides = array<i32>} : memref<8x128xf32, #tpu.memory_space<vmem>>, vector<8x128xf32>,
      %cst_156 = arith.constant 0.000000e+00 : f32
      %507 = vector.broadcast %cst_156 : f32 to vector<8x128xf32>
      %c0_157 = arith.constant 0 : index
      %c0_158 = arith.constant 0 : index
      %508 = vector.load %arg14[%c0_157, %c0_158] : memref<8x128xf32, #tpu.memory_space<vmem>>, vector<8x128xf32>
      tpu.vector_store %arg14[%c0_157, %c0_158], %507 {strides = array<i32>} : memref<8x128xf32, #tpu.memory_space<vmem>>, vector<8x128xf32>,
      %cst_159 = arith.constant 0.000000e+00 : f32
      %509 = vector.broadcast %cst_159 : f32 to vector<8x128xf32>
      %c0_160 = arith.constant 0 : index
      %c0_161 = arith.constant 0 : index
      %510 = vector.load %arg15[%c0_160, %c0_161] : memref<8x128xf32, #tpu.memory_space<vmem>>, vector<8x128xf32>
      tpu.vector_store %arg15[%c0_160, %c0_161], %509 {strides = array<i32>} : memref<8x128xf32, #tpu.memory_space<vmem>>, vector<8x128xf32>,
      %cst_162 = arith.constant 0.000000e+00 : f32
      %511 = vector.broadcast %cst_162 : f32 to vector<8x128xf32>
      %c0_163 = arith.constant 0 : index
      %c0_164 = arith.constant 0 : index
      %512 = vector.load %arg16[%c0_163, %c0_164] : memref<8x128xf32, #tpu.memory_space<vmem>>, vector<8x128xf32>
      tpu.vector_store %arg16[%c0_163, %c0_164], %511 {strides = array<i32>} : memref<8x128xf32, #tpu.memory_space<vmem>>, vector<8x128xf32>,
    } else {
    }
    %c0 = arith.constant 0 : index
    %c0_1 = arith.constant 0 : index
    %3 = vector.load %arg2[%c0, %c0_1] : memref<32x128xf32, #tpu.memory_space<vmem>>, vector<32x128xf32>
    %c0_2 = arith.constant 0 : index
    %c0_3 = arith.constant 0 : index
    %4 = vector.load %arg4[%c0_2, %c0_3] : memref<128x512xf32, #tpu.memory_space<vmem>>, vector<128x512xf32>
    %cst = arith.constant dense<0.000000e+00> : vector<32x512xf32>
    %5 = tpu.matmul %3, %4, %cst {dimension_numbers = #tpu.dot_dimension_numbers<[1], [0], [0], [1], [0, 0, 1, 1], [], []>} : vector<32x128xf32>, vector<128x512xf32>, vector<32x512xf32> -> vector<32x512xf32>
    %c0_4 = arith.constant 0 : index
    %c0_5 = arith.constant 0 : index
    %6 = vector.load %arg6[%c0_4, %c0_5] : memref<1x512xf32, #tpu.memory_space<vmem>>, vector<1x512xf32>
    %7 = vector.broadcast %6 : vector<1x512xf32> to vector<32x512xf32>
    %8 = arith.addf %5, %7 : vector<32x512xf32>
    %c0_6 = arith.constant 0 : index
    %c0_7 = arith.constant 0 : index
    %9 = vector.load %arg11[%c0_6, %c0_7] : memref<32x512xf32, #tpu.memory_space<vmem>>, vector<32x512xf32>
    tpu.vector_store %arg11[%c0_6, %c0_7], %8 {strides = array<i32>} : memref<32x512xf32, #tpu.memory_space<vmem>>, vector<32x512xf32>,
    %c0_8 = arith.constant 0 : index
    %c0_9 = arith.constant 0 : index
    %10 = vector.load %arg3[%c0_8, %c0_9] : memref<32x128xf32, #tpu.memory_space<vmem>>, vector<32x128xf32>
    %c0_10 = arith.constant 0 : index
    %c0_11 = arith.constant 0 : index
    %11 = vector.load %arg5[%c0_10, %c0_11] : memref<128x512xf32, #tpu.memory_space<vmem>>, vector<128x512xf32>
    %cst_12 = arith.constant dense<0.000000e+00> : vector<32x512xf32>
    %12 = tpu.matmul %10, %11, %cst_12 {dimension_numbers = #tpu.dot_dimension_numbers<[1], [0], [0], [1], [0, 0, 1, 1], [], []>} : vector<32x128xf32>, vector<128x512xf32>, vector<32x512xf32> -> vector<32x512xf32>
    %c0_13 = arith.constant 0 : index
    %c0_14 = arith.constant 0 : index
    %13 = vector.load %arg7[%c0_13, %c0_14] : memref<1x512xf32, #tpu.memory_space<vmem>>, vector<1x512xf32>
    %14 = vector.broadcast %13 : vector<1x512xf32> to vector<32x512xf32>
    %15 = arith.addf %12, %14 : vector<32x512xf32>
    %c0_15 = arith.constant 0 : index
    %c0_16 = arith.constant 0 : index
    %16 = vector.load %arg12[%c0_15, %c0_16] : memref<32x512xf32, #tpu.memory_space<vmem>>, vector<32x512xf32>
    tpu.vector_store %arg12[%c0_15, %c0_16], %15 {strides = array<i32>} : memref<32x512xf32, #tpu.memory_space<vmem>>, vector<32x512xf32>,
    %c0_17 = arith.constant 0 : index
    %c0_18 = arith.constant 0 : index
    %17 = vector.load %arg1[%c0_17, %c0_18] : memref<8x1xi32, #tpu.memory_space<vmem>>, vector<8x1xi32>
    %c4_i32 = arith.constant 4 : i32
    %18 = arith.muli %arg0, %c4_i32 : i32
    %c1_i32 = arith.constant 1 : i32
    %19 = arith.subi %c1_i32, %arg0 : i32
    %c4_i32_19 = arith.constant 4 : i32
    %20 = arith.muli %19, %c4_i32_19 : i32
    %c0_20 = arith.constant 0 : index
    %c0_21 = arith.constant 0 : index
    %21 = vector.load %arg13[%c0_20, %c0_21] : memref<8x128xf32, #tpu.memory_space<vmem>>, vector<8x128xf32>
    %c0_22 = arith.constant 0 : index
    %c0_23 = arith.constant 0 : index
    %22 = vector.load %arg14[%c0_22, %c0_23] : memref<8x128xf32, #tpu.memory_space<vmem>>, vector<8x128xf32>
    %c0_24 = arith.constant 0 : index
    %c0_25 = arith.constant 0 : index
    %23 = vector.load %arg15[%c0_24, %c0_25] : memref<8x128xf32, #tpu.memory_space<vmem>>, vector<8x128xf32>
    %c0_26 = arith.constant 0 : index
    %c0_27 = arith.constant 0 : index
    %24 = vector.load %arg16[%c0_26, %c0_27] : memref<8x128xf32, #tpu.memory_space<vmem>>, vector<8x128xf32>
    %c0_i32_28 = arith.constant 0 : i32
    %c8_i32 = arith.constant 8 : i32
    %25 = arith.muli %c0_i32_28, %c8_i32 : i32
    %26 = tpu.assume_multiple %25, 8 : i32
    %c3_i32 = arith.constant 3 : i32
    %27 = arith.subi %c3_i32, %c0_i32_28 : i32
    %c8_i32_29 = arith.constant 8 : i32
    %28 = arith.muli %27, %c8_i32_29 : i32
    %29 = tpu.assume_multiple %28, 8 : i32
    %30 = arith.index_cast %26 : i32 to index
    %c0_30 = arith.constant 0 : index
    %31 = vector.load %arg11[%30, %c0_30] : memref<32x512xf32, #tpu.memory_space<vmem>>, vector<8x512xf32>
    %32 = arith.index_cast %29 : i32 to index
    %c0_31 = arith.constant 0 : index
    %33 = vector.load %arg12[%32, %c0_31] : memref<32x512xf32, #tpu.memory_space<vmem>>, vector<8x512xf32>
    %c0_32 = arith.constant 0 : index
    %c0_33 = arith.constant 0 : index
    %c0_34 = arith.constant 0 : index
    %34 = vector.load %arg8[%c0_32, %c0_33, %c0_34] : memref<2x128x512xf32, #tpu.memory_space<vmem>>, vector<1x128x512xf32>
    %35 = vector.shape_cast %34 : vector<1x128x512xf32> to vector<128x512xf32>
    %cst_35 = arith.constant dense<0.000000e+00> : vector<8x512xf32>
    %36 = tpu.matmul %21, %35, %cst_35 {dimension_numbers = #tpu.dot_dimension_numbers<[1], [0], [0], [1], [0, 0, 1, 1], [], []>} : vector<8x128xf32>, vector<128x512xf32>, vector<8x512xf32> -> vector<8x512xf32>
    %37 = arith.addf %31, %36 : vector<8x512xf32>
    %c1 = arith.constant 1 : index
    %c0_36 = arith.constant 0 : index
    %c0_37 = arith.constant 0 : index
    %38 = vector.load %arg8[%c1, %c0_36, %c0_37] : memref<2x128x512xf32, #tpu.memory_space<vmem>>, vector<1x128x512xf32>
    %39 = vector.shape_cast %38 : vector<1x128x512xf32> to vector<128x512xf32>
    %cst_38 = arith.constant dense<0.000000e+00> : vector<8x512xf32>
    %40 = tpu.matmul %23, %39, %cst_38 {dimension_numbers = #tpu.dot_dimension_numbers<[1], [0], [0], [1], [0, 0, 1, 1], [], []>} : vector<8x128xf32>, vector<128x512xf32>, vector<8x512xf32> -> vector<8x512xf32>
    %41 = arith.addf %33, %40 : vector<8x512xf32>
    %42 = arith.addi %18, %c0_i32_28 : i32
    %43 = vector.extract_strided_slice %37 {offsets = [0, 0], sizes = [8, 128], strides = [1, 1]} : vector<8x512xf32> to vector<8x128xf32>
    %44 = arith.negf %43 : vector<8x128xf32>
    %45 = math.exp %44 : vector<8x128xf32>
    %cst_39 = arith.constant 1.000000e+00 : f32
    %46 = vector.broadcast %cst_39 : f32 to vector<8x128xf32>
    %47 = arith.addf %46, %45 : vector<8x128xf32>
    %48 = arith.divf %46, %47 : vector<8x128xf32>
    %49 = vector.extract_strided_slice %37 {offsets = [0, 128], sizes = [8, 128], strides = [1, 1]} : vector<8x512xf32> to vector<8x128xf32>
    %50 = arith.negf %49 : vector<8x128xf32>
    %51 = math.exp %50 : vector<8x128xf32>
    %cst_40 = arith.constant 1.000000e+00 : f32
    %52 = vector.broadcast %cst_40 : f32 to vector<8x128xf32>
    %53 = arith.addf %52, %51 : vector<8x128xf32>
    %54 = arith.divf %52, %53 : vector<8x128xf32>
    %55 = vector.extract_strided_slice %37 {offsets = [0, 256], sizes = [8, 128], strides = [1, 1]} : vector<8x512xf32> to vector<8x128xf32>
    %56 = math.tanh %55 : vector<8x128xf32>
    %57 = vector.extract_strided_slice %37 {offsets = [0, 384], sizes = [8, 128], strides = [1, 1]} : vector<8x512xf32> to vector<8x128xf32>
    %58 = arith.negf %57 : vector<8x128xf32>
    %59 = math.exp %58 : vector<8x128xf32>
    %cst_41 = arith.constant 1.000000e+00 : f32
    %60 = vector.broadcast %cst_41 : f32 to vector<8x128xf32>
    %61 = arith.addf %60, %59 : vector<8x128xf32>
    %62 = arith.divf %60, %61 : vector<8x128xf32>
    %63 = arith.mulf %54, %22 : vector<8x128xf32>
    %64 = arith.mulf %48, %56 : vector<8x128xf32>
    %65 = arith.addf %63, %64 : vector<8x128xf32>
    %66 = math.tanh %65 : vector<8x128xf32>
    %67 = arith.mulf %62, %66 : vector<8x128xf32>
    %68 = vector.broadcast %42 : i32 to vector<8x1xi32>
    %69 = arith.cmpi slt, %68, %17 : vector<8x1xi32>
    %70 = arith.extui %69 : vector<8x1xi1> to vector<8x1xi32>
    %71 = arith.sitofp %70 : vector<8x1xi32> to vector<8x1xf32>
    %72 = vector.broadcast %71 : vector<8x1xf32> to vector<8x128xf32>
    %73 = arith.mulf %72, %67 : vector<8x128xf32>
    %cst_42 = arith.constant 1.000000e+00 : f32
    %74 = vector.broadcast %cst_42 : f32 to vector<8x1xf32>
    %75 = arith.subf %74, %71 : vector<8x1xf32>
    %76 = vector.broadcast %75 : vector<8x1xf32> to vector<8x128xf32>
    %77 = arith.mulf %76, %21 : vector<8x128xf32>
    %78 = arith.addf %73, %77 : vector<8x128xf32>
    %79 = vector.broadcast %71 : vector<8x1xf32> to vector<8x128xf32>
    %80 = arith.mulf %79, %65 : vector<8x128xf32>
    %cst_43 = arith.constant 1.000000e+00 : f32
    %81 = vector.broadcast %cst_43 : f32 to vector<8x1xf32>
    %82 = arith.subf %81, %71 : vector<8x1xf32>
    %83 = vector.broadcast %82 : vector<8x1xf32> to vector<8x128xf32>
    %84 = arith.mulf %83, %22 : vector<8x128xf32>
    %85 = arith.addf %80, %84 : vector<8x128xf32>
    %86 = vector.broadcast %71 : vector<8x1xf32> to vector<8x128xf32>
    %87 = arith.mulf %86, %67 : vector<8x128xf32>
    %c3_i32_44 = arith.constant 3 : i32
    %88 = arith.subi %c3_i32_44, %c0_i32_28 : i32
    %89 = arith.addi %20, %88 : i32
    %90 = vector.extract_strided_slice %41 {offsets = [0, 0], sizes = [8, 128], strides = [1, 1]} : vector<8x512xf32> to vector<8x128xf32>
    %91 = arith.negf %90 : vector<8x128xf32>
    %92 = math.exp %91 : vector<8x128xf32>
    %cst_45 = arith.constant 1.000000e+00 : f32
    %93 = vector.broadcast %cst_45 : f32 to vector<8x128xf32>
    %94 = arith.addf %93, %92 : vector<8x128xf32>
    %95 = arith.divf %93, %94 : vector<8x128xf32>
    %96 = vector.extract_strided_slice %41 {offsets = [0, 128], sizes = [8, 128], strides = [1, 1]} : vector<8x512xf32> to vector<8x128xf32>
    %97 = arith.negf %96 : vector<8x128xf32>
    %98 = math.exp %97 : vector<8x128xf32>
    %cst_46 = arith.constant 1.000000e+00 : f32
    %99 = vector.broadcast %cst_46 : f32 to vector<8x128xf32>
    %100 = arith.addf %99, %98 : vector<8x128xf32>
    %101 = arith.divf %99, %100 : vector<8x128xf32>
    %102 = vector.extract_strided_slice %41 {offsets = [0, 256], sizes = [8, 128], strides = [1, 1]} : vector<8x512xf32> to vector<8x128xf32>
    %103 = math.tanh %102 : vector<8x128xf32>
    %104 = vector.extract_strided_slice %41 {offsets = [0, 384], sizes = [8, 128], strides = [1, 1]} : vector<8x512xf32> to vector<8x128xf32>
    %105 = arith.negf %104 : vector<8x128xf32>
    %106 = math.exp %105 : vector<8x128xf32>
    %cst_47 = arith.constant 1.000000e+00 : f32
    %107 = vector.broadcast %cst_47 : f32 to vector<8x128xf32>
    %108 = arith.addf %107, %106 : vector<8x128xf32>
    %109 = arith.divf %107, %108 : vector<8x128xf32>
    %110 = arith.mulf %101, %24 : vector<8x128xf32>
    %111 = arith.mulf %95, %103 : vector<8x128xf32>
    %112 = arith.addf %110, %111 : vector<8x128xf32>
    %113 = math.tanh %112 : vector<8x128xf32>
    %114 = arith.mulf %109, %113 : vector<8x128xf32>
    %115 = vector.broadcast %89 : i32 to vector<8x1xi32>
    %116 = arith.cmpi slt, %115, %17 : vector<8x1xi32>
    %117 = arith.extui %116 : vector<8x1xi1> to vector<8x1xi32>
    %118 = arith.sitofp %117 : vector<8x1xi32> to vector<8x1xf32>
    %119 = vector.broadcast %118 : vector<8x1xf32> to vector<8x128xf32>
    %120 = arith.mulf %119, %114 : vector<8x128xf32>
    %cst_48 = arith.constant 1.000000e+00 : f32
    %121 = vector.broadcast %cst_48 : f32 to vector<8x1xf32>
    %122 = arith.subf %121, %118 : vector<8x1xf32>
    %123 = vector.broadcast %122 : vector<8x1xf32> to vector<8x128xf32>
    %124 = arith.mulf %123, %23 : vector<8x128xf32>
    %125 = arith.addf %120, %124 : vector<8x128xf32>
    %126 = vector.broadcast %118 : vector<8x1xf32> to vector<8x128xf32>
    %127 = arith.mulf %126, %112 : vector<8x128xf32>
    %cst_49 = arith.constant 1.000000e+00 : f32
    %128 = vector.broadcast %cst_49 : f32 to vector<8x1xf32>
    %129 = arith.subf %128, %118 : vector<8x1xf32>
    %130 = vector.broadcast %129 : vector<8x1xf32> to vector<8x128xf32>
    %131 = arith.mulf %130, %24 : vector<8x128xf32>
    %132 = arith.addf %127, %131 : vector<8x128xf32>
    %133 = vector.broadcast %118 : vector<8x1xf32> to vector<8x128xf32>
    %134 = arith.mulf %133, %114 : vector<8x128xf32>
    %135 = arith.index_cast %c0_i32_28 : i32 to index
    %c0_50 = arith.constant 0 : index
    %c0_51 = arith.constant 0 : index
    %136 = vector.load %arg9[%135, %c0_50, %c0_51] : memref<4x8x128xf32, #tpu.memory_space<vmem>>, vector<1x8x128xf32>
    %137 = vector.shape_cast %136 : vector<1x8x128xf32> to vector<8x128xf32>
    %138 = vector.shape_cast %87 : vector<8x128xf32> to vector<1x8x128xf32>
    tpu.vector_store %arg9[%135, %c0_50, %c0_51], %138 {strides = array<i32>} : memref<4x8x128xf32, #tpu.memory_space<vmem>>, vector<1x8x128xf32>,
    %c3_i32_52 = arith.constant 3 : i32
    %139 = arith.subi %c3_i32_52, %c0_i32_28 : i32
    %140 = arith.index_cast %139 : i32 to index
    %c0_53 = arith.constant 0 : index
    %c0_54 = arith.constant 0 : index
    %141 = vector.load %arg10[%140, %c0_53, %c0_54] : memref<4x8x128xf32, #tpu.memory_space<vmem>>, vector<1x8x128xf32>
    %142 = vector.shape_cast %141 : vector<1x8x128xf32> to vector<8x128xf32>
    %143 = vector.shape_cast %134 : vector<8x128xf32> to vector<1x8x128xf32>
    tpu.vector_store %arg10[%140, %c0_53, %c0_54], %143 {strides = array<i32>} : memref<4x8x128xf32, #tpu.memory_space<vmem>>, vector<1x8x128xf32>,
    %c1_i32_55 = arith.constant 1 : i32
    %c8_i32_56 = arith.constant 8 : i32
    %144 = arith.muli %c1_i32_55, %c8_i32_56 : i32
    %145 = tpu.assume_multiple %144, 8 : i32
    %c3_i32_57 = arith.constant 3 : i32
    %146 = arith.subi %c3_i32_57, %c1_i32_55 : i32
    %c8_i32_58 = arith.constant 8 : i32
    %147 = arith.muli %146, %c8_i32_58 : i32
    %148 = tpu.assume_multiple %147, 8 : i32
    %149 = arith.index_cast %145 : i32 to index
    %c0_59 = arith.constant 0 : index
    %150 = vector.load %arg11[%149, %c0_59] : memref<32x512xf32, #tpu.memory_space<vmem>>, vector<8x512xf32>
    %151 = arith.index_cast %148 : i32 to index
    %c0_60 = arith.constant 0 : index
    %152 = vector.load %arg12[%151, %c0_60] : memref<32x512xf32, #tpu.memory_space<vmem>>, vector<8x512xf32>
    %c0_61 = arith.constant 0 : index
    %c0_62 = arith.constant 0 : index
    %c0_63 = arith.constant 0 : index
    %153 = vector.load %arg8[%c0_61, %c0_62, %c0_63] : memref<2x128x512xf32, #tpu.memory_space<vmem>>, vector<1x128x512xf32>
    %154 = vector.shape_cast %153 : vector<1x128x512xf32> to vector<128x512xf32>
    %cst_64 = arith.constant dense<0.000000e+00> : vector<8x512xf32>
    %155 = tpu.matmul %78, %154, %cst_64 {dimension_numbers = #tpu.dot_dimension_numbers<[1], [0], [0], [1], [0, 0, 1, 1], [], []>} : vector<8x128xf32>, vector<128x512xf32>, vector<8x512xf32> -> vector<8x512xf32>
    %156 = arith.addf %150, %155 : vector<8x512xf32>
    %c1_65 = arith.constant 1 : index
    %c0_66 = arith.constant 0 : index
    %c0_67 = arith.constant 0 : index
    %157 = vector.load %arg8[%c1_65, %c0_66, %c0_67] : memref<2x128x512xf32, #tpu.memory_space<vmem>>, vector<1x128x512xf32>
    %158 = vector.shape_cast %157 : vector<1x128x512xf32> to vector<128x512xf32>
    %cst_68 = arith.constant dense<0.000000e+00> : vector<8x512xf32>
    %159 = tpu.matmul %125, %158, %cst_68 {dimension_numbers = #tpu.dot_dimension_numbers<[1], [0], [0], [1], [0, 0, 1, 1], [], []>} : vector<8x128xf32>, vector<128x512xf32>, vector<8x512xf32> -> vector<8x512xf32>
    %160 = arith.addf %152, %159 : vector<8x512xf32>
    %161 = arith.addi %18, %c1_i32_55 : i32
    %162 = vector.extract_strided_slice %156 {offsets = [0, 0], sizes = [8, 128], strides = [1, 1]} : vector<8x512xf32> to vector<8x128xf32>
    %163 = arith.negf %162 : vector<8x128xf32>
    %164 = math.exp %163 : vector<8x128xf32>
    %cst_69 = arith.constant 1.000000e+00 : f32
    %165 = vector.broadcast %cst_69 : f32 to vector<8x128xf32>
    %166 = arith.addf %165, %164 : vector<8x128xf32>
    %167 = arith.divf %165, %166 : vector<8x128xf32>
    %168 = vector.extract_strided_slice %156 {offsets = [0, 128], sizes = [8, 128], strides = [1, 1]} : vector<8x512xf32> to vector<8x128xf32>
    %169 = arith.negf %168 : vector<8x128xf32>
    %170 = math.exp %169 : vector<8x128xf32>
    %cst_70 = arith.constant 1.000000e+00 : f32
    %171 = vector.broadcast %cst_70 : f32 to vector<8x128xf32>
    %172 = arith.addf %171, %170 : vector<8x128xf32>
    %173 = arith.divf %171, %172 : vector<8x128xf32>
    %174 = vector.extract_strided_slice %156 {offsets = [0, 256], sizes = [8, 128], strides = [1, 1]} : vector<8x512xf32> to vector<8x128xf32>
    %175 = math.tanh %174 : vector<8x128xf32>
    %176 = vector.extract_strided_slice %156 {offsets = [0, 384], sizes = [8, 128], strides = [1, 1]} : vector<8x512xf32> to vector<8x128xf32>
    %177 = arith.negf %176 : vector<8x128xf32>
    %178 = math.exp %177 : vector<8x128xf32>
    %cst_71 = arith.constant 1.000000e+00 : f32
    %179 = vector.broadcast %cst_71 : f32 to vector<8x128xf32>
    %180 = arith.addf %179, %178 : vector<8x128xf32>
    %181 = arith.divf %179, %180 : vector<8x128xf32>
    %182 = arith.mulf %173, %85 : vector<8x128xf32>
    %183 = arith.mulf %167, %175 : vector<8x128xf32>
    %184 = arith.addf %182, %183 : vector<8x128xf32>
    %185 = math.tanh %184 : vector<8x128xf32>
    %186 = arith.mulf %181, %185 : vector<8x128xf32>
    %187 = vector.broadcast %161 : i32 to vector<8x1xi32>
    %188 = arith.cmpi slt, %187, %17 : vector<8x1xi32>
    %189 = arith.extui %188 : vector<8x1xi1> to vector<8x1xi32>
    %190 = arith.sitofp %189 : vector<8x1xi32> to vector<8x1xf32>
    %191 = vector.broadcast %190 : vector<8x1xf32> to vector<8x128xf32>
    %192 = arith.mulf %191, %186 : vector<8x128xf32>
    %cst_72 = arith.constant 1.000000e+00 : f32
    %193 = vector.broadcast %cst_72 : f32 to vector<8x1xf32>
    %194 = arith.subf %193, %190 : vector<8x1xf32>
    %195 = vector.broadcast %194 : vector<8x1xf32> to vector<8x128xf32>
    %196 = arith.mulf %195, %78 : vector<8x128xf32>
    %197 = arith.addf %192, %196 : vector<8x128xf32>
    %198 = vector.broadcast %190 : vector<8x1xf32> to vector<8x128xf32>
    %199 = arith.mulf %198, %184 : vector<8x128xf32>
    %cst_73 = arith.constant 1.000000e+00 : f32
    %200 = vector.broadcast %cst_73 : f32 to vector<8x1xf32>
    %201 = arith.subf %200, %190 : vector<8x1xf32>
    %202 = vector.broadcast %201 : vector<8x1xf32> to vector<8x128xf32>
    %203 = arith.mulf %202, %85 : vector<8x128xf32>
    %204 = arith.addf %199, %203 : vector<8x128xf32>
    %205 = vector.broadcast %190 : vector<8x1xf32> to vector<8x128xf32>
    %206 = arith.mulf %205, %186 : vector<8x128xf32>
    %c3_i32_74 = arith.constant 3 : i32
    %207 = arith.subi %c3_i32_74, %c1_i32_55 : i32
    %208 = arith.addi %20, %207 : i32
    %209 = vector.extract_strided_slice %160 {offsets = [0, 0], sizes = [8, 128], strides = [1, 1]} : vector<8x512xf32> to vector<8x128xf32>
    %210 = arith.negf %209 : vector<8x128xf32>
    %211 = math.exp %210 : vector<8x128xf32>
    %cst_75 = arith.constant 1.000000e+00 : f32
    %212 = vector.broadcast %cst_75 : f32 to vector<8x128xf32>
    %213 = arith.addf %212, %211 : vector<8x128xf32>
    %214 = arith.divf %212, %213 : vector<8x128xf32>
    %215 = vector.extract_strided_slice %160 {offsets = [0, 128], sizes = [8, 128], strides = [1, 1]} : vector<8x512xf32> to vector<8x128xf32>
    %216 = arith.negf %215 : vector<8x128xf32>
    %217 = math.exp %216 : vector<8x128xf32>
    %cst_76 = arith.constant 1.000000e+00 : f32
    %218 = vector.broadcast %cst_76 : f32 to vector<8x128xf32>
    %219 = arith.addf %218, %217 : vector<8x128xf32>
    %220 = arith.divf %218, %219 : vector<8x128xf32>
    %221 = vector.extract_strided_slice %160 {offsets = [0, 256], sizes = [8, 128], strides = [1, 1]} : vector<8x512xf32> to vector<8x128xf32>
    %222 = math.tanh %221 : vector<8x128xf32>
    %223 = vector.extract_strided_slice %160 {offsets = [0, 384], sizes = [8, 128], strides = [1, 1]} : vector<8x512xf32> to vector<8x128xf32>
    %224 = arith.negf %223 : vector<8x128xf32>
    %225 = math.exp %224 : vector<8x128xf32>
    %cst_77 = arith.constant 1.000000e+00 : f32
    %226 = vector.broadcast %cst_77 : f32 to vector<8x128xf32>
    %227 = arith.addf %226, %225 : vector<8x128xf32>
    %228 = arith.divf %226, %227 : vector<8x128xf32>
    %229 = arith.mulf %220, %132 : vector<8x128xf32>
    %230 = arith.mulf %214, %222 : vector<8x128xf32>
    %231 = arith.addf %229, %230 : vector<8x128xf32>
    %232 = math.tanh %231 : vector<8x128xf32>
    %233 = arith.mulf %228, %232 : vector<8x128xf32>
    %234 = vector.broadcast %208 : i32 to vector<8x1xi32>
    %235 = arith.cmpi slt, %234, %17 : vector<8x1xi32>
    %236 = arith.extui %235 : vector<8x1xi1> to vector<8x1xi32>
    %237 = arith.sitofp %236 : vector<8x1xi32> to vector<8x1xf32>
    %238 = vector.broadcast %237 : vector<8x1xf32> to vector<8x128xf32>
    %239 = arith.mulf %238, %233 : vector<8x128xf32>
    %cst_78 = arith.constant 1.000000e+00 : f32
    %240 = vector.broadcast %cst_78 : f32 to vector<8x1xf32>
    %241 = arith.subf %240, %237 : vector<8x1xf32>
    %242 = vector.broadcast %241 : vector<8x1xf32> to vector<8x128xf32>
    %243 = arith.mulf %242, %125 : vector<8x128xf32>
    %244 = arith.addf %239, %243 : vector<8x128xf32>
    %245 = vector.broadcast %237 : vector<8x1xf32> to vector<8x128xf32>
    %246 = arith.mulf %245, %231 : vector<8x128xf32>
    %cst_79 = arith.constant 1.000000e+00 : f32
    %247 = vector.broadcast %cst_79 : f32 to vector<8x1xf32>
    %248 = arith.subf %247, %237 : vector<8x1xf32>
    %249 = vector.broadcast %248 : vector<8x1xf32> to vector<8x128xf32>
    %250 = arith.mulf %249, %132 : vector<8x128xf32>
    %251 = arith.addf %246, %250 : vector<8x128xf32>
    %252 = vector.broadcast %237 : vector<8x1xf32> to vector<8x128xf32>
    %253 = arith.mulf %252, %233 : vector<8x128xf32>
    %254 = arith.index_cast %c1_i32_55 : i32 to index
    %c0_80 = arith.constant 0 : index
    %c0_81 = arith.constant 0 : index
    %255 = vector.load %arg9[%254, %c0_80, %c0_81] : memref<4x8x128xf32, #tpu.memory_space<vmem>>, vector<1x8x128xf32>
    %256 = vector.shape_cast %255 : vector<1x8x128xf32> to vector<8x128xf32>
    %257 = vector.shape_cast %206 : vector<8x128xf32> to vector<1x8x128xf32>
    tpu.vector_store %arg9[%254, %c0_80, %c0_81], %257 {strides = array<i32>} : memref<4x8x128xf32, #tpu.memory_space<vmem>>, vector<1x8x128xf32>,
    %c3_i32_82 = arith.constant 3 : i32
    %258 = arith.subi %c3_i32_82, %c1_i32_55 : i32
    %259 = arith.index_cast %258 : i32 to index
    %c0_83 = arith.constant 0 : index
    %c0_84 = arith.constant 0 : index
    %260 = vector.load %arg10[%259, %c0_83, %c0_84] : memref<4x8x128xf32, #tpu.memory_space<vmem>>, vector<1x8x128xf32>
    %261 = vector.shape_cast %260 : vector<1x8x128xf32> to vector<8x128xf32>
    %262 = vector.shape_cast %253 : vector<8x128xf32> to vector<1x8x128xf32>
    tpu.vector_store %arg10[%259, %c0_83, %c0_84], %262 {strides = array<i32>} : memref<4x8x128xf32, #tpu.memory_space<vmem>>, vector<1x8x128xf32>,
    %c2_i32 = arith.constant 2 : i32
    %c8_i32_85 = arith.constant 8 : i32
    %263 = arith.muli %c2_i32, %c8_i32_85 : i32
    %264 = tpu.assume_multiple %263, 8 : i32
    %c3_i32_86 = arith.constant 3 : i32
    %265 = arith.subi %c3_i32_86, %c2_i32 : i32
    %c8_i32_87 = arith.constant 8 : i32
    %266 = arith.muli %265, %c8_i32_87 : i32
    %267 = tpu.assume_multiple %266, 8 : i32
    %268 = arith.index_cast %264 : i32 to index
    %c0_88 = arith.constant 0 : index
    %269 = vector.load %arg11[%268, %c0_88] : memref<32x512xf32, #tpu.memory_space<vmem>>, vector<8x512xf32>
    %270 = arith.index_cast %267 : i32 to index
    %c0_89 = arith.constant 0 : index
    %271 = vector.load %arg12[%270, %c0_89] : memref<32x512xf32, #tpu.memory_space<vmem>>, vector<8x512xf32>
    %c0_90 = arith.constant 0 : index
    %c0_91 = arith.constant 0 : index
    %c0_92 = arith.constant 0 : index
    %272 = vector.load %arg8[%c0_90, %c0_91, %c0_92] : memref<2x128x512xf32, #tpu.memory_space<vmem>>, vector<1x128x512xf32>
    %273 = vector.shape_cast %272 : vector<1x128x512xf32> to vector<128x512xf32>
    %cst_93 = arith.constant dense<0.000000e+00> : vector<8x512xf32>
    %274 = tpu.matmul %197, %273, %cst_93 {dimension_numbers = #tpu.dot_dimension_numbers<[1], [0], [0], [1], [0, 0, 1, 1], [], []>} : vector<8x128xf32>, vector<128x512xf32>, vector<8x512xf32> -> vector<8x512xf32>
    %275 = arith.addf %269, %274 : vector<8x512xf32>
    %c1_94 = arith.constant 1 : index
    %c0_95 = arith.constant 0 : index
    %c0_96 = arith.constant 0 : index
    %276 = vector.load %arg8[%c1_94, %c0_95, %c0_96] : memref<2x128x512xf32, #tpu.memory_space<vmem>>, vector<1x128x512xf32>
    %277 = vector.shape_cast %276 : vector<1x128x512xf32> to vector<128x512xf32>
    %cst_97 = arith.constant dense<0.000000e+00> : vector<8x512xf32>
    %278 = tpu.matmul %244, %277, %cst_97 {dimension_numbers = #tpu.dot_dimension_numbers<[1], [0], [0], [1], [0, 0, 1, 1], [], []>} : vector<8x128xf32>, vector<128x512xf32>, vector<8x512xf32> -> vector<8x512xf32>
    %279 = arith.addf %271, %278 : vector<8x512xf32>
    %280 = arith.addi %18, %c2_i32 : i32
    %281 = vector.extract_strided_slice %275 {offsets = [0, 0], sizes = [8, 128], strides = [1, 1]} : vector<8x512xf32> to vector<8x128xf32>
    %282 = arith.negf %281 : vector<8x128xf32>
    %283 = math.exp %282 : vector<8x128xf32>
    %cst_98 = arith.constant 1.000000e+00 : f32
    %284 = vector.broadcast %cst_98 : f32 to vector<8x128xf32>
    %285 = arith.addf %284, %283 : vector<8x128xf32>
    %286 = arith.divf %284, %285 : vector<8x128xf32>
    %287 = vector.extract_strided_slice %275 {offsets = [0, 128], sizes = [8, 128], strides = [1, 1]} : vector<8x512xf32> to vector<8x128xf32>
    %288 = arith.negf %287 : vector<8x128xf32>
    %289 = math.exp %288 : vector<8x128xf32>
    %cst_99 = arith.constant 1.000000e+00 : f32
    %290 = vector.broadcast %cst_99 : f32 to vector<8x128xf32>
    %291 = arith.addf %290, %289 : vector<8x128xf32>
    %292 = arith.divf %290, %291 : vector<8x128xf32>
    %293 = vector.extract_strided_slice %275 {offsets = [0, 256], sizes = [8, 128], strides = [1, 1]} : vector<8x512xf32> to vector<8x128xf32>
    %294 = math.tanh %293 : vector<8x128xf32>
    %295 = vector.extract_strided_slice %275 {offsets = [0, 384], sizes = [8, 128], strides = [1, 1]} : vector<8x512xf32> to vector<8x128xf32>
    %296 = arith.negf %295 : vector<8x128xf32>
    %297 = math.exp %296 : vector<8x128xf32>
    %cst_100 = arith.constant 1.000000e+00 : f32
    %298 = vector.broadcast %cst_100 : f32 to vector<8x128xf32>
    %299 = arith.addf %298, %297 : vector<8x128xf32>
    %300 = arith.divf %298, %299 : vector<8x128xf32>
    %301 = arith.mulf %292, %204 : vector<8x128xf32>
    %302 = arith.mulf %286, %294 : vector<8x128xf32>
    %303 = arith.addf %301, %302 : vector<8x128xf32>
    %304 = math.tanh %303 : vector<8x128xf32>
    %305 = arith.mulf %300, %304 : vector<8x128xf32>
    %306 = vector.broadcast %280 : i32 to vector<8x1xi32>
    %307 = arith.cmpi slt, %306, %17 : vector<8x1xi32>
    %308 = arith.extui %307 : vector<8x1xi1> to vector<8x1xi32>
    %309 = arith.sitofp %308 : vector<8x1xi32> to vector<8x1xf32>
    %310 = vector.broadcast %309 : vector<8x1xf32> to vector<8x128xf32>
    %311 = arith.mulf %310, %305 : vector<8x128xf32>
    %cst_101 = arith.constant 1.000000e+00 : f32
    %312 = vector.broadcast %cst_101 : f32 to vector<8x1xf32>
    %313 = arith.subf %312, %309 : vector<8x1xf32>
    %314 = vector.broadcast %313 : vector<8x1xf32> to vector<8x128xf32>
    %315 = arith.mulf %314, %197 : vector<8x128xf32>
    %316 = arith.addf %311, %315 : vector<8x128xf32>
    %317 = vector.broadcast %309 : vector<8x1xf32> to vector<8x128xf32>
    %318 = arith.mulf %317, %303 : vector<8x128xf32>
    %cst_102 = arith.constant 1.000000e+00 : f32
    %319 = vector.broadcast %cst_102 : f32 to vector<8x1xf32>
    %320 = arith.subf %319, %309 : vector<8x1xf32>
    %321 = vector.broadcast %320 : vector<8x1xf32> to vector<8x128xf32>
    %322 = arith.mulf %321, %204 : vector<8x128xf32>
    %323 = arith.addf %318, %322 : vector<8x128xf32>
    %324 = vector.broadcast %309 : vector<8x1xf32> to vector<8x128xf32>
    %325 = arith.mulf %324, %305 : vector<8x128xf32>
    %c3_i32_103 = arith.constant 3 : i32
    %326 = arith.subi %c3_i32_103, %c2_i32 : i32
    %327 = arith.addi %20, %326 : i32
    %328 = vector.extract_strided_slice %279 {offsets = [0, 0], sizes = [8, 128], strides = [1, 1]} : vector<8x512xf32> to vector<8x128xf32>
    %329 = arith.negf %328 : vector<8x128xf32>
    %330 = math.exp %329 : vector<8x128xf32>
    %cst_104 = arith.constant 1.000000e+00 : f32
    %331 = vector.broadcast %cst_104 : f32 to vector<8x128xf32>
    %332 = arith.addf %331, %330 : vector<8x128xf32>
    %333 = arith.divf %331, %332 : vector<8x128xf32>
    %334 = vector.extract_strided_slice %279 {offsets = [0, 128], sizes = [8, 128], strides = [1, 1]} : vector<8x512xf32> to vector<8x128xf32>
    %335 = arith.negf %334 : vector<8x128xf32>
    %336 = math.exp %335 : vector<8x128xf32>
    %cst_105 = arith.constant 1.000000e+00 : f32
    %337 = vector.broadcast %cst_105 : f32 to vector<8x128xf32>
    %338 = arith.addf %337, %336 : vector<8x128xf32>
    %339 = arith.divf %337, %338 : vector<8x128xf32>
    %340 = vector.extract_strided_slice %279 {offsets = [0, 256], sizes = [8, 128], strides = [1, 1]} : vector<8x512xf32> to vector<8x128xf32>
    %341 = math.tanh %340 : vector<8x128xf32>
    %342 = vector.extract_strided_slice %279 {offsets = [0, 384], sizes = [8, 128], strides = [1, 1]} : vector<8x512xf32> to vector<8x128xf32>
    %343 = arith.negf %342 : vector<8x128xf32>
    %344 = math.exp %343 : vector<8x128xf32>
    %cst_106 = arith.constant 1.000000e+00 : f32
    %345 = vector.broadcast %cst_106 : f32 to vector<8x128xf32>
    %346 = arith.addf %345, %344 : vector<8x128xf32>
    %347 = arith.divf %345, %346 : vector<8x128xf32>
    %348 = arith.mulf %339, %251 : vector<8x128xf32>
    %349 = arith.mulf %333, %341 : vector<8x128xf32>
    %350 = arith.addf %348, %349 : vector<8x128xf32>
    %351 = math.tanh %350 : vector<8x128xf32>
    %352 = arith.mulf %347, %351 : vector<8x128xf32>
    %353 = vector.broadcast %327 : i32 to vector<8x1xi32>
    %354 = arith.cmpi slt, %353, %17 : vector<8x1xi32>
    %355 = arith.extui %354 : vector<8x1xi1> to vector<8x1xi32>
    %356 = arith.sitofp %355 : vector<8x1xi32> to vector<8x1xf32>
    %357 = vector.broadcast %356 : vector<8x1xf32> to vector<8x128xf32>
    %358 = arith.mulf %357, %352 : vector<8x128xf32>
    %cst_107 = arith.constant 1.000000e+00 : f32
    %359 = vector.broadcast %cst_107 : f32 to vector<8x1xf32>
    %360 = arith.subf %359, %356 : vector<8x1xf32>
    %361 = vector.broadcast %360 : vector<8x1xf32> to vector<8x128xf32>
    %362 = arith.mulf %361, %244 : vector<8x128xf32>
    %363 = arith.addf %358, %362 : vector<8x128xf32>
    %364 = vector.broadcast %356 : vector<8x1xf32> to vector<8x128xf32>
    %365 = arith.mulf %364, %350 : vector<8x128xf32>
    %cst_108 = arith.constant 1.000000e+00 : f32
    %366 = vector.broadcast %cst_108 : f32 to vector<8x1xf32>
    %367 = arith.subf %366, %356 : vector<8x1xf32>
    %368 = vector.broadcast %367 : vector<8x1xf32> to vector<8x128xf32>
    %369 = arith.mulf %368, %251 : vector<8x128xf32>
    %370 = arith.addf %365, %369 : vector<8x128xf32>
    %371 = vector.broadcast %356 : vector<8x1xf32> to vector<8x128xf32>
    %372 = arith.mulf %371, %352 : vector<8x128xf32>
    %373 = arith.index_cast %c2_i32 : i32 to index
    %c0_109 = arith.constant 0 : index
    %c0_110 = arith.constant 0 : index
    %374 = vector.load %arg9[%373, %c0_109, %c0_110] : memref<4x8x128xf32, #tpu.memory_space<vmem>>, vector<1x8x128xf32>
    %375 = vector.shape_cast %374 : vector<1x8x128xf32> to vector<8x128xf32>
    %376 = vector.shape_cast %325 : vector<8x128xf32> to vector<1x8x128xf32>
    tpu.vector_store %arg9[%373, %c0_109, %c0_110], %376 {strides = array<i32>} : memref<4x8x128xf32, #tpu.memory_space<vmem>>, vector<1x8x128xf32>,
    %c3_i32_111 = arith.constant 3 : i32
    %377 = arith.subi %c3_i32_111, %c2_i32 : i32
    %378 = arith.index_cast %377 : i32 to index
    %c0_112 = arith.constant 0 : index
    %c0_113 = arith.constant 0 : index
    %379 = vector.load %arg10[%378, %c0_112, %c0_113] : memref<4x8x128xf32, #tpu.memory_space<vmem>>, vector<1x8x128xf32>
    %380 = vector.shape_cast %379 : vector<1x8x128xf32> to vector<8x128xf32>
    %381 = vector.shape_cast %372 : vector<8x128xf32> to vector<1x8x128xf32>
    tpu.vector_store %arg10[%378, %c0_112, %c0_113], %381 {strides = array<i32>} : memref<4x8x128xf32, #tpu.memory_space<vmem>>, vector<1x8x128xf32>,
    %c3_i32_114 = arith.constant 3 : i32
    %c8_i32_115 = arith.constant 8 : i32
    %382 = arith.muli %c3_i32_114, %c8_i32_115 : i32
    %383 = tpu.assume_multiple %382, 8 : i32
    %c3_i32_116 = arith.constant 3 : i32
    %384 = arith.subi %c3_i32_116, %c3_i32_114 : i32
    %c8_i32_117 = arith.constant 8 : i32
    %385 = arith.muli %384, %c8_i32_117 : i32
    %386 = tpu.assume_multiple %385, 8 : i32
    %387 = arith.index_cast %383 : i32 to index
    %c0_118 = arith.constant 0 : index
    %388 = vector.load %arg11[%387, %c0_118] : memref<32x512xf32, #tpu.memory_space<vmem>>, vector<8x512xf32>
    %389 = arith.index_cast %386 : i32 to index
    %c0_119 = arith.constant 0 : index
    %390 = vector.load %arg12[%389, %c0_119] : memref<32x512xf32, #tpu.memory_space<vmem>>, vector<8x512xf32>
    %c0_120 = arith.constant 0 : index
    %c0_121 = arith.constant 0 : index
    %c0_122 = arith.constant 0 : index
    %391 = vector.load %arg8[%c0_120, %c0_121, %c0_122] : memref<2x128x512xf32, #tpu.memory_space<vmem>>, vector<1x128x512xf32>
    %392 = vector.shape_cast %391 : vector<1x128x512xf32> to vector<128x512xf32>
    %cst_123 = arith.constant dense<0.000000e+00> : vector<8x512xf32>
    %393 = tpu.matmul %316, %392, %cst_123 {dimension_numbers = #tpu.dot_dimension_numbers<[1], [0], [0], [1], [0, 0, 1, 1], [], []>} : vector<8x128xf32>, vector<128x512xf32>, vector<8x512xf32> -> vector<8x512xf32>
    %394 = arith.addf %388, %393 : vector<8x512xf32>
    %c1_124 = arith.constant 1 : index
    %c0_125 = arith.constant 0 : index
    %c0_126 = arith.constant 0 : index
    %395 = vector.load %arg8[%c1_124, %c0_125, %c0_126] : memref<2x128x512xf32, #tpu.memory_space<vmem>>, vector<1x128x512xf32>
    %396 = vector.shape_cast %395 : vector<1x128x512xf32> to vector<128x512xf32>
    %cst_127 = arith.constant dense<0.000000e+00> : vector<8x512xf32>
    %397 = tpu.matmul %363, %396, %cst_127 {dimension_numbers = #tpu.dot_dimension_numbers<[1], [0], [0], [1], [0, 0, 1, 1], [], []>} : vector<8x128xf32>, vector<128x512xf32>, vector<8x512xf32> -> vector<8x512xf32>
    %398 = arith.addf %390, %397 : vector<8x512xf32>
    %399 = arith.addi %18, %c3_i32_114 : i32
    %400 = vector.extract_strided_slice %394 {offsets = [0, 0], sizes = [8, 128], strides = [1, 1]} : vector<8x512xf32> to vector<8x128xf32>
    %401 = arith.negf %400 : vector<8x128xf32>
    %402 = math.exp %401 : vector<8x128xf32>
    %cst_128 = arith.constant 1.000000e+00 : f32
    %403 = vector.broadcast %cst_128 : f32 to vector<8x128xf32>
    %404 = arith.addf %403, %402 : vector<8x128xf32>
    %405 = arith.divf %403, %404 : vector<8x128xf32>
    %406 = vector.extract_strided_slice %394 {offsets = [0, 128], sizes = [8, 128], strides = [1, 1]} : vector<8x512xf32> to vector<8x128xf32>
    %407 = arith.negf %406 : vector<8x128xf32>
    %408 = math.exp %407 : vector<8x128xf32>
    %cst_129 = arith.constant 1.000000e+00 : f32
    %409 = vector.broadcast %cst_129 : f32 to vector<8x128xf32>
    %410 = arith.addf %409, %408 : vector<8x128xf32>
    %411 = arith.divf %409, %410 : vector<8x128xf32>
    %412 = vector.extract_strided_slice %394 {offsets = [0, 256], sizes = [8, 128], strides = [1, 1]} : vector<8x512xf32> to vector<8x128xf32>
    %413 = math.tanh %412 : vector<8x128xf32>
    %414 = vector.extract_strided_slice %394 {offsets = [0, 384], sizes = [8, 128], strides = [1, 1]} : vector<8x512xf32> to vector<8x128xf32>
    %415 = arith.negf %414 : vector<8x128xf32>
    %416 = math.exp %415 : vector<8x128xf32>
    %cst_130 = arith.constant 1.000000e+00 : f32
    %417 = vector.broadcast %cst_130 : f32 to vector<8x128xf32>
    %418 = arith.addf %417, %416 : vector<8x128xf32>
    %419 = arith.divf %417, %418 : vector<8x128xf32>
    %420 = arith.mulf %411, %323 : vector<8x128xf32>
    %421 = arith.mulf %405, %413 : vector<8x128xf32>
    %422 = arith.addf %420, %421 : vector<8x128xf32>
    %423 = math.tanh %422 : vector<8x128xf32>
    %424 = arith.mulf %419, %423 : vector<8x128xf32>
    %425 = vector.broadcast %399 : i32 to vector<8x1xi32>
    %426 = arith.cmpi slt, %425, %17 : vector<8x1xi32>
    %427 = arith.extui %426 : vector<8x1xi1> to vector<8x1xi32>
    %428 = arith.sitofp %427 : vector<8x1xi32> to vector<8x1xf32>
    %429 = vector.broadcast %428 : vector<8x1xf32> to vector<8x128xf32>
    %430 = arith.mulf %429, %424 : vector<8x128xf32>
    %cst_131 = arith.constant 1.000000e+00 : f32
    %431 = vector.broadcast %cst_131 : f32 to vector<8x1xf32>
    %432 = arith.subf %431, %428 : vector<8x1xf32>
    %433 = vector.broadcast %432 : vector<8x1xf32> to vector<8x128xf32>
    %434 = arith.mulf %433, %316 : vector<8x128xf32>
    %435 = arith.addf %430, %434 : vector<8x128xf32>
    %436 = vector.broadcast %428 : vector<8x1xf32> to vector<8x128xf32>
    %437 = arith.mulf %436, %422 : vector<8x128xf32>
    %cst_132 = arith.constant 1.000000e+00 : f32
    %438 = vector.broadcast %cst_132 : f32 to vector<8x1xf32>
    %439 = arith.subf %438, %428 : vector<8x1xf32>
    %440 = vector.broadcast %439 : vector<8x1xf32> to vector<8x128xf32>
    %441 = arith.mulf %440, %323 : vector<8x128xf32>
    %442 = arith.addf %437, %441 : vector<8x128xf32>
    %443 = vector.broadcast %428 : vector<8x1xf32> to vector<8x128xf32>
    %444 = arith.mulf %443, %424 : vector<8x128xf32>
    %c3_i32_133 = arith.constant 3 : i32
    %445 = arith.subi %c3_i32_133, %c3_i32_114 : i32
    %446 = arith.addi %20, %445 : i32
    %447 = vector.extract_strided_slice %398 {offsets = [0, 0], sizes = [8, 128], strides = [1, 1]} : vector<8x512xf32> to vector<8x128xf32>
    %448 = arith.negf %447 : vector<8x128xf32>
    %449 = math.exp %448 : vector<8x128xf32>
    %cst_134 = arith.constant 1.000000e+00 : f32
    %450 = vector.broadcast %cst_134 : f32 to vector<8x128xf32>
    %451 = arith.addf %450, %449 : vector<8x128xf32>
    %452 = arith.divf %450, %451 : vector<8x128xf32>
    %453 = vector.extract_strided_slice %398 {offsets = [0, 128], sizes = [8, 128], strides = [1, 1]} : vector<8x512xf32> to vector<8x128xf32>
    %454 = arith.negf %453 : vector<8x128xf32>
    %455 = math.exp %454 : vector<8x128xf32>
    %cst_135 = arith.constant 1.000000e+00 : f32
    %456 = vector.broadcast %cst_135 : f32 to vector<8x128xf32>
    %457 = arith.addf %456, %455 : vector<8x128xf32>
    %458 = arith.divf %456, %457 : vector<8x128xf32>
    %459 = vector.extract_strided_slice %398 {offsets = [0, 256], sizes = [8, 128], strides = [1, 1]} : vector<8x512xf32> to vector<8x128xf32>
    %460 = math.tanh %459 : vector<8x128xf32>
    %461 = vector.extract_strided_slice %398 {offsets = [0, 384], sizes = [8, 128], strides = [1, 1]} : vector<8x512xf32> to vector<8x128xf32>
    %462 = arith.negf %461 : vector<8x128xf32>
    %463 = math.exp %462 : vector<8x128xf32>
    %cst_136 = arith.constant 1.000000e+00 : f32
    %464 = vector.broadcast %cst_136 : f32 to vector<8x128xf32>
    %465 = arith.addf %464, %463 : vector<8x128xf32>
    %466 = arith.divf %464, %465 : vector<8x128xf32>
    %467 = arith.mulf %458, %370 : vector<8x128xf32>
    %468 = arith.mulf %452, %460 : vector<8x128xf32>
    %469 = arith.addf %467, %468 : vector<8x128xf32>
    %470 = math.tanh %469 : vector<8x128xf32>
    %471 = arith.mulf %466, %470 : vector<8x128xf32>
    %472 = vector.broadcast %446 : i32 to vector<8x1xi32>
    %473 = arith.cmpi slt, %472, %17 : vector<8x1xi32>
    %474 = arith.extui %473 : vector<8x1xi1> to vector<8x1xi32>
    %475 = arith.sitofp %474 : vector<8x1xi32> to vector<8x1xf32>
    %476 = vector.broadcast %475 : vector<8x1xf32> to vector<8x128xf32>
    %477 = arith.mulf %476, %471 : vector<8x128xf32>
    %cst_137 = arith.constant 1.000000e+00 : f32
    %478 = vector.broadcast %cst_137 : f32 to vector<8x1xf32>
    %479 = arith.subf %478, %475 : vector<8x1xf32>
    %480 = vector.broadcast %479 : vector<8x1xf32> to vector<8x128xf32>
    %481 = arith.mulf %480, %363 : vector<8x128xf32>
    %482 = arith.addf %477, %481 : vector<8x128xf32>
    %483 = vector.broadcast %475 : vector<8x1xf32> to vector<8x128xf32>
    %484 = arith.mulf %483, %469 : vector<8x128xf32>
    %cst_138 = arith.constant 1.000000e+00 : f32
    %485 = vector.broadcast %cst_138 : f32 to vector<8x1xf32>
    %486 = arith.subf %485, %475 : vector<8x1xf32>
    %487 = vector.broadcast %486 : vector<8x1xf32> to vector<8x128xf32>
    %488 = arith.mulf %487, %370 : vector<8x128xf32>
    %489 = arith.addf %484, %488 : vector<8x128xf32>
    %490 = vector.broadcast %475 : vector<8x1xf32> to vector<8x128xf32>
    %491 = arith.mulf %490, %471 : vector<8x128xf32>
    %492 = arith.index_cast %c3_i32_114 : i32 to index
    %c0_139 = arith.constant 0 : index
    %c0_140 = arith.constant 0 : index
    %493 = vector.load %arg9[%492, %c0_139, %c0_140] : memref<4x8x128xf32, #tpu.memory_space<vmem>>, vector<1x8x128xf32>
    %494 = vector.shape_cast %493 : vector<1x8x128xf32> to vector<8x128xf32>
    %495 = vector.shape_cast %444 : vector<8x128xf32> to vector<1x8x128xf32>
    tpu.vector_store %arg9[%492, %c0_139, %c0_140], %495 {strides = array<i32>} : memref<4x8x128xf32, #tpu.memory_space<vmem>>, vector<1x8x128xf32>,
    %c3_i32_141 = arith.constant 3 : i32
    %496 = arith.subi %c3_i32_141, %c3_i32_114 : i32
    %497 = arith.index_cast %496 : i32 to index
    %c0_142 = arith.constant 0 : index
    %c0_143 = arith.constant 0 : index
    %498 = vector.load %arg10[%497, %c0_142, %c0_143] : memref<4x8x128xf32, #tpu.memory_space<vmem>>, vector<1x8x128xf32>
    %499 = vector.shape_cast %498 : vector<1x8x128xf32> to vector<8x128xf32>
    %500 = vector.shape_cast %491 : vector<8x128xf32> to vector<1x8x128xf32>
    tpu.vector_store %arg10[%497, %c0_142, %c0_143], %500 {strides = array<i32>} : memref<4x8x128xf32, #tpu.memory_space<vmem>>, vector<1x8x128xf32>,
    %c4_i32_144 = arith.constant 4 : i32
    %c0_145 = arith.constant 0 : index
    %c0_146 = arith.constant 0 : index
    %501 = vector.load %arg13[%c0_145, %c0_146] : memref<8x128xf32, #tpu.memory_space<vmem>>, vector<8x128xf32>
    tpu.vector_store %arg13[%c0_145, %c0_146], %435 {strides = array<i32>} : memref<8x128xf32, #tpu.memory_space<vmem>>, vector<8x128xf32>,
    %c0_147 = arith.constant 0 : index
    %c0_148 = arith.constant 0 : index
    %502 = vector.load %arg14[%c0_147, %c0_148] : memref<8x128xf32, #tpu.memory_space<vmem>>, vector<8x128xf32>
    tpu.vector_store %arg14[%c0_147, %c0_148], %442 {strides = array<i32>} : memref<8x128xf32, #tpu.memory_space<vmem>>, vector<8x128xf32>,
    %c0_149 = arith.constant 0 : index
    %c0_150 = arith.constant 0 : index
    %503 = vector.load %arg15[%c0_149, %c0_150] : memref<8x128xf32, #tpu.memory_space<vmem>>, vector<8x128xf32>
    tpu.vector_store %arg15[%c0_149, %c0_150], %482 {strides = array<i32>} : memref<8x128xf32, #tpu.memory_space<vmem>>, vector<8x128xf32>,
    %c0_151 = arith.constant 0 : index
    %c0_152 = arith.constant 0 : index
    %504 = vector.load %arg16[%c0_151, %c0_152] : memref<8x128xf32, #tpu.memory_space<vmem>>, vector<8x128xf32>
    tpu.vector_store %arg16[%c0_151, %c0_152], %489 {strides = array<i32>} : memref<8x128xf32, #tpu.memory_space<vmem>>, vector<8x128xf32>,
    return
  }
  func.func @transform_0(%arg0: i32) -> (i32, i32) {
    %c0_i32 = arith.constant 0 : i32
    %c0_i32_0 = arith.constant 0 : i32
    %c0_i32_1 = arith.constant 0 : i32
    return %c0_i32, %c0_i32_0 : i32, i32
  }
  func.func @transform_1(%arg0: i32) -> (i32, i32) {
    %c0_i32 = arith.constant 0 : i32
    %c0_i32_0 = arith.constant 0 : i32
    return %arg0, %c0_i32 : i32, i32
  }
  func.func @transform_2(%arg0: i32) -> (i32, i32) {
    %c1_i32 = arith.constant 1 : i32
    %0 = arith.subi %c1_i32, %arg0 : i32
    %c0_i32 = arith.constant 0 : i32
    %c0_i32_0 = arith.constant 0 : i32
    return %0, %c0_i32 : i32, i32
  }
  func.func @transform_3(%arg0: i32) -> (i32, i32) {
    %c0_i32 = arith.constant 0 : i32
    %c0_i32_0 = arith.constant 0 : i32
    %c0_i32_1 = arith.constant 0 : i32
    return %c0_i32, %c0_i32_0 : i32, i32
  }
  func.func @transform_4(%arg0: i32) -> (i32, i32) {
    %c0_i32 = arith.constant 0 : i32
    %c0_i32_0 = arith.constant 0 : i32
    %c0_i32_1 = arith.constant 0 : i32
    return %c0_i32, %c0_i32_0 : i32, i32
  }
  func.func @transform_5(%arg0: i32) -> (i32, i32) {
    %c0_i32 = arith.constant 0 : i32
    %c0_i32_0 = arith.constant 0 : i32
    %c0_i32_1 = arith.constant 0 : i32
    return %c0_i32, %c0_i32_0 : i32, i32
  }
  func.func @transform_6(%arg0: i32) -> (i32, i32) {
    %c0_i32 = arith.constant 0 : i32
    %c0_i32_0 = arith.constant 0 : i32
    %c0_i32_1 = arith.constant 0 : i32
    return %c0_i32, %c0_i32_0 : i32, i32
  }
  func.func @transform_7(%arg0: i32) -> (i32, i32, i32) {
    %c0_i32 = arith.constant 0 : i32
    %c0_i32_0 = arith.constant 0 : i32
    %c0_i32_1 = arith.constant 0 : i32
    %c0_i32_2 = arith.constant 0 : i32
    return %c0_i32, %c0_i32_0, %c0_i32_1 : i32, i32, i32
  }
  func.func @transform_8(%arg0: i32) -> (i32, i32, i32) {
    %c0_i32 = arith.constant 0 : i32
    %c0_i32_0 = arith.constant 0 : i32
    %c0_i32_1 = arith.constant 0 : i32
    return %arg0, %c0_i32, %c0_i32_0 : i32, i32, i32
  }
  func.func @transform_9(%arg0: i32) -> (i32, i32, i32) {
    %c1_i32 = arith.constant 1 : i32
    %0 = arith.subi %c1_i32, %arg0 : i32
    %c0_i32 = arith.constant 0 : i32
    %c0_i32_0 = arith.constant 0 : i32
    %c0_i32_1 = arith.constant 0 : i32
    return %0, %c0_i32, %c0_i32_0 : i32, i32, i32
  }
}

</mosaic_0001>

<bundles_post_ra>
// kernel: tpu_custom_call.1
= control target key start
LH: loop header
LB: loop body
LE: loop exit
PB: predicated region body
PF: predicated region fallthrough
CT: control target
= control target key end

     0   :  { %s5249_s0 = inlined_call_operand.vmem [shape: s32[8,1], index: 0, kind: input, shape index: {}]   ;;  %s5250_s1 = inlined_call_operand.hbm [shape: f32[64,128], index: 1, kind: input, shape index: {}]   ;;  %s5251_s2 = inlined_call_operand.hbm [shape: f32[64,128], index: 2, kind: input, shape index: {}]   ;;  %s5252_s3 = inlined_call_operand.hbm [shape: f32[128,512], index: 3, kind: input, shape index: {}]   ;;  %s5253_s4 = inlined_call_operand.hbm [shape: f32[128,512], index: 4, kind: input, shape index: {}]   ;;  %s5254_s5 = inlined_call_operand.vmem [shape: f32[1,512], index: 5, kind: input, shape index: {}]   ;;  %s5255_s6 = inlined_call_operand.vmem [shape: f32[1,512], index: 6, kind: input, shape index: {}]   ;;  %s5256_s7 = inlined_call_operand.hbm [shape: f32[2,128,512], index: 7, kind: input, shape index: {}]   ;;  %s5257_s8 = inlined_call_operand.hbm [shape: f32[8,8,128], index: 8, kind: output, shape index: {0}]   ;;  %s5258_s9 = inlined_call_operand.hbm [shape: f32[8,8,128], index: 9, kind: output, shape index: {1}]  }
   0x1   :  { %5345 = sst [smem:[#allocation128_spill]] %s5250_s1 }
   0x2   :  { %5346 = sst [smem:[#allocation129_spill]] %s5252_s3 }
   0x3   :  { %5347 = sst [smem:[#allocation130_spill]] %s5253_s4 }
   0x4   :  { %5348 = sst [smem:[#allocation131_spill]] %s5256_s7 }
   0x5   :  { %15 = vsyncpa [#allocation9], 0 }
   0x6   :  { %17 = vsyncpa [#allocation9 + $0x1], 0 }
   0x7   :  { %18 = vsyncpa [#allocation12], 0 }
   0x8   :  { %20 = vsyncpa [#allocation12 + $0x1], 0 }
   0x9   :  { %21 = vsyncpa [#allocation15], 0 }
   0xa   :  { %22 = vsyncpa [#allocation10], 0 }
   0xb   :  { %24 = vsyncpa [#allocation10 + $0x1], 0 }
   0xc   :  { %25 = vsyncpa [#allocation19], 0 }
   0xd   :  { %27 = vsyncpa [#allocation19 + $0x1], 0  ;;  %s3716_s30 = smov 0   ;;  %s3718_s10 = smov 0  }
   0xe   :  { %s3720_s11 = smov 0   ;;  %s3722_s12 = smov 0  }
   0xf   :  { %s3724_s13 = smov 0   ;;  %s3726_s14 = smov 0  }
  0x10   :  { %s3728_s15 = smov 0  }
  0x11 LB: > { %5349 = sst [smem:[#allocation26_spill]] %s3628_s30  ;;  %s3752_s16 = sadd.s32 4294967295, %s3652_s15   ;;  %s3652_s15 = sphi %s3728_s15, %s5603_s15   ;;  %s3648_s14 = sphi %s3726_s14, %s5596_s14   ;;  %s3644_s13 = sphi %s3724_s13, %s5602_s13   ;;  %s3640_s12 = sphi %s3722_s12, %s5601_s12   ;;  %s3636_s11 = sphi %s3720_s11, %s5600_s11   ;;  %s3632_s10 = sphi %s3718_s10, %s5599_s10   ;;  %s3628_s30 = sphi %s3716_s30, %s5598_s30  }
  0x12   : > { %5350 = sst [smem:[#allocation27_spill]] %s3640_s12  ;;  %p102_p0 = scmp.ne.s32.totalorder %s3632_s10, %s3628_s30 }
  0x13   : > { %5351 = sst [smem:[#allocation28_spill]] %s3648_s14  ;;  %p5264_p1 = scmp.eq.s32.totalorder %s3752_s16, 0 }
  0x14   : > { %p5266_p2 = scmp.eq.s32.totalorder %s3752_s16, 1  ;;  %p3038_p3 = scmp.ge.s32.totalorder %s3652_s15, 1 }
  0x15   : > { %p272_p4 = scmp.lt.s32.totalorder %s3652_s15, 3  ;;  %p3765_p5 = por %p102_p0, %p5264_p1 }
  0x16   : > { %s5354_s3 = sld [smem:[#allocation129_spill]]  ;;  %s3654_s22 = smov [#allocation13]  }
  0x17   : > { %p3770_p7 = pnand %p3038_p3, %p272_p4  ;;  %s288_s23 = sshll.u32 %s3654_s22, 4  ;;  %s289_s23 = int_to_ptr.vmem [resolvable:$true] %s288_s23 }
  0x18   : > { %s5356_s4 = sld [smem:[#allocation130_spill]]  ;;  %s3655_s28 = smov 512  }
  0x19   : > { %p3130_p8 = pneg %p3770_p7  ;;  %s3656_s29 = smov 32  }
  0x1a   : > { %s5357_s7 = sld [smem:[#allocation131_spill]]  ;;  %s3658_s26 = smov [#allocation16]  }
  0x1b   : > { %p3781_p9 = pnand %p3130_p8, %p5264_p1  ;;  %p68_p11 = scmp.ne.s32.totalorder %s3648_s14, %s3644_s13 }
  0x1c   : > { %s286_s21 = sshll.u32 %s5354_s3, 4  ;;  %s3657_s3 = smov [#allocation14]   ;;  %s287_s21 = int_to_ptr.hbm [resolvable:$true] %s286_s21 }
  0x1d   : > { %3133 = dma.hbm_to_vmem [thread:$0]  (!%p3781_p9), %s287_s21, 8192, %s289_s23, [#allocation12], %s3655_s28, %s3655_s28, %s3656_s29  }
  0x1e   : > { %s300_s27 = sshll.u32 %s5356_s4, 4  ;;  %s302_s25 = sshll.u32 %s3657_s3, 4  ;;  %s301_s27 = int_to_ptr.hbm [resolvable:$true] %s300_s27  ;;  %s303_s25 = int_to_ptr.vmem [resolvable:$true] %s302_s25 }
  0x1f   : > { %3136 = dma.hbm_to_vmem [thread:$0]  (!%p3781_p9), %s301_s27, 8192, %s303_s25, [#allocation15], %s3655_s28, %s3655_s28, %s3656_s29  }
  0x20   : > { %s320_s22 = sshll.u32 %s5357_s7, 4  ;;  %s322_s4 = sshll.u32 %s3658_s26, 4  ;;  %s321_s22 = int_to_ptr.hbm [resolvable:$true] %s320_s22  ;;  %s323_s4 = int_to_ptr.vmem [resolvable:$true] %s322_s4 }
  0x21   : > { %3139 = dma.hbm_to_vmem [thread:$0]  (!%p3781_p9), %s321_s22, 16384, %s323_s4, [#allocation15], %s3655_s28, %s3655_s28, %s3656_s29  }
  0x22   : > { %s3037_s21 = sadd.s32 4294967294, %s3652_s15   ;;  %p5259_p12 = scmp.eq.s32.totalorder %s3652_s15, 0 }
  0x23   : > { %p74_p13 = scmp.ne.s32.totalorder %s3644_s13, %s3640_s12  ;;  %p237_p3 = scmp.eq.s32.totalorder %s3037_s21, 1 }
  0x24   : > { %p3807_p4 = por %p5259_p12, %p68_p11  ;;  %p3813_p8 = por %p5266_p2, %p68_p11 }
  0x25   : > { %p3819_p9 = por %p5264_p1, %p74_p13  ;;  %p3823_p10 = por %p237_p3, %p74_p13 }
  0x26   : > { %p3830_p6 = por %p237_p3, %p102_p0  ;;  %p5265_p12 = scmp.lt.s32.totalorder %s3652_s15, 2 }
  0x27   : > { %s5361_s24 = scalar_select %p3823_p10, 1, 0 }
  0x28   : > { %s5363_s28 = scalar_select %p3830_p6, 1, 0 }
  0x29   : > { %5362 = sst [smem:[#allocation29_spill]] %s5361_s24  ;;  %s336_s29 = sand.u32 1, %s3648_s14  }
  0x2a   : > { %5364 = sst [smem:[#allocation30_spill]] %s5363_s28  ;;  %s3106_s19 = sshll.u32 %s3652_s15, 5 }
  0x2b   : > { %s3043_s20 = sshll.u32 %s336_s29, 5  ;;  %s5365_s1 = sld [smem:[#allocation128_spill]] }
  0x2c   : > { %s340_s23 = scalar_lea.vmem [#allocation8], %s3043_s20  ;;  %p3844_p11 = pnand %p5265_p12, %p3807_p4 }
  0x2d   : > { %s348_s7 = sshll.u32 %s340_s23, 4  ;;  %s337_s28 = scalar_lea.sflag [#allocation9], %s336_s29  ;;  %s349_s7 = int_to_ptr.vmem [resolvable:$true] %s348_s7 }
  0x2e   : > { %p3462_p13 = pneg %p3844_p11 }
  0x31   : > { %s345_s26 = scalar_lea.hbm %s5365_s1, %s3106_s19  ;;  %s3465_s20 = scalar_lea.hbm %s5365_s1, 64 }
  0x32   : > { %s346_s21 = sshll.u32 %s345_s26, 4  ;;  %s347_s21 = int_to_ptr.hbm [resolvable:$true] %s346_s21 }
  0x33   : > { %s3458_s24 = sshra.s32 %s347_s21, 4  ;;  %s3459_s24 = int_to_ptr.hbm [resolvable:$true] %s3458_s24 }
  0x34   : > { %s3460_s12 = scalar_lea.hbm %s3459_s24, 32  ;;  %p3466_p4 = scmp.lt.s32.totalorder %s3459_s24, %s5365_s1 }
  0x35   : > { %p3461_p0 = scmp.ne.s32.totalorder %s3459_s24, %s3460_s12  ;;  %p3467_p12 = scmp.lt.s32.totalorder %s3465_s20, %s3460_s12 }
  0x37   : > { %p3463_p3 = pnand %p3462_p13, %p3461_p0  ;;  %p3468_p2 = por %p3467_p12, %p3466_p4 }
  0x39   : > { %p3464_p1 = pneg %p3463_p3 }
  0x3b   : > { %p3469_p6 = pnand %p3468_p2, %p3464_p1 }
  0x3d   : > { %3472 = shalt.err (!%p3469_p6)
}
  0x3e   : > { %s5267_s29 = smov 128   ;;  %s5268_s25 = smov 8  }
  0x3f   : > { %3143 = dma.hbm_to_vmem [thread:$0]  (!%p3844_p11), %s347_s21, 512, %s349_s7, %s337_s28, %s5267_s29, %s5267_s29, %s5268_s25  }
  0x40   : > { %s3862_s12 = sadd.s32 1, %s3652_s15   ;;  %s84_s24 = ssub.s32 1, %s3652_s15 }
  0x41   : > { %s58_s26 = ssub.s32 %s3652_s15, %s3862_s12  ;;  %s85_s19 = ssub.s32 1, %s3862_s12 }
  0x42   : > { %p59_p1 = scmp.eq.s32.totalorder %s58_s26, 0  ;;  %s86_s23 = ssub.s32 %s84_s24, %s85_s19 }
  0x43   : > { %p87_p2 = scmp.eq.s32.totalorder %s86_s23, 0  ;;  %s89_s20 = sadd.s32 1, %s3636_s11 }
  0x44   : > { %s5367_s3 = sadd.s32 1, %s3648_s14  ;;  %p96_p6 = scmp.ne.s32.totalorder %s3636_s11, %s3632_s10 }
  0x45   : > { %s3872_s22 = scalar_select %p59_p1, %s3648_s14, %s5367_s3  }
  0x46   : > { %s3875_s30 = scalar_select %p87_p2, %s3636_s11, %s89_s20  }
  0x47   : > { %5368 = sst [smem:[#allocation31_spill]] %s3872_s22  ;;  %s358_s1 = sand.u32 1, %s3652_s15  }
  0x48   : > { %5369 = sst [smem:[#allocation32_spill]] %s3875_s30  ;;  %s360_s7 = sand.u32 1, %s3636_s11  }
  0x49   : > { %p5370_p12 = scmp.eq.s32.totalorder %s3652_s15, 0  ;;  %p5371_p0 = scmp.eq.s32.totalorder %s3752_s16, 1 }
  0x4a   : > { %s3046_s21 = sshll.u32 %s360_s7, 5  ;;  %s3107_s26 = sshll.u32 %s84_s24, 5 }
  0x4b   : > { %p98_p11 = por %p96_p6, %p5370_p12  ;;  %p3885_p13 = por %p5371_p0, %p96_p6 }
  0x4c   : > { %s368_s29 = scalar_lea.hbm %s5251_s2, %s3107_s26  ;;  %s362_s25 = scalar_lea.vmem [#allocation11], %s3046_s21 }
  0x4d   : > { %s369_s3 = sshll.u32 %s368_s29, 4  ;;  %s371_s20 = sshll.u32 %s362_s25, 4  ;;  %s370_s3 = int_to_ptr.hbm [resolvable:$true] %s369_s3  ;;  %s372_s20 = int_to_ptr.vmem [resolvable:$true] %s371_s20 }
  0x4e   : > { %p5373_p3 = scmp.lt.s32.totalorder %s3652_s15, 2  ;;  %s359_s14 = scalar_lea.sflag [#allocation12], %s358_s1 }
  0x4f   : > { %s3488_s30 = sshra.s32 %s370_s3, 4  ;;  %s3495_s25 = scalar_lea.hbm %s5251_s2, 64  ;;  %s3489_s30 = int_to_ptr.hbm [resolvable:$true] %s3488_s30 }
  0x50   : > { %p3894_p4 = pnand %p5373_p3, %p98_p11  ;;  %s3490_s7 = scalar_lea.hbm %s3489_s30, 32 }
  0x51   : > { %p3491_p1 = scmp.ne.s32.totalorder %s3489_s30, %s3490_s7  ;;  %p3496_p11 = scmp.lt.s32.totalorder %s3489_s30, %s5251_s2 }
  0x52   : > { %p3492_p2 = pneg %p3894_p4  ;;  %p3497_p0 = scmp.lt.s32.totalorder %s3495_s25, %s3490_s7 }
  0x54   : > { %p3493_p6 = pnand %p3492_p2, %p3491_p1  ;;  %p3498_p3 = por %p3497_p0, %p3496_p11 }
  0x56   : > { %p3494_p12 = pneg %p3493_p6 }
  0x58   : > { %p3499_p10 = pnand %p3498_p3, %p3494_p12 }
  0x5a   : > { %3502 = shalt.err (!%p3499_p10)
}
  0x5b   : > { %s5375_s1 = smov 8   ;;  %s5376_s19 = smov 128  }
  0x5c   : > { %3146 = dma.hbm_to_vmem [thread:$0]  (!%p3894_p4), %s370_s3, 512, %s372_s20, %s359_s14, %s5376_s19, %s5376_s19, %s5375_s1  }
  0x5d   : > { %383 = sbr.rel (%p3770_p7) target bundleno = 975 (0x3cf), region = 52 }
  0x62   : > { %s3914_s23 = sand.u32 1, %s3644_s13  }
  0x63   : > { %s3050_s30 = sshll.u32 %s3914_s23, 5  ;;  %s386_s7 = scalar_lea.sflag [#allocation9], %s3914_s23 }
  0x64   : > { %s3918_s29 = scalar_lea.vmem [#allocation8], %s3050_s30 }
  0x65   : > { %3603 = dma.done.wait (%p3819_p9), %s386_s7, 512  }
  0x66   : > { %3605 = vsyncadd (%p3819_p9), %s386_s7, 4294966784  ;;  %s395_s14 = sand.u32 1, %s3752_s16   ;;  %s397_s18 = sand.u32 1, %s3632_s10  }
  0x67   : > { %s3051_s22 = sshll.u32 %s397_s18, 5  ;;  %s396_s3 = scalar_lea.sflag [#allocation12], %s395_s14 }
  0x68   : > { %s3928_s20 = scalar_lea.vmem [#allocation11], %s3051_s22 }
  0x69   : > { %3607 = dma.done.wait (%p3765_p5), %s396_s3, 512  }
  0x6a   : > { %3609 = vsyncadd (%p3765_p5), %s396_s3, 4294966784  ;;  %p5377_p7 = scmp.eq.s32.totalorder %s3752_s16, 0 }
  0x6c   : > { %3611 = dma.done.wait (%p5377_p7), [#allocation12], 8192   ;;  %p5378_p10 = pmov %p5377_p7 }
  0x6d   : > { %p5379_p9 = pmov %p5377_p7 }
  0x6e   : > { %3613 = vsyncadd (%p5378_p10), [#allocation12], 4294959104 }
  0x6f   : > { %3615 = dma.done.wait (%p5379_p9), [#allocation15], 24576   ;;  %p5380_p4 = pmov %p5377_p7 }
  0x70   : > { %s3942_s4 = scalar_lea.vmem [#allocation17], %s3050_s30  ;;  %s3944_s24 = scalar_lea.vmem [#allocation18], %s3051_s22 }
  0x71   : > { %3617 = vsyncadd (%p5380_p4), [#allocation15], 4294942720  ;;  %p5381_p1 = scmp.ne.s32.totalorder %s3752_s16, 0 }
  0x73   : > { %469 = sbr.rel (%p5381_p1) target bundleno = 125 (0x7d), region = 76 }
  0x78   : > { %v3661_v0 = vmov 0.0  }
  0x79   : > { %470 = vst [vmem:[#allocation4] sm:$0xff] %v3661_v0 }
  0x7a   : > { %471 = vst [vmem:[#allocation5] sm:$0xff] %v3661_v0 }
  0x7b   : > { %472 = vst [vmem:[#allocation6] sm:$0xff] %v3661_v0 }
  0x7c   : > { %473 = vst [vmem:[#allocation7] sm:$0xff] %v3661_v0 }
  0x7d PF: > { %v538_v1 = vld [vmem:[#allocation13 + $0x1e0] sm:$0xff]  ;;  %v539_v2 = vld [vmem:[#allocation13 + $0x1e8] sm:$0xff]  ;;  %v540_v3 = vld [vmem:[#allocation13 + $0x1f0] sm:$0xff]  ;;  %s896_s17 = ssub.s32 1, %s3752_s16  ;;  %s4094_s21 = sshll.u32 %s3752_s16, 2 }
  0x7e   : > { %552 = vmatpush.msra.mxu0 %v538_v1  ;;  %581 = vmatpush.msra.mxu1 %v539_v2  ;;  %v541_v4 = vld [vmem:[#allocation13 + $0x1f8] sm:$0xff]  ;;  %v534_v5 = vld [vmem:[#allocation13 + $0x1c0] sm:$0xff]  ;;  %v535_v6 = vld [vmem:[#allocation13 + $0x1c8] sm:$0xff]  ;;  %s4091_s25 = sshll.u32 %s896_s17, 2  ;;  %s1695_s1 = sadd.s32 1, %s4094_s21 }
  0x7f   : > { %610 = vmatpush.msra.mxu2 %v540_v3  ;;  %639 = vmatpush.msra.mxu3 %v541_v4  ;;  %v536_v7 = vld [vmem:[#allocation13 + $0x1d0] sm:$0xff]  ;;  %v537_v8 = vld [vmem:[#allocation13 + $0x1d8] sm:$0xff]  ;;  %v530_v9 = vld [vmem:[#allocation13 + $0x1a0] sm:$0xff]  ;;  %s1297_s26 = sadd.s32 3, %s4091_s25  ;;  %s1780_s7 = sadd.s32 2, %s4091_s25 }
  0x80   : > { %553 = vmatpush.msra.mxu0 %v534_v5  ;;  %582 = vmatpush.msra.mxu1 %v535_v6  ;;  %v531_v10 = vld [vmem:[#allocation13 + $0x1a8] sm:$0xff]  ;;  %v532_v11 = vld [vmem:[#allocation13 + $0x1b0] sm:$0xff]  ;;  %v533_v12 = vld [vmem:[#allocation13 + $0x1b8] sm:$0xff]  ;;  %s2262_s14 = sadd.s32 1, %s4091_s25 }
  0x81   : > { %611 = vmatpush.msra.mxu2 %v536_v7  ;;  %640 = vmatpush.msra.mxu3 %v537_v8  ;;  %v526_v13 = vld [vmem:[#allocation13 + $0x180] sm:$0xff]  ;;  %v527_v14 = vld [vmem:[#allocation13 + $0x188] sm:$0xff]  ;;  %v528_v15 = vld [vmem:[#allocation13 + $0x190] sm:$0xff] }
  0x82   : > { %554 = vmatpush.msra.mxu0 %v530_v9  ;;  %583 = vmatpush.msra.mxu1 %v531_v10  ;;  %v529_v16 = vld [vmem:[#allocation13 + $0x198] sm:$0xff]  ;;  %v522_v17 = vld [vmem:[#allocation13 + $0x160] sm:$0xff]  ;;  %v523_v18 = vld [vmem:[#allocation13 + $0x168] sm:$0xff] }
  0x83   : > { %612 = vmatpush.msra.mxu2 %v532_v11  ;;  %641 = vmatpush.msra.mxu3 %v533_v12  ;;  %v524_v19 = vld [vmem:[#allocation13 + $0x170] sm:$0xff]  ;;  %v525_v20 = vld [vmem:[#allocation13 + $0x178] sm:$0xff]  ;;  %v518_v21 = vld [vmem:[#allocation13 + $0x140] sm:$0xff] }
  0x84   : > { %555 = vmatpush.msra.mxu0 %v526_v13  ;;  %584 = vmatpush.msra.mxu1 %v527_v14  ;;  %v519_v22 = vld [vmem:[#allocation13 + $0x148] sm:$0xff]  ;;  %v520_v23 = vld [vmem:[#allocation13 + $0x150] sm:$0xff]  ;;  %v521_v24 = vld [vmem:[#allocation13 + $0x158] sm:$0xff] }
  0x85   : > { %613 = vmatpush.msra.mxu2 %v528_v15  ;;  %642 = vmatpush.msra.mxu3 %v529_v16  ;;  %v514_v25 = vld [vmem:[#allocation13 + $0x120] sm:$0xff]  ;;  %v515_v26 = vld [vmem:[#allocation13 + $0x128] sm:$0xff]  ;;  %v516_v27 = vld [vmem:[#allocation13 + $0x130] sm:$0xff] }
  0x86   : > { %556 = vmatpush.msra.mxu0 %v522_v17  ;;  %585 = vmatpush.msra.mxu1 %v523_v18  ;;  %v517_v28 = vld [vmem:[#allocation13 + $0x138] sm:$0xff]  ;;  %v510_v29 = vld [vmem:[#allocation13 + $0x100] sm:$0xff]  ;;  %v511_v30 = vld [vmem:[#allocation13 + $0x108] sm:$0xff] }
  0x87   : > { %614 = vmatpush.msra.mxu2 %v524_v19  ;;  %643 = vmatpush.msra.mxu3 %v525_v20  ;;  %v512_v31 = vld [vmem:[#allocation13 + $0x110] sm:$0xff]  ;;  %v513_v32 = vld [vmem:[#allocation13 + $0x118] sm:$0xff]  ;;  %v506_v33 = vld [vmem:[#allocation13 + $0xe0] sm:$0xff] }
  0x88   : > { %557 = vmatpush.msra.mxu0 %v518_v21  ;;  %586 = vmatpush.msra.mxu1 %v519_v22  ;;  %v507_v34 = vld [vmem:[#allocation13 + $0xe8] sm:$0xff]  ;;  %v508_v35 = vld [vmem:[#allocation13 + $0xf0] sm:$0xff]  ;;  %v509_v36 = vld [vmem:[#allocation13 + $0xf8] sm:$0xff] }
  0x89   : > { %615 = vmatpush.msra.mxu2 %v520_v23  ;;  %644 = vmatpush.msra.mxu3 %v521_v24  ;;  %v502_v37 = vld [vmem:[#allocation13 + $0xc0] sm:$0xff]  ;;  %v503_v38 = vld [vmem:[#allocation13 + $0xc8] sm:$0xff]  ;;  %v504_v39 = vld [vmem:[#allocation13 + $0xd0] sm:$0xff] }
  0x8a   : > { %558 = vmatpush.msra.mxu0 %v514_v25  ;;  %587 = vmatpush.msra.mxu1 %v515_v26  ;;  %v505_v40 = vld [vmem:[#allocation13 + $0xd8] sm:$0xff]  ;;  %v498_v41 = vld [vmem:[#allocation13 + $0xa0] sm:$0xff]  ;;  %v499_v42 = vld [vmem:[#allocation13 + $0xa8] sm:$0xff] }
  0x8b   : > { %616 = vmatpush.msra.mxu2 %v516_v27  ;;  %645 = vmatpush.msra.mxu3 %v517_v28  ;;  %v500_v43 = vld [vmem:[#allocation13 + $0xb0] sm:$0xff]  ;;  %v501_v44 = vld [vmem:[#allocation13 + $0xb8] sm:$0xff]  ;;  %v494_v45 = vld [vmem:[#allocation13 + $0x80] sm:$0xff] }
  0x8c   : > { %559 = vmatpush.msra.mxu0 %v510_v29  ;;  %588 = vmatpush.msra.mxu1 %v511_v30  ;;  %v495_v46 = vld [vmem:[#allocation13 + $0x88] sm:$0xff]  ;;  %v496_v47 = vld [vmem:[#allocation13 + $0x90] sm:$0xff]  ;;  %v497_v48 = vld [vmem:[#allocation13 + $0x98] sm:$0xff] }
  0x8d   : > { %617 = vmatpush.msra.mxu2 %v512_v31  ;;  %646 = vmatpush.msra.mxu3 %v513_v32  ;;  %v490_v49 = vld [vmem:[#allocation13 + $0x60] sm:$0xff]  ;;  %v491_v50 = vld [vmem:[#allocation13 + $0x68] sm:$0xff]  ;;  %v492_v51 = vld [vmem:[#allocation13 + $0x70] sm:$0xff] }
  0x8e   : > { %560 = vmatpush.msra.mxu0 %v506_v33  ;;  %589 = vmatpush.msra.mxu1 %v507_v34  ;;  %v493_v52 = vld [vmem:[#allocation13 + $0x78] sm:$0xff]  ;;  %v486_v53 = vld [vmem:[#allocation13 + $0x40] sm:$0xff]  ;;  %v487_v54 = vld [vmem:[#allocation13 + $0x48] sm:$0xff] }
  0x8f   : > { %618 = vmatpush.msra.mxu2 %v508_v35  ;;  %647 = vmatpush.msra.mxu3 %v509_v36  ;;  %v488_v55 = vld [vmem:[#allocation13 + $0x50] sm:$0xff]  ;;  %v489_v56 = vld [vmem:[#allocation13 + $0x58] sm:$0xff]  ;;  %v482_v57 = vld [vmem:[#allocation13 + $0x20] sm:$0xff] }
  0x90   : > { %561 = vmatpush.msra.mxu0 %v502_v37  ;;  %590 = vmatpush.msra.mxu1 %v503_v38  ;;  %v483_v58 = vld [vmem:[#allocation13 + $0x28] sm:$0xff]  ;;  %v484_v59 = vld [vmem:[#allocation13 + $0x30] sm:$0xff]  ;;  %v485_v60 = vld [vmem:[#allocation13 + $0x38] sm:$0xff] }
  0x91   : > { %619 = vmatpush.msra.mxu2 %v504_v39  ;;  %648 = vmatpush.msra.mxu3 %v505_v40  ;;  %v478_v61 = vld [vmem:[#allocation13] sm:$0xff]  ;;  %v479_v62 = vld [vmem:[#allocation13 + $0x8] sm:$0xff]  ;;  %v480_v63 = vld [vmem:[#allocation13 + $0x10] sm:$0xff] }
  0x92   : > { %562 = vmatpush.msra.mxu0 %v498_v41  ;;  %591 = vmatpush.msra.mxu1 %v499_v42  ;;  %v481_v0 = vld [vmem:[#allocation13 + $0x18] sm:$0xff]  ;;  %v474_v1 = vld [vmem:[%s3918_s29] sm:$0xff]  ;;  %v749_v3 = vld [vmem:[#allocation14 + $0x1e8] sm:$0xff] }
  0x93   : > { %620 = vmatpush.msra.mxu2 %v500_v43  ;;  %649 = vmatpush.msra.mxu3 %v501_v44  ;;  %v748_v2 = vld [vmem:[#allocation14 + $0x1e0] sm:$0xff]  ;;  %v751_v4 = vld [vmem:[#allocation14 + $0x1f8] sm:$0xff]  ;;  %v750_v5 = vld [vmem:[#allocation14 + $0x1f0] sm:$0xff] }
  0x94   : > { %563 = vmatpush.msra.mxu0 %v494_v45  ;;  %592 = vmatpush.msra.mxu1 %v495_v46  ;;  %v744_v6 = vld [vmem:[#allocation14 + $0x1c0] sm:$0xff]  ;;  %v745_v7 = vld [vmem:[#allocation14 + $0x1c8] sm:$0xff]  ;;  %v747_v8 = vld [vmem:[#allocation14 + $0x1d8] sm:$0xff] }
  0x95   : > { %621 = vmatpush.msra.mxu2 %v496_v47  ;;  %650 = vmatpush.msra.mxu3 %v497_v48  ;;  %v746_v9 = vld [vmem:[#allocation14 + $0x1d0] sm:$0xff]  ;;  %v740_v10 = vld [vmem:[#allocation14 + $0x1a0] sm:$0xff]  ;;  %v741_v11 = vld [vmem:[#allocation14 + $0x1a8] sm:$0xff] }
  0x96   : > { %564 = vmatpush.msra.mxu0 %v490_v49  ;;  %593 = vmatpush.msra.mxu1 %v491_v50  ;;  %v743_v12 = vld [vmem:[#allocation14 + $0x1b8] sm:$0xff]  ;;  %v742_v13 = vld [vmem:[#allocation14 + $0x1b0] sm:$0xff]  ;;  %v736_v14 = vld [vmem:[#allocation14 + $0x180] sm:$0xff] }
  0x97   : > { %622 = vmatpush.msra.mxu2 %v492_v51  ;;  %651 = vmatpush.msra.mxu3 %v493_v52  ;;  %v737_v15 = vld [vmem:[#allocation14 + $0x188] sm:$0xff]  ;;  %v739_v16 = vld [vmem:[#allocation14 + $0x198] sm:$0xff]  ;;  %v738_v17 = vld [vmem:[#allocation14 + $0x190] sm:$0xff] }
  0x98   : > { %565 = vmatpush.msra.mxu0 %v486_v53  ;;  %594 = vmatpush.msra.mxu1 %v487_v54  ;;  %v475_v18 = vld [vmem:[%s3918_s29 + $0x8] sm:$0xff]  ;;  %v732_v19 = vld [vmem:[#allocation14 + $0x160] sm:$0xff]  ;;  %v735_v21 = vld [vmem:[#allocation14 + $0x178] sm:$0xff] }
  0x99   : > { %623 = vmatpush.msra.mxu2 %v488_v55  ;;  %652 = vmatpush.msra.mxu3 %v489_v56  ;;  %v733_v20 = vld [vmem:[#allocation14 + $0x168] sm:$0xff]  ;;  %v734_v22 = vld [vmem:[#allocation14 + $0x170] sm:$0xff]  ;;  %v728_v23 = vld [vmem:[#allocation14 + $0x140] sm:$0xff] }
  0x9a   : > { %566 = vmatpush.msra.mxu0 %v482_v57  ;;  %595 = vmatpush.msra.mxu1 %v483_v58  ;;  %v729_v24 = vld [vmem:[#allocation14 + $0x148] sm:$0xff]  ;;  %v731_v25 = vld [vmem:[#allocation14 + $0x158] sm:$0xff]  ;;  %v730_v26 = vld [vmem:[#allocation14 + $0x150] sm:$0xff] }
  0x9b   : > { %624 = vmatpush.msra.mxu2 %v484_v59  ;;  %653 = vmatpush.msra.mxu3 %v485_v60  ;;  %v724_v27 = vld [vmem:[#allocation14 + $0x120] sm:$0xff]  ;;  %v725_v28 = vld [vmem:[#allocation14 + $0x128] sm:$0xff]  ;;  %v727_v29 = vld [vmem:[#allocation14 + $0x138] sm:$0xff] }
  0x9c   : > { %567 = vmatpush.msra.mxu0 %v478_v61  ;;  %596 = vmatpush.msra.mxu1 %v479_v62  ;;  %v726_v30 = vld [vmem:[#allocation14 + $0x130] sm:$0xff]  ;;  %v720_v31 = vld [vmem:[#allocation14 + $0x100] sm:$0xff]  ;;  %v721_v32 = vld [vmem:[#allocation14 + $0x108] sm:$0xff] }
  0x9d   : > { %625 = vmatpush.msra.mxu2 %v480_v63  ;;  %654 = vmatpush.msra.mxu3 %v481_v0  ;;  %v723_v33 = vld [vmem:[#allocation14 + $0x118] sm:$0xff]  ;;  %v722_v34 = vld [vmem:[#allocation14 + $0x110] sm:$0xff]  ;;  %v716_v36 = vld [vmem:[#allocation14 + $0xe0] sm:$0xff] }
  0x9e   : > { %568 = vmatmul.f32.vlgmr.msra.gmra.mxu0 %v474_v1  ;;  %597 = vmatmul.f32.vlgmr.msra.gmra.mxu1 %v474_v1  ;;  %v476_v35 = vld [vmem:[%s3918_s29 + $0x10] sm:$0xff]  ;;  %v717_v37 = vld [vmem:[#allocation14 + $0xe8] sm:$0xff]  ;;  %v719_v38 = vld [vmem:[#allocation14 + $0xf8] sm:$0xff] }
  0x9f   : > { %626 = vmatmul.f32.vlgmr.msra.gmra.mxu2 %v474_v1  ;;  %655 = vmatmul.f32.vlgmr.msra.gmra.mxu3 %v474_v1  ;;  %v718_v39 = vld [vmem:[#allocation14 + $0xf0] sm:$0xff]  ;;  %v712_v40 = vld [vmem:[#allocation14 + $0xc0] sm:$0xff]  ;;  %v713_v41 = vld [vmem:[#allocation14 + $0xc8] sm:$0xff] }
  0xa0   : > { %762 = vmatpush.msrb.mxu0 %v748_v2  ;;  %791 = vmatpush.msrb.mxu1 %v749_v3  ;;  %v715_v42 = vld [vmem:[#allocation14 + $0xd8] sm:$0xff]  ;;  %v714_v43 = vld [vmem:[#allocation14 + $0xd0] sm:$0xff]  ;;  %v708_v44 = vld [vmem:[#allocation14 + $0xa0] sm:$0xff] }
  0xa1   : > { %849 = vmatpush.msrb.mxu3 %v751_v4  ;;  %820 = vmatpush.msrb.mxu2 %v750_v5  ;;  %v709_v45 = vld [vmem:[#allocation14 + $0xa8] sm:$0xff]  ;;  %v711_v46 = vld [vmem:[#allocation14 + $0xb8] sm:$0xff]  ;;  %v710_v47 = vld [vmem:[#allocation14 + $0xb0] sm:$0xff] }
  0xa2   : > { %763 = vmatpush.msrb.mxu0 %v744_v6  ;;  %792 = vmatpush.msrb.mxu1 %v745_v7  ;;  %v704_v48 = vld [vmem:[#allocation14 + $0x80] sm:$0xff]  ;;  %v705_v49 = vld [vmem:[#allocation14 + $0x88] sm:$0xff]  ;;  %v707_v50 = vld [vmem:[#allocation14 + $0x98] sm:$0xff] }
  0xa3   : > { %850 = vmatpush.msrb.mxu3 %v747_v8  ;;  %821 = vmatpush.msrb.mxu2 %v746_v9  ;;  %v706_v51 = vld [vmem:[#allocation14 + $0x90] sm:$0xff]  ;;  %v477_v52 = vld [vmem:[%s3918_s29 + $0x18] sm:$0xff]  ;;  %v700_v53 = vld [vmem:[#allocation14 + $0x60] sm:$0xff]  ;;  %s2177_s29 = sadd.s32 2, %s4094_s21 }
  0xa4   : > { %764 = vmatpush.msrb.mxu0 %v740_v10  ;;  %793 = vmatpush.msrb.mxu1 %v741_v11  ;;  %v701_v54 = vld [vmem:[#allocation14 + $0x68] sm:$0xff]  ;;  %v703_v55 = vld [vmem:[#allocation14 + $0x78] sm:$0xff]  ;;  %v702_v56 = vld [vmem:[#allocation14 + $0x70] sm:$0xff] }
  0xa5   : > { %851 = vmatpush.msrb.mxu3 %v743_v12  ;;  %822 = vmatpush.msrb.mxu2 %v742_v13  ;;  %v696_v57 = vld [vmem:[#allocation14 + $0x40] sm:$0xff]  ;;  %v697_v58 = vld [vmem:[#allocation14 + $0x48] sm:$0xff]  ;;  %v699_v59 = vld [vmem:[#allocation14 + $0x58] sm:$0xff] }
  0xa6   : > { %765 = vmatpush.msrb.mxu0 %v736_v14  ;;  %794 = vmatpush.msrb.mxu1 %v737_v15  ;;  %v698_v60 = vld [vmem:[#allocation14 + $0x50] sm:$0xff]  ;;  %v692_v61 = vld [vmem:[#allocation14 + $0x20] sm:$0xff]  ;;  %v693_v62 = vld [vmem:[#allocation14 + $0x28] sm:$0xff] }
  0xa7   : > { %852 = vmatpush.msrb.mxu3 %v739_v16  ;;  %823 = vmatpush.msrb.mxu2 %v738_v17  ;;  %v695_v63 = vld [vmem:[#allocation14 + $0x38] sm:$0xff]  ;;  %v694_v0 = vld [vmem:[#allocation14 + $0x30] sm:$0xff]  ;;  %v688_v1 = vld [vmem:[#allocation14] sm:$0xff] }
  0xa8   : > { %571 = vmatmul.f32.gmra.mxu0 %v475_v18  ;;  %600 = vmatmul.f32.gmra.mxu1 %v475_v18  ;;  %v689_v2 = vld [vmem:[#allocation14 + $0x8] sm:$0xff]  ;;  %v691_v3 = vld [vmem:[#allocation14 + $0x18] sm:$0xff]  ;;  %v690_v4 = vld [vmem:[#allocation14 + $0x10] sm:$0xff] }
  0xa9   : > { %629 = vmatmul.f32.gmra.mxu2 %v475_v18  ;;  %658 = vmatmul.f32.gmra.mxu3 %v475_v18  ;;  %v3952_v5 = vld [vmem:[#allocation16 + $0x1e0] sm:$0xff]  ;;  %v3954_v6 = vld [vmem:[#allocation16 + $0x1e8] sm:$0xff]  ;;  %v3956_v7 = vld [vmem:[#allocation16 + $0x1f8] sm:$0xff] }
  0xaa   : > { %766 = vmatpush.msrb.mxu0 %v732_v19  ;;  %795 = vmatpush.msrb.mxu1 %v733_v20  ;;  %v684_v8 = vld [vmem:[%s3928_s20] sm:$0xff]  ;;  %v3961_v9 = vld [vmem:[#allocation16 + $0x1f0] sm:$0xff]  ;;  %v3966_v11 = vld [vmem:[#allocation16 + $0x1c8] sm:$0xff] }
  0xab   : > { %853 = vmatpush.msrb.mxu3 %v735_v21  ;;  %824 = vmatpush.msrb.mxu2 %v734_v22  ;;  %v3964_v10 = vld [vmem:[#allocation16 + $0x1c0] sm:$0xff]  ;;  %v3968_v12 = vld [vmem:[#allocation16 + $0x1d8] sm:$0xff]  ;;  %v3970_v13 = vld [vmem:[#allocation16 + $0x1d0] sm:$0xff] }
  0xac   : > { %767 = vmatpush.msrb.mxu0 %v728_v23  ;;  %796 = vmatpush.msrb.mxu1 %v729_v24  ;;  %v3973_v14 = vld [vmem:[#allocation16 + $0x1a0] sm:$0xff]  ;;  %v3975_v15 = vld [vmem:[#allocation16 + $0x1a8] sm:$0xff]  ;;  %v3979_v16 = vld [vmem:[#allocation16 + $0x1b8] sm:$0xff] }
  0xad   : > { %854 = vmatpush.msrb.mxu3 %v731_v25  ;;  %825 = vmatpush.msrb.mxu2 %v730_v26  ;;  %v3981_v17 = vld [vmem:[#allocation16 + $0x1b0] sm:$0xff]  ;;  %v3985_v18 = vld [vmem:[#allocation16 + $0x180] sm:$0xff]  ;;  %v3987_v19 = vld [vmem:[#allocation16 + $0x188] sm:$0xff] }
  0xae   : > { %768 = vmatpush.msrb.mxu0 %v724_v27  ;;  %797 = vmatpush.msrb.mxu1 %v725_v28  ;;  %v3991_v20 = vld [vmem:[#allocation16 + $0x198] sm:$0xff]  ;;  %v3993_v21 = vld [vmem:[#allocation16 + $0x190] sm:$0xff]  ;;  %v3997_v22 = vld [vmem:[#allocation16 + $0x160] sm:$0xff] }
  0xaf   : > { %855 = vmatpush.msrb.mxu3 %v727_v29  ;;  %826 = vmatpush.msrb.mxu2 %v726_v30  ;;  %v3999_v23 = vld [vmem:[#allocation16 + $0x168] sm:$0xff]  ;;  %v4003_v24 = vld [vmem:[#allocation16 + $0x178] sm:$0xff]  ;;  %v4010_v26 = vld [vmem:[#allocation16 + $0x170] sm:$0xff] }
  0xb0   : > { %769 = vmatpush.msrb.mxu0 %v720_v31  ;;  %798 = vmatpush.msrb.mxu1 %v721_v32  ;;  %v685_v25 = vld [vmem:[%s3928_s20 + $0x8] sm:$0xff]  ;;  %v4013_v27 = vld [vmem:[#allocation16 + $0x140] sm:$0xff]  ;;  %v4017_v29 = vld [vmem:[#allocation16 + $0x158] sm:$0xff] }
  0xb1   : > { %856 = vmatpush.msrb.mxu3 %v723_v33  ;;  %827 = vmatpush.msrb.mxu2 %v722_v34  ;;  %v4015_v28 = vld [vmem:[#allocation16 + $0x148] sm:$0xff]  ;;  %v4019_v30 = vld [vmem:[#allocation16 + $0x150] sm:$0xff]  ;;  %v4022_v31 = vld [vmem:[#allocation16 + $0x120] sm:$0xff] }
  0xb2   : > { %574 = vmatmul.f32.gmra.mxu0 %v476_v35  ;;  %603 = vmatmul.f32.gmra.mxu1 %v476_v35  ;;  %v4024_v32 = vld [vmem:[#allocation16 + $0x128] sm:$0xff]  ;;  %v4028_v33 = vld [vmem:[#allocation16 + $0x138] sm:$0xff]  ;;  %v4030_v34 = vld [vmem:[#allocation16 + $0x130] sm:$0xff] }
  0xb3   : > { %632 = vmatmul.f32.gmra.mxu2 %v476_v35  ;;  %661 = vmatmul.f32.gmra.mxu3 %v476_v35  ;;  %v4034_v35 = vld [vmem:[#allocation16 + $0x100] sm:$0xff] }
  0xb4   : > { %770 = vmatpush.msrb.mxu0 %v716_v36  ;;  %799 = vmatpush.msrb.mxu1 %v717_v37  ;;  %v4036_v36 = vld [vmem:[#allocation16 + $0x108] sm:$0xff]  ;;  %v4040_v37 = vld [vmem:[#allocation16 + $0x118] sm:$0xff] }
  0xb5   : > { %857 = vmatpush.msrb.mxu3 %v719_v38  ;;  %828 = vmatpush.msrb.mxu2 %v718_v39  ;;  %v4042_v38 = vld [vmem:[#allocation16 + $0x110] sm:$0xff]  ;;  %v4046_v39 = vld [vmem:[#allocation16 + $0xe0] sm:$0xff] }
  0xb6   : > { %771 = vmatpush.msrb.mxu0 %v712_v40  ;;  %800 = vmatpush.msrb.mxu1 %v713_v41  ;;  %v4048_v40 = vld [vmem:[#allocation16 + $0xe8] sm:$0xff]  ;;  %v4052_v41 = vld [vmem:[#allocation16 + $0xf8] sm:$0xff] }
  0xb7   : > { %858 = vmatpush.msrb.mxu3 %v715_v42  ;;  %829 = vmatpush.msrb.mxu2 %v714_v43  ;;  %v686_v42 = vld [vmem:[%s3928_s20 + $0x10] sm:$0xff] }
  0xb8   : > { %772 = vmatpush.msrb.mxu0 %v708_v44  ;;  %801 = vmatpush.msrb.mxu1 %v709_v45  ;;  %v4059_v43 = vld [vmem:[#allocation16 + $0xf0] sm:$0xff]  ;;  %v4062_v44 = vld [vmem:[#allocation16 + $0xc0] sm:$0xff]  ;;  %v4064_v45 = vld [vmem:[#allocation16 + $0xc8] sm:$0xff] }
  0xb9   : > { %859 = vmatpush.msrb.mxu3 %v711_v46  ;;  %830 = vmatpush.msrb.mxu2 %v710_v47  ;;  %v4066_v46 = vld [vmem:[#allocation16 + $0xd8] sm:$0xff]  ;;  %v4068_v47 = vld [vmem:[#allocation16 + $0xd0] sm:$0xff] }
  0xba   : > { %773 = vmatpush.msrb.mxu0 %v704_v48  ;;  %802 = vmatpush.msrb.mxu1 %v705_v49  ;;  %v4071_v48 = vld [vmem:[#allocation16 + $0xa0] sm:$0xff]  ;;  %v4073_v49 = vld [vmem:[#allocation16 + $0xa8] sm:$0xff] }
  0xbb   : > { %860 = vmatpush.msrb.mxu3 %v707_v50  ;;  %831 = vmatpush.msrb.mxu2 %v706_v51  ;;  %v4077_v50 = vld [vmem:[#allocation16 + $0xb8] sm:$0xff]  ;;  %v4079_v51 = vld [vmem:[#allocation16 + $0xb0] sm:$0xff] }
  0xbc   : > { %577 = vmatmul.f32.gmra.mxu0 %v477_v52  ;;  %606 = vmatmul.f32.gmra.mxu1 %v477_v52 }
  0xbd   : > { %635 = vmatmul.f32.gmra.mxu2 %v477_v52  ;;  %664 = vmatmul.f32.gmra.mxu3 %v477_v52  ;;  %v932_v52 = vld [vmem:[#allocation16 + $0x80] sm:$0xff] }
  0xbe   : > { %774 = vmatpush.msrb.mxu0 %v700_v53  ;;  %803 = vmatpush.msrb.mxu1 %v701_v54  ;;  %v933_v53 = vld [vmem:[#allocation16 + $0x88] sm:$0xff]  ;;  %v935_v54 = vld [vmem:[#allocation16 + $0x98] sm:$0xff] }
  0xbf   : > { %861 = vmatpush.msrb.mxu3 %v703_v55  ;;  %832 = vmatpush.msrb.mxu2 %v702_v56  ;;  %v934_v55 = vld [vmem:[#allocation16 + $0x90] sm:$0xff]  ;;  %v928_v56 = vld [vmem:[#allocation16 + $0x60] sm:$0xff] }
  0xc0   : > { %775 = vmatpush.msrb.mxu0 %v696_v57  ;;  %804 = vmatpush.msrb.mxu1 %v697_v58  ;;  %v929_v57 = vld [vmem:[#allocation16 + $0x68] sm:$0xff]  ;;  %v931_v58 = vld [vmem:[#allocation16 + $0x78] sm:$0xff] }
  0xc1   : > { %862 = vmatpush.msrb.mxu3 %v699_v59  ;;  %833 = vmatpush.msrb.mxu2 %v698_v60  ;;  %v687_v59 = vld [vmem:[%s3928_s20 + $0x18] sm:$0xff]  ;;  %v930_v60 = vld [vmem:[#allocation16 + $0x70] sm:$0xff]  ;;  %s2659_s20 = sadd.s32 3, %s4094_s21 }
  0xc2   : > { %776 = vmatpush.msrb.mxu0 %v692_v61  ;;  %805 = vmatpush.msrb.mxu1 %v693_v62  ;;  %v924_v61 = vld [vmem:[#allocation16 + $0x40] sm:$0xff]  ;;  %v925_v62 = vld [vmem:[#allocation16 + $0x48] sm:$0xff] }
  0xc3   : > { %863 = vmatpush.msrb.mxu3 %v695_v63  ;;  %834 = vmatpush.msrb.mxu2 %v694_v0  ;;  %v927_v63 = vld [vmem:[#allocation16 + $0x58] sm:$0xff]  ;;  %v926_v0 = vld [vmem:[#allocation16 + $0x50] sm:$0xff] }
  0xc4   : > { %777 = vmatpush.msrb.mxu0 %v688_v1  ;;  %806 = vmatpush.msrb.mxu1 %v689_v2  ;;  %v920_v1 = vld [vmem:[#allocation16 + $0x20] sm:$0xff]  ;;  %v921_v2 = vld [vmem:[#allocation16 + $0x28] sm:$0xff] }
  0xc5   : > { %864 = vmatpush.msrb.mxu3 %v691_v3  ;;  %835 = vmatpush.msrb.mxu2 %v690_v4  ;;  %v923_v3 = vld [vmem:[#allocation16 + $0x38] sm:$0xff]  ;;  %v922_v4 = vld [vmem:[#allocation16 + $0x30] sm:$0xff] }
  0xc6   : > { %980 = vmatpush.msra.mxu0 %v3952_v5  ;;  %1000 = vmatpush.msra.mxu1 %v3954_v6 }
  0xc7   : > { %1040 = vmatpush.msra.mxu3 %v3956_v7  ;;  %778 = vmatmul.f32.vlgmr.msrb.gmra.mxu0 %v684_v8 }
  0xc8   : > { %807 = vmatmul.f32.vlgmr.msrb.gmra.mxu1 %v684_v8  ;;  %836 = vmatmul.f32.vlgmr.msrb.gmra.mxu2 %v684_v8 }
  0xc9   : > { %865 = vmatmul.f32.vlgmr.msrb.gmra.mxu3 %v684_v8  ;;  %1020 = vmatpush.msra.mxu2 %v3961_v9  ;;  %v916_v8 = vld [vmem:[#allocation16] sm:$0xff] }
  0xca   : > { %981 = vmatpush.msra.mxu0 %v3964_v10  ;;  %1001 = vmatpush.msra.mxu1 %v3966_v11 }
  0xcb   : > { %1041 = vmatpush.msra.mxu3 %v3968_v12  ;;  %1021 = vmatpush.msra.mxu2 %v3970_v13 }
  0xcc   : > { %982 = vmatpush.msra.mxu0 %v3973_v14  ;;  %1002 = vmatpush.msra.mxu1 %v3975_v15 }
  0xcd   : > { %1042 = vmatpush.msra.mxu3 %v3979_v16  ;;  %1022 = vmatpush.msra.mxu2 %v3981_v17 }
  0xce   : > { %983 = vmatpush.msra.mxu0 %v3985_v18  ;;  %1003 = vmatpush.msra.mxu1 %v3987_v19 }
  0xcf   : > { %1043 = vmatpush.msra.mxu3 %v3991_v20  ;;  %1023 = vmatpush.msra.mxu2 %v3993_v21 }
  0xd0   : > { %984 = vmatpush.msra.mxu0 %v3997_v22  ;;  %1004 = vmatpush.msra.mxu1 %v3999_v23 }
  0xd1   : > { %1044 = vmatpush.msra.mxu3 %v4003_v24  ;;  %781 = vmatmul.f32.gmra.mxu0 %v685_v25 }
  0xd2   : > { %810 = vmatmul.f32.gmra.mxu1 %v685_v25  ;;  %839 = vmatmul.f32.gmra.mxu2 %v685_v25 }
  0xd3   : > { %868 = vmatmul.f32.gmra.mxu3 %v685_v25  ;;  %1024 = vmatpush.msra.mxu2 %v4010_v26  ;;  %v917_v25 = vld [vmem:[#allocation16 + $0x8] sm:$0xff] }
  0xd4   : > { %985 = vmatpush.msra.mxu0 %v4013_v27  ;;  %1005 = vmatpush.msra.mxu1 %v4015_v28 }
  0xd5   : > { %1045 = vmatpush.msra.mxu3 %v4017_v29  ;;  %1025 = vmatpush.msra.mxu2 %v4019_v30 }
  0xd6   : > { %986 = vmatpush.msra.mxu0 %v4022_v31  ;;  %1006 = vmatpush.msra.mxu1 %v4024_v32 }
  0xd7   : > { %1046 = vmatpush.msra.mxu3 %v4028_v33  ;;  %1026 = vmatpush.msra.mxu2 %v4030_v34 }
  0xd8   : > { %987 = vmatpush.msra.mxu0 %v4034_v35  ;;  %1007 = vmatpush.msra.mxu1 %v4036_v36 }
  0xd9   : > { %1047 = vmatpush.msra.mxu3 %v4040_v37  ;;  %1027 = vmatpush.msra.mxu2 %v4042_v38 }
  0xda   : > { %988 = vmatpush.msra.mxu0 %v4046_v39  ;;  %1008 = vmatpush.msra.mxu1 %v4048_v40 }
  0xdb   : > { %1048 = vmatpush.msra.mxu3 %v4052_v41  ;;  %784 = vmatmul.f32.gmra.mxu0 %v686_v42 }
  0xdc   : > { %813 = vmatmul.f32.gmra.mxu1 %v686_v42  ;;  %842 = vmatmul.f32.gmra.mxu2 %v686_v42 }
  0xdd   : > { %871 = vmatmul.f32.gmra.mxu3 %v686_v42  ;;  %1028 = vmatpush.msra.mxu2 %v4059_v43  ;;  %v919_v42 = vld [vmem:[#allocation16 + $0x18] sm:$0xff] }
  0xde   : > { %989 = vmatpush.msra.mxu0 %v4062_v44  ;;  %1009 = vmatpush.msra.mxu1 %v4064_v45 }
  0xdf   : > { %1049 = vmatpush.msra.mxu3 %v4066_v46  ;;  %1029 = vmatpush.msra.mxu2 %v4068_v47 }
  0xe0   : > { %990 = vmatpush.msra.mxu0 %v4071_v48  ;;  %1010 = vmatpush.msra.mxu1 %v4073_v49 }
  0xe1   : > { %1050 = vmatpush.msra.mxu3 %v4077_v50  ;;  %1030 = vmatpush.msra.mxu2 %v4079_v51 }
  0xe2   : > { %991 = vmatpush.msra.mxu0 %v932_v52  ;;  %1011 = vmatpush.msra.mxu1 %v933_v53  ;;  %v918_v52 = vld [vmem:[#allocation16 + $0x10] sm:$0xff]  ;;  %v1125_v53 = vld [vmem:[#allocation16 + $0x3e0] sm:$0xff] }
  0xe3   : > { %1051 = vmatpush.msra.mxu3 %v935_v54  ;;  %1031 = vmatpush.msra.mxu2 %v934_v55  ;;  %v1126_v54 = vld [vmem:[#allocation16 + $0x3e8] sm:$0xff]  ;;  %v1128_v55 = vld [vmem:[#allocation16 + $0x3f8] sm:$0xff] }
  0xe4   : > { %992 = vmatpush.msra.mxu0 %v928_v56  ;;  %1012 = vmatpush.msra.mxu1 %v929_v57  ;;  %v1127_v56 = vld [vmem:[#allocation16 + $0x3f0] sm:$0xff]  ;;  %v898_v57 = vld [vmem:[#allocation4] sm:$0xff] }
  0xe5   : > { %1052 = vmatpush.msra.mxu3 %v931_v58  ;;  %787 = vmatmul.f32.gmra.mxu0 %v687_v59  ;;  %v1121_v58 = vld [vmem:[#allocation16 + $0x3c0] sm:$0xff] }
  0xe6   : > { %816 = vmatmul.f32.gmra.mxu1 %v687_v59  ;;  %845 = vmatmul.f32.gmra.mxu2 %v687_v59 }
  0xe7   : > { %874 = vmatmul.f32.gmra.mxu3 %v687_v59  ;;  %1032 = vmatpush.msra.mxu2 %v930_v60  ;;  %v1122_v59 = vld [vmem:[#allocation16 + $0x3c8] sm:$0xff]  ;;  %v1124_v60 = vld [vmem:[#allocation16 + $0x3d8] sm:$0xff] }
  0xe8   : > { %993 = vmatpush.msra.mxu0 %v924_v61  ;;  %1013 = vmatpush.msra.mxu1 %v925_v62  ;;  %v1123_v61 = vld [vmem:[#allocation16 + $0x3d0] sm:$0xff]  ;;  %v1117_v62 = vld [vmem:[#allocation16 + $0x3a0] sm:$0xff] }
  0xe9   : > { %1053 = vmatpush.msra.mxu3 %v927_v63  ;;  %1033 = vmatpush.msra.mxu2 %v926_v0  ;;  %v1118_v63 = vld [vmem:[#allocation16 + $0x3a8] sm:$0xff]  ;;  %v1120_v0 = vld [vmem:[#allocation16 + $0x3b8] sm:$0xff] }
  0xea   : > { %994 = vmatpush.msra.mxu0 %v920_v1  ;;  %1014 = vmatpush.msra.mxu1 %v921_v2  ;;  %v1119_v1 = vld [vmem:[#allocation16 + $0x3b0] sm:$0xff]  ;;  %v1113_v2 = vld [vmem:[#allocation16 + $0x380] sm:$0xff] }
  0xeb   : > { %1054 = vmatpush.msra.mxu3 %v923_v3  ;;  %1034 = vmatpush.msra.mxu2 %v922_v4  ;;  %v1114_v3 = vld [vmem:[#allocation16 + $0x388] sm:$0xff]  ;;  %v1116_v4 = vld [vmem:[#allocation16 + $0x398] sm:$0xff] }
  0xec   : > { %995 = vmatpush.msra.mxu0 %v916_v8  ;;  %1015 = vmatpush.msra.mxu1 %v917_v25  ;;  %v1115_v8 = vld [vmem:[#allocation16 + $0x390] sm:$0xff]  ;;  %v1109_v25 = vld [vmem:[#allocation16 + $0x360] sm:$0xff] }
  0xed   : > { %1055 = vmatpush.msra.mxu3 %v919_v42  ;;  %1035 = vmatpush.msra.mxu2 %v918_v52  ;;  %v1110_v42 = vld [vmem:[#allocation16 + $0x368] sm:$0xff]  ;;  %v1112_v52 = vld [vmem:[#allocation16 + $0x378] sm:$0xff] }
  0xee   : > { %1129 = vmatpush.msrb.mxu0 %v1125_v53  ;;  %1149 = vmatpush.msrb.mxu1 %v1126_v54  ;;  %v1111_v53 = vld [vmem:[#allocation16 + $0x370] sm:$0xff]  ;;  %v1105_v54 = vld [vmem:[#allocation16 + $0x340] sm:$0xff] }
  0xef   : > { %1189 = vmatpush.msrb.mxu3 %v1128_v55  ;;  %1169 = vmatpush.msrb.mxu2 %v1127_v56  ;;  %v1106_v55 = vld [vmem:[#allocation16 + $0x348] sm:$0xff]  ;;  %v1108_v56 = vld [vmem:[#allocation16 + $0x358] sm:$0xff] }
  0xf0   : > { %996 = vmatmul.f32.vlgmr.msra.gmra.mxu0 %v898_v57  ;;  %1016 = vmatmul.f32.vlgmr.msra.gmra.mxu1 %v898_v57 }
  0xf1   : > { %1036 = vmatmul.f32.vlgmr.msra.gmra.mxu2 %v898_v57  ;;  %1056 = vmatmul.f32.vlgmr.msra.gmra.mxu3 %v898_v57  ;;  %v1107_v57 = vld [vmem:[#allocation16 + $0x350] sm:$0xff] }
  0xf2   : > { %1130 = vmatpush.msrb.mxu0 %v1121_v58  ;;  %1150 = vmatpush.msrb.mxu1 %v1122_v59  ;;  %v1101_v58 = vld [vmem:[#allocation16 + $0x320] sm:$0xff]  ;;  %v1102_v59 = vld [vmem:[#allocation16 + $0x328] sm:$0xff] }
  0xf3   : > { %1190 = vmatpush.msrb.mxu3 %v1124_v60  ;;  %1170 = vmatpush.msrb.mxu2 %v1123_v61  ;;  %v1104_v60 = vld [vmem:[#allocation16 + $0x338] sm:$0xff]  ;;  %v1103_v61 = vld [vmem:[#allocation16 + $0x330] sm:$0xff] }
  0xf4   : > { %1131 = vmatpush.msrb.mxu0 %v1117_v62  ;;  %1151 = vmatpush.msrb.mxu1 %v1118_v63  ;;  %v1097_v62 = vld [vmem:[#allocation16 + $0x300] sm:$0xff]  ;;  %v1098_v63 = vld [vmem:[#allocation16 + $0x308] sm:$0xff] }
  0xf5   : > { %1191 = vmatpush.msrb.mxu3 %v1120_v0  ;;  %1171 = vmatpush.msrb.mxu2 %v1119_v1  ;;  %v1100_v0 = vld [vmem:[#allocation16 + $0x318] sm:$0xff]  ;;  %v1099_v1 = vld [vmem:[#allocation16 + $0x310] sm:$0xff] }
  0xf6   : > { %1132 = vmatpush.msrb.mxu0 %v1113_v2  ;;  %1152 = vmatpush.msrb.mxu1 %v1114_v3  ;;  %v1093_v2 = vld [vmem:[#allocation16 + $0x2e0] sm:$0xff]  ;;  %v1094_v3 = vld [vmem:[#allocation16 + $0x2e8] sm:$0xff] }
  0xf7   : > { %1192 = vmatpush.msrb.mxu3 %v1116_v4  ;;  %1172 = vmatpush.msrb.mxu2 %v1115_v8  ;;  %v1096_v4 = vld [vmem:[#allocation16 + $0x2f8] sm:$0xff]  ;;  %v1095_v8 = vld [vmem:[#allocation16 + $0x2f0] sm:$0xff] }
  0xf8   : > { %1133 = vmatpush.msrb.mxu0 %v1109_v25  ;;  %1153 = vmatpush.msrb.mxu1 %v1110_v42  ;;  %v1089_v25 = vld [vmem:[#allocation16 + $0x2c0] sm:$0xff]  ;;  %v1090_v42 = vld [vmem:[#allocation16 + $0x2c8] sm:$0xff] }
  0xf9   : > { %1193 = vmatpush.msrb.mxu3 %v1112_v52  ;;  %1173 = vmatpush.msrb.mxu2 %v1111_v53  ;;  %v1092_v52 = vld [vmem:[#allocation16 + $0x2d8] sm:$0xff]  ;;  %v1091_v53 = vld [vmem:[#allocation16 + $0x2d0] sm:$0xff] }
  0xfa   : > { %1134 = vmatpush.msrb.mxu0 %v1105_v54  ;;  %1154 = vmatpush.msrb.mxu1 %v1106_v55  ;;  %v1085_v54 = vld [vmem:[#allocation16 + $0x2a0] sm:$0xff]  ;;  %v1086_v55 = vld [vmem:[#allocation16 + $0x2a8] sm:$0xff] }
  0xfb   : > { %1194 = vmatpush.msrb.mxu3 %v1108_v56  ;;  %1174 = vmatpush.msrb.mxu2 %v1107_v57  ;;  %v1088_v56 = vld [vmem:[#allocation16 + $0x2b8] sm:$0xff]  ;;  %v1087_v57 = vld [vmem:[#allocation16 + $0x2b0] sm:$0xff] }
  0xfc   : > { %1135 = vmatpush.msrb.mxu0 %v1101_v58  ;;  %1155 = vmatpush.msrb.mxu1 %v1102_v59  ;;  %v1081_v58 = vld [vmem:[#allocation16 + $0x280] sm:$0xff]  ;;  %v1082_v59 = vld [vmem:[#allocation16 + $0x288] sm:$0xff] }
  0xfd   : > { %1195 = vmatpush.msrb.mxu3 %v1104_v60  ;;  %1175 = vmatpush.msrb.mxu2 %v1103_v61  ;;  %v1084_v60 = vld [vmem:[#allocation16 + $0x298] sm:$0xff]  ;;  %v1083_v61 = vld [vmem:[#allocation16 + $0x290] sm:$0xff] }
  0xfe   : > { %1136 = vmatpush.msrb.mxu0 %v1097_v62  ;;  %1156 = vmatpush.msrb.mxu1 %v1098_v63  ;;  %v1077_v62 = vld [vmem:[#allocation16 + $0x260] sm:$0xff]  ;;  %v1078_v63 = vld [vmem:[#allocation16 + $0x268] sm:$0xff] }
  0xff   : > { %1196 = vmatpush.msrb.mxu3 %v1100_v0  ;;  %1176 = vmatpush.msrb.mxu2 %v1099_v1  ;;  %v1080_v0 = vld [vmem:[#allocation16 + $0x278] sm:$0xff]  ;;  %v1079_v1 = vld [vmem:[#allocation16 + $0x270] sm:$0xff] }
 0x100   : > { %1137 = vmatpush.msrb.mxu0 %v1093_v2  ;;  %1157 = vmatpush.msrb.mxu1 %v1094_v3  ;;  %v1073_v2 = vld [vmem:[#allocation16 + $0x240] sm:$0xff]  ;;  %v1074_v3 = vld [vmem:[#allocation16 + $0x248] sm:$0xff] }
 0x101   : > { %1197 = vmatpush.msrb.mxu3 %v1096_v4  ;;  %1177 = vmatpush.msrb.mxu2 %v1095_v8  ;;  %v1076_v4 = vld [vmem:[#allocation16 + $0x258] sm:$0xff]  ;;  %v1075_v8 = vld [vmem:[#allocation16 + $0x250] sm:$0xff] }
 0x102   : > { %1138 = vmatpush.msrb.mxu0 %v1089_v25  ;;  %1158 = vmatpush.msrb.mxu1 %v1090_v42  ;;  %v1069_v25 = vld [vmem:[#allocation16 + $0x220] sm:$0xff]  ;;  %v1070_v42 = vld [vmem:[#allocation16 + $0x228] sm:$0xff] }
 0x103   : > { %1198 = vmatpush.msrb.mxu3 %v1092_v52  ;;  %1178 = vmatpush.msrb.mxu2 %v1091_v53  ;;  %v1072_v52 = vld [vmem:[#allocation16 + $0x238] sm:$0xff]  ;;  %v1071_v53 = vld [vmem:[#allocation16 + $0x230] sm:$0xff] }
 0x104   : > { %1139 = vmatpush.msrb.mxu0 %v1085_v54  ;;  %1159 = vmatpush.msrb.mxu1 %v1086_v55  ;;  %v4101_v54 = vld [vmem:[%s5249_s0] sm:$0xff]  ;;  %v1276_v55 = vstv %s4094_s21  ;;  %s3538_s21 = scalar_lea.hbm %s5257_s8, 64 }
 0x105   : > { %1199 = vmatpush.msrb.mxu3 %v1088_v56  ;;  %1179 = vmatpush.msrb.mxu2 %v1087_v57  ;;  %v1361_v56 = vstv %s1297_s26  ;;  %v1065_v57 = vld [vmem:[#allocation16 + $0x200] sm:$0xff]  ;;  %vm1277_vm0 = vcmp.lt.s32.totalorder %v1276_v55, %v4101_v54  ;;  %s3108_s26 = sshll.u32 %s3752_s16, 5 }
 0x106   : > { %1140 = vmatpush.msrb.mxu0 %v1081_v58  ;;  %1160 = vmatpush.msrb.mxu1 %v1082_v59  ;;  %v1066_v58 = vld [vmem:[#allocation16 + $0x208] sm:$0xff]  ;;  %v1068_v59 = vld [vmem:[#allocation16 + $0x218] sm:$0xff]  ;;  %vm1362_vm1 = vcmp.lt.s32.totalorder %v1361_v56, %v4101_v54  ;;  %s2852_s30 = scalar_lea.hbm %s5257_s8, %s3108_s26 }
 0x107   : > { %1200 = vmatpush.msrb.mxu3 %v1084_v60  ;;  %1180 = vmatpush.msrb.mxu2 %v1083_v61  ;;  %v900_v60 = vld [vmem:[#allocation6] sm:$0xff]  ;;  %v1759_v61 = vstv %s1695_s1 }
 0x108   : > { %1141 = vmatpush.msrb.mxu0 %v1077_v62  ;;  %1161 = vmatpush.msrb.mxu1 %v1078_v63  ;;  %v1067_v62 = vld [vmem:[#allocation16 + $0x210] sm:$0xff]  ;;  %vm1760_vm2 = vcmp.lt.s32.totalorder %v1759_v61, %v4101_v54  ;;  %v3662_v63 = vmov 0.0  }
 0x109   : > { %1201 = vmatpush.msrb.mxu3 %v1080_v0  ;;  %1181 = vmatpush.msrb.mxu2 %v1079_v1  ;;  %v3063_v0 = vsel %vm1277_vm0, 1.0, %v3662_v63  ;;  %v3067_v1 = vsel %vm1362_vm1, 1.0, %v3662_v63 }
 0x10a   : > { %1142 = vmatpush.msrb.mxu0 %v1073_v2  ;;  %1162 = vmatpush.msrb.mxu1 %v1074_v3  ;;  %v3663_v2 = vmov 0   ;;  %v3072_v3 = vsel %vm1760_vm2, 1.0, %v3662_v63 }
 0x10b   : > { %1202 = vmatpush.msrb.mxu3 %v1076_v4  ;;  %1182 = vmatpush.msrb.mxu2 %v1075_v8  ;;  %v1286_v4 = vsub.f32 1.0, %v3063_v0  ;;  %v1371_v8 = vsub.f32 1.0, %v3067_v1 }
 0x10c   : > { %1143 = vmatpush.msrb.mxu0 %v1069_v25  ;;  %1163 = vmatpush.msrb.mxu1 %v1070_v42  ;;  %v1844_v25 = vstv %s1780_s7  ;;  %v752_v42 = vld [vmem:[%s5255_s6] sm:$0xf]  ;;  %s2853_s7 = sshll.u32 %s3942_s4, 4  ;;  %s2854_s7 = int_to_ptr.vmem [resolvable:$true] %s2853_s7 }
 0x10d   : > { %1203 = vmatpush.msrb.mxu3 %v1072_v52  ;;  %1183 = vmatpush.msrb.mxu2 %v1071_v53  ;;  %vm1845_vm3 = vcmp.lt.s32.totalorder %v1844_v25, %v4101_v54  ;;  %v4230_v56 = vperm.slane %v752_v42, 0 }
 0x10e   : > { %1144 = vmatpush.msrb.mxu0 %v1065_v57  ;;  %1164 = vmatpush.msrb.mxu1 %v1066_v58  ;;  %v4232_v57 = vperm.slane %v752_v42, 1 }
 0x10f   : > { %1204 = vmatpush.msrb.mxu3 %v1068_v59  ;;  %1145 = vmatmul.f32.vlgmr.msrb.gmra.mxu0 %v900_v60 }
 0x110   : > { %1165 = vmatmul.f32.vlgmr.msrb.gmra.mxu1 %v900_v60  ;;  %1184 = vmatpush.msrb.mxu2 %v1067_v62  ;;  %v4240_v62 = vperm.slane %v752_v42, 2 }
 0x111   : > { %1205 = vmatmul.f32.vlgmr.msrb.gmra.mxu3 %v900_v60  ;;  %1185 = vmatmul.f32.vlgmr.msrb.gmra.mxu2 %v900_v60 }
 0x112   : > { %3230 = vset.pattern.permute.xlu0 %v3663_v2  ;;  %3231 = vset.pattern.permute.xlu1 %v3663_v2 }
 0x113   : > { %1282 = vperm.xlu0 %3230, %v3063_v0   ;;  %1367 = vperm.xlu1 %3231, %v3067_v1  }
 0x114   : > { %3232 = vset.pattern.permute.xlu2 %v3663_v2  ;;  %1463 = vmatpush.msra.mxu0 %v3952_v5  ;;  %v1769_v5 = vsub.f32 1.0, %v3072_v3 }
 0x115   : > { %1765 = vperm.xlu2 %3232, %v3072_v3   ;;  %1483 = vmatpush.msra.mxu1 %v3954_v6 }
 0x116   : > { %1503 = vmatpush.msra.mxu2 %v3961_v9  ;;  %1523 = vmatpush.msra.mxu3 %v3956_v7  ;;  %v3076_v9 = vsel %vm1845_vm3, 1.0, %v3662_v63 }
 0x117   : > { %1464 = vmatpush.msra.mxu0 %v3964_v10  ;;  %1484 = vmatpush.msra.mxu1 %v3966_v11  ;;  %v2241_v10 = vstv %s2177_s29  ;;  %v1854_v11 = vsub.f32 1.0, %v3076_v9  ;;  %s2855_s29 = sshll.u32 %s2852_s30, 4  ;;  %s2856_s29 = int_to_ptr.hbm [resolvable:$true] %s2855_s29 }
 0x118   : > { %1504 = vmatpush.msra.mxu2 %v3970_v13  ;;  %1524 = vmatpush.msra.mxu3 %v3968_v12  ;;  %vm2242_vm4 = vcmp.lt.s32.totalorder %v2241_v10, %v4101_v54  ;;  %v542_v12 = vld [vmem:[%s5254_s5] sm:$0xf]  ;;  %v2326_v13 = vstv %s2262_s14  ;;  %s2836_s14 = scalar_lea.sflag [#allocation10], %s3914_s23  ;;  %s3532_s22 = sshra.s32 %s2856_s29, 4  ;;  %s3533_s22 = int_to_ptr.hbm [resolvable:$true] %s3532_s22 }
 0x119   : > { %1465 = vmatpush.msra.mxu0 %v3973_v14  ;;  %1485 = vmatpush.msra.mxu1 %v3975_v15  ;;  %vm2327_vm5 = vcmp.lt.s32.totalorder %v2326_v13, %v4101_v54  ;;  %s3534_s3 = scalar_lea.hbm %s3533_s22, 32  ;;  %p3539_p12 = scmp.lt.s32.totalorder %s3533_s22, %s5257_s8 }
 0x11a   : > { %1505 = vmatpush.msra.mxu2 %v3981_v17  ;;  %1525 = vmatpush.msra.mxu3 %v3979_v16  ;;  %v3082_v16 = vsel %vm2242_vm4, 1.0, %v3662_v63  ;;  %v4154_v17 = vperm.slane %v542_v12, 0  ;;  %p3535_p5 = scmp.ne.s32.totalorder %s3533_s22, %s3534_s3  ;;  %p3540_p11 = scmp.lt.s32.totalorder %s3538_s21, %s3534_s3 }
 0x11b   : > { %1289 = vperm.xlu0 %3230, %v1286_v4   ;;  %1374 = vperm.xlu1 %3231, %v1371_v8   ;;  %v4125_v6 = vpop.f32.mrf.mxu0  ;;  %v4127_v7 = vpop.f32.mrf.mxu1 }
 0x11c   : > { %1466 = vmatpush.msra.mxu0 %v3985_v18  ;;  %1486 = vmatpush.msra.mxu1 %v3987_v19  ;;  %v4156_v18 = vperm.slane %v542_v12, 1  ;;  %p3536_p2 = pnand %p3535_p5, %p3813_p8  ;;  %p3541_p0 = por %p3540_p11, %p3539_p12 }
 0x11d   : > { %1772 = vperm.xlu2 %3232, %v1769_v5   ;;  %1506 = vmatpush.msra.mxu2 %v3993_v21  ;;  %v2723_v21 = vstv %s2659_s20 }
 0x11e   : > { %1526 = vmatpush.msra.mxu3 %v3991_v20  ;;  %1467 = vmatpush.msra.mxu0 %v3997_v22  ;;  %v2807_v22 = vstv %s4091_s25  ;;  %vm2724_vm6 = vcmp.lt.s32.totalorder %v2723_v21, %v4101_v54  ;;  %p3537_p6 = pneg %p3536_p2 }
 0x11f   : > { %1487 = vmatpush.msra.mxu1 %v3999_v23  ;;  %1507 = vmatpush.msra.mxu2 %v4010_v26  ;;  %v2251_v26 = vsub.f32 1.0, %v3082_v16  ;;  %vm2808_vm7 = vcmp.lt.s32.totalorder %v2807_v22, %v4101_v54 }
 0x120   : > { %1527 = vmatpush.msra.mxu3 %v4003_v24  ;;  %1468 = vmatpush.msra.mxu0 %v4013_v27  ;;  %v3086_v27 = vsel %vm2327_vm5, 1.0, %v3662_v63  ;;  %p3542_p3 = pnand %p3541_p0, %p3537_p6 }
 0x121   : > { %1488 = vmatpush.msra.mxu1 %v4015_v28  ;;  %1508 = vmatpush.msra.mxu2 %v4019_v30  ;;  %v4183_v28 = vperm.slane %v542_v12, 2  ;;  %v3092_v30 = vsel %vm2724_vm6, 1.0, %v3662_v63 }
 0x122   : > { %v4146_v14 = vpop.f32.mrf.mxu2  ;;  %v4148_v15 = vpop.f32.mrf.mxu3  ;;  %1528 = vmatpush.msra.mxu3 %v4017_v29  ;;  %1469 = vmatpush.msra.mxu0 %v4022_v31  ;;  %v4185_v29 = vperm.slane %v542_v12, 3  ;;  %v4189_v31 = vsel %vm2808_vm7, 1.0, %v3662_v63  ;;  %v4242_v63 = vperm.slane %v752_v42, 3 }
 0x123   : > { %1850 = vperm.xlu0 %3230, %v3076_v9   ;;  %1857 = vperm.xlu1 %3231, %v1854_v11  }
 0x124   : > { %1489 = vmatpush.msra.mxu1 %v4024_v32  ;;  %1509 = vmatpush.msra.mxu2 %v4030_v34 }
 0x125   : > { %v572_v19 = vpop.f32.mrf.mxu0  ;;  %v601_v20 = vpop.f32.mrf.mxu1  ;;  %1529 = vmatpush.msra.mxu3 %v4028_v33  ;;  %1470 = vmatpush.msra.mxu0 %v4034_v35 }
 0x126   : > { %v4165_v23 = vadd.f32 %v572_v19, %v4154_v17  ;;  %v4168_v24 = vadd.f32 %v601_v20, %v4156_v18  ;;  %1490 = vmatpush.msra.mxu1 %v4036_v36  ;;  %1510 = vmatpush.msra.mxu2 %v4042_v38  ;;  %v3233_v36 = vpack.i.bf16 %v4189_v31, %v3092_v30 }
 0x127   : > { %1530 = vmatpush.msra.mxu3 %v4040_v37  ;;  %1471 = vmatpush.msra.mxu0 %v4046_v39  ;;  %v2733_v37 = vsub.f32 1.0, %v3092_v30 }
 0x128   : > { %1491 = vmatpush.msra.mxu1 %v4048_v40  ;;  %1511 = vmatpush.msra.mxu2 %v4059_v43  ;;  %v2336_v43 = vsub.f32 1.0, %v3086_v27 }
 0x129   : > { %1531 = vmatpush.msra.mxu3 %v4052_v41  ;;  %1472 = vmatpush.msra.mxu0 %v4062_v44 }
 0x12a   : > { %1492 = vmatpush.msra.mxu1 %v4064_v45  ;;  %1512 = vmatpush.msra.mxu2 %v4068_v47 }
 0x12b   : > { %2254 = vperm.xlu0 %3230, %v2251_v26   ;;  %2332 = vperm.xlu1 %3231, %v3086_v27  }
 0x12c   : > { %v630_v32 = vpop.f32.mrf.mxu2  ;;  %v659_v33 = vpop.f32.mrf.mxu3  ;;  %1532 = vmatpush.msra.mxu3 %v4066_v46  ;;  %1473 = vmatpush.msra.mxu0 %v4071_v48 }
 0x12d   : > { %v4194_v34 = vadd.f32 %v630_v32, %v4183_v28  ;;  %v4197_v35 = vadd.f32 %v659_v33, %v4185_v29  ;;  %1493 = vmatpush.msra.mxu1 %v4073_v49  ;;  %1513 = vmatpush.msra.mxu2 %v4079_v51 }
 0x12e   : > { %1533 = vmatpush.msra.mxu3 %v4077_v50  ;;  %2247 = vperm.xlu2 %3232, %v3082_v16  }
 0x12f   : > { %v575_v38 = vpop.f32.mrf.mxu0  ;;  %v604_v39 = vpop.f32.mrf.mxu1 }
 0x130   : > { %v4204_v40 = vadd.f32 %v575_v38, %v4154_v17  ;;  %v4207_v41 = vadd.f32 %v604_v39, %v4156_v18 }
 0x132   : > { %5382 = vst [vmem:[#allocation33_spill] sm:$0xff] %v4204_v40 }
 0x133   : > { %5383 = vst [vmem:[#allocation34_spill] sm:$0xff] %v4207_v41  ;;  %3234 = vperm.xlu0 %3230, %v3233_v36   ;;  %2736 = vperm.xlu1 %3231, %v2733_v37   ;;  %v570_v36 = vadd.f32 %v4125_v6, %v4154_v17  ;;  %v599_v37 = vadd.f32 %v4127_v7, %v4156_v18  ;;  %v4290_v6 = vld [vmem:[#allocation16 + $0x88] sm:$0xff]  ;;  %v4292_v7 = vld [vmem:[#allocation16 + $0x90] sm:$0xff] }
 0x134   : > { %1494 = vmatpush.msra.mxu1 %v4290_v6  ;;  %1514 = vmatpush.msra.mxu2 %v4292_v7  ;;  %v4409_v41 = vld [vmem:[#allocation16 + $0x390] sm:$0xff] }
 0x135   : > { %5410 = vst [vmem:[#allocation61_spill] sm:$0xff] %v4409_v41 }
 0x136   : > { %v633_v44 = vpop.f32.mrf.mxu2  ;;  %v662_v45 = vpop.f32.mrf.mxu3  ;;  %2339 = vperm.xlu2 %3232, %v2336_v43  }
 0x137   : > { %v4210_v46 = vadd.f32 %v633_v44, %v4183_v28  ;;  %v4213_v47 = vadd.f32 %v662_v45, %v4185_v29 }
 0x139   : > { %5384 = vst [vmem:[#allocation35_spill] sm:$0xff] %v4210_v46  ;;  %v578_v48 = vpop.f32.mrf.mxu0  ;;  %v607_v49 = vpop.f32.mrf.mxu1 }
 0x13a   : > { %5385 = vst [vmem:[#allocation36_spill] sm:$0xff] %v4213_v47  ;;  %v4216_v50 = vadd.f32 %v578_v48, %v4154_v17  ;;  %v4219_v51 = vadd.f32 %v607_v49, %v4156_v18  ;;  %v657_v49 = vadd.f32 %v4148_v15, %v4185_v29  ;;  %v4296_v17 = vld [vmem:[#allocation16 + $0x98] sm:$0xff]  ;;  %v4300_v15 = vld [vmem:[#allocation16 + $0x60] sm:$0xff]  ;;  %v4407_v47 = vld [vmem:[#allocation16 + $0x388] sm:$0xff] }
 0x13b   : > { %1534 = vmatpush.msra.mxu3 %v4296_v17  ;;  %5409 = vst [vmem:[#allocation60_spill] sm:$0xff] %v4407_v47 }
 0x13c   : > { %5386 = vst [vmem:[#allocation37_spill] sm:$0xff] %v4216_v50 }
 0x13d   : > { %5387 = vst [vmem:[#allocation38_spill] sm:$0xff] %v4219_v51  ;;  %v4391_v51 = vld [vmem:[#allocation16 + $0x3a8] sm:$0xff] }
 0x13e   : > { %5405 = vst [vmem:[#allocation56_spill] sm:$0xff] %v4391_v51 }
 0x140   : > { %v636_v52 = vpop.f32.mrf.mxu2  ;;  %v665_v53 = vpop.f32.mrf.mxu3 }
 0x141   : > { %v4225_v54 = vadd.f32 %v636_v52, %v4183_v28  ;;  %v4228_v55 = vadd.f32 %v665_v53, %v4185_v29  ;;  %v4302_v29 = vld [vmem:[#allocation16 + $0x68] sm:$0xff] }
 0x142   : > { %1495 = vmatpush.msra.mxu1 %v4302_v29 }
 0x143   : > { %5388 = vst [vmem:[#allocation39_spill] sm:$0xff] %v4225_v54 }
 0x144   : > { %5389 = vst [vmem:[#allocation40_spill] sm:$0xff] %v4228_v55  ;;  %v779_v58 = vpop.f32.mrf.mxu0  ;;  %v4389_v55 = vld [vmem:[#allocation16 + $0x3a0] sm:$0xff] }
 0x145   : > { %v4235_v59 = vadd.f32 %v779_v58, %v4230_v56  ;;  %v808_v60 = vpop.f32.mrf.mxu1  ;;  %v4288_v58 = vld [vmem:[#allocation16 + $0x80] sm:$0xff]  ;;  %5404 = vst [vmem:[#allocation55_spill] sm:$0xff] %v4389_v55 }
 0x146   : > { %v4238_v61 = vadd.f32 %v808_v60, %v4232_v57  ;;  %1474 = vmatpush.msra.mxu0 %v4288_v58  ;;  %v4304_v60 = vld [vmem:[#allocation16 + $0x70] sm:$0xff] }
 0x147   : > { %5390 = vst [vmem:[#allocation41_spill] sm:$0xff] %v4235_v59  ;;  %1515 = vmatpush.msra.mxu2 %v4304_v60 }
 0x148   : > { %5391 = vst [vmem:[#allocation42_spill] sm:$0xff] %v4238_v61  ;;  %1475 = vmatpush.msra.mxu0 %v4300_v15  ;;  %v4372_v61 = vld [vmem:[#allocation16 + $0x3c8] sm:$0xff] }
 0x14b   : > { %v837_v0 = vpop.f32.mrf.mxu2 }
 0x14c   : > { %v4245_v1 = vadd.f32 %v837_v0, %v4240_v62  ;;  %v866_v2 = vpop.f32.mrf.mxu3 }
 0x14d   : > { %v4248_v3 = vadd.f32 %v866_v2, %v4242_v63  ;;  %v4308_v2 = vld [vmem:[#allocation16 + $0x78] sm:$0xff] }
 0x14e   : > { %5392 = vst [vmem:[#allocation43_spill] sm:$0xff] %v4245_v1  ;;  %v782_v4 = vpop.f32.mrf.mxu0  ;;  %1535 = vmatpush.msra.mxu3 %v4308_v2  ;;  %v4364_v1 = vld [vmem:[#allocation16 + $0x3f8] sm:$0xff] }
 0x14f   : > { %5393 = vst [vmem:[#allocation44_spill] sm:$0xff] %v4248_v3  ;;  %v4251_v8 = vadd.f32 %v782_v4, %v4230_v56  ;;  %v811_v25 = vpop.f32.mrf.mxu1  ;;  %v4370_v3 = vld [vmem:[#allocation16 + $0x3c0] sm:$0xff] }
 0x150   : > { %v4254_v5 = vadd.f32 %v811_v25, %v4232_v57 }
 0x151   : > { %5394 = vst [vmem:[#allocation45_spill] sm:$0xff] %v4251_v8 }
 0x152   : > { %5395 = vst [vmem:[#allocation46_spill] sm:$0xff] %v4254_v5 }
 0x155   : > { %v840_v9 = vpop.f32.mrf.mxu2 }
 0x156   : > { %v4257_v10 = vadd.f32 %v840_v9, %v4240_v62  ;;  %v869_v11 = vpop.f32.mrf.mxu3 }
 0x157   : > { %v4260_v12 = vadd.f32 %v869_v11, %v4242_v63  ;;  %v4316_v11 = vld [vmem:[#allocation16 + $0x40] sm:$0xff] }
 0x158   : > { %5396 = vst [vmem:[#allocation47_spill] sm:$0xff] %v4257_v10  ;;  %v785_v13 = vpop.f32.mrf.mxu0  ;;  %1476 = vmatpush.msra.mxu0 %v4316_v11  ;;  %v4395_v10 = vld [vmem:[#allocation16 + $0x3b0] sm:$0xff] }
 0x159   : > { %5397 = vst [vmem:[#allocation48_spill] sm:$0xff] %v4260_v12  ;;  %v4263_v16 = vadd.f32 %v785_v13, %v4230_v56  ;;  %v814_v19 = vpop.f32.mrf.mxu1  ;;  %v4318_v13 = vld [vmem:[#allocation16 + $0x48] sm:$0xff]  ;;  %v4397_v12 = vld [vmem:[#allocation16 + $0x3b8] sm:$0xff] }
 0x15a   : > { %v4266_v20 = vadd.f32 %v814_v19, %v4232_v57  ;;  %v4320_v19 = vld [vmem:[#allocation16 + $0x50] sm:$0xff]  ;;  %1496 = vmatpush.msra.mxu1 %v4318_v13  ;;  %5406 = vst [vmem:[#allocation57_spill] sm:$0xff] %v4395_v10 }
 0x15b   : > { %5398 = vst [vmem:[#allocation49_spill] sm:$0xff] %v4263_v16  ;;  %1516 = vmatpush.msra.mxu2 %v4320_v19  ;;  %v4426_v16 = vld [vmem:[#allocation16 + $0x368] sm:$0xff] }
 0x15c   : > { %5399 = vst [vmem:[#allocation50_spill] sm:$0xff] %v4266_v20 }
 0x15d   : > { %5407 = vst [vmem:[#allocation58_spill] sm:$0xff] %v4397_v12 }
 0x15e   : > { %5412 = vst [vmem:[#allocation63_spill] sm:$0xff] %v4426_v16 }
 0x15f   : > { %v843_v21 = vpop.f32.mrf.mxu2 }
 0x160   : > { %v4269_v22 = vadd.f32 %v843_v21, %v4240_v62  ;;  %v872_v26 = vpop.f32.mrf.mxu3  ;;  %v4325_v21 = vld [vmem:[#allocation16 + $0x58] sm:$0xff] }
 0x161   : > { %v4272_v27 = vadd.f32 %v872_v26, %v4242_v63  ;;  %1536 = vmatpush.msra.mxu3 %v4325_v21  ;;  %v4330_v26 = vld [vmem:[#allocation16 + $0x20] sm:$0xff] }
 0x162   : > { %5400 = vst [vmem:[#allocation51_spill] sm:$0xff] %v4269_v22  ;;  %v4274_v30 = vpop.f32.mrf.mxu0  ;;  %1477 = vmatpush.msra.mxu0 %v4330_v26  ;;  %v4416_v22 = vld [vmem:[#allocation16 + $0x398] sm:$0xff] }
 0x163   : > { %5401 = vst [vmem:[#allocation52_spill] sm:$0xff] %v4272_v27  ;;  %v4276_v32 = vpop.f32.mrf.mxu1 }
 0x164   : > { %5411 = vst [vmem:[#allocation62_spill] sm:$0xff] %v4416_v22 }
 0x169   : > { %v4286_v42 = vpop.f32.mrf.mxu2 }
 0x16a   : > { %v4278_v33 = vpop.f32.mrf.mxu3 }
 0x16d   : > { %v997_v38 = vpop.f32.mrf.mxu0  ;;  %v1017_v39 = vpop.f32.mrf.mxu1 }
 0x16e   : > { %v1060_v43 = vadd.f32 %v997_v38, %v570_v36  ;;  %v1061_v44 = vadd.f32 %v1017_v39, %v599_v37  ;;  %v4332_v36 = vld [vmem:[#allocation16 + $0x28] sm:$0xff]  ;;  %v4334_v37 = vld [vmem:[#allocation16 + $0x30] sm:$0xff]  ;;  %v4338_v38 = vld [vmem:[#allocation16 + $0x38] sm:$0xff] }
 0x16f   : > { %1497 = vmatpush.msra.mxu1 %v4332_v36  ;;  %1517 = vmatpush.msra.mxu2 %v4334_v37 }
 0x170   : > { %v3060_v45 = vmul.f32 -1.442695, %v1060_v43  ;;  %v3061_v48 = vmul.f32 -1.442695, %v1061_v44  ;;  %1537 = vmatpush.msra.mxu3 %v4338_v38  ;;  %v4342_v43 = vld [vmem:[#allocation16] sm:$0xff]  ;;  %v4344_v44 = vld [vmem:[#allocation16 + $0x8] sm:$0xff] }
 0x171   : > { %1478 = vmatpush.msra.mxu0 %v4342_v43  ;;  %1498 = vmatpush.msra.mxu1 %v4344_v44 }
 0x172   : > { %3238 = vpow2.f32 %v3060_v45  ;;  %v4346_v45 = vld [vmem:[#allocation16 + $0x10] sm:$0xff] }
 0x173   : > { %3240 = vpow2.f32 %v3061_v48  ;;  %1518 = vmatpush.msra.mxu2 %v4346_v45 }
 0x174   : > { %v1057_v52 = vpop.f32.mrf.mxu3  ;;  %v1037_v39 = vpop.f32.mrf.mxu2 }
 0x175   : > { %v1063_v53 = vadd.f32 %v1057_v52, %v657_v49  ;;  %v628_v49 = vadd.f32 %v4146_v14, %v4183_v28  ;;  %v4352_v52 = vld [vmem:[#allocation16 + $0x18] sm:$0xff] }
 0x176   : > { %1538 = vmatpush.msra.mxu3 %v4352_v52 }
 0x177   : > { %v3062_v18 = vmul.f32 -1.442695, %v1063_v53  ;;  %v4354_v53 = vld [vmem:[#allocation16 + $0x3e0] sm:$0xff]  ;;  %v1062_v28 = vadd.f32 %v1037_v39, %v628_v49  ;;  %v4383_v39 = vld [vmem:[#allocation16 + $0x3d8] sm:$0xff] }
 0x178   : > { %v3239_v0 = vpop.eup %3238  ;;  %1611 = vmatpush.msrb.mxu0 %v4354_v53  ;;  %1671 = vmatpush.msrb.mxu3 %v4364_v1  ;;  %5403 = vst [vmem:[#allocation54_spill] sm:$0xff] %v4383_v39 }
 0x179   : > { %v3241_v4 = vpop.eup %3240  ;;  %v4310_v25 = vadd.f32 1.0, %v3239_v0  ;;  %3242 = vpow2.f32 %v3062_v18  ;;  %v4356_v18 = vld [vmem:[#allocation16 + $0x3e8] sm:$0xff] }
 0x17a   : > { %v4314_v9 = vadd.f32 1.0, %v3241_v4  ;;  %v4362_v4 = vld [vmem:[#allocation16 + $0x3f0] sm:$0xff]  ;;  %1631 = vmatpush.msrb.mxu1 %v4356_v18  ;;  %1612 = vmatpush.msrb.mxu0 %v4370_v3 }
 0x17b   : > { %3244 = vrcp.f32 %v4310_v25  ;;  %1651 = vmatpush.msrb.mxu2 %v4362_v4  ;;  %1672 = vmatpush.msrb.mxu3 %v4383_v39  ;;  %v1228_v46 = vand.u32 2147483648, %v4310_v25  ;;  %vm1222_vm9 = vweird.f32 %v4310_v25  ;;  %v4451_v39 = vld [vmem:[#allocation16 + $0x348] sm:$0xff] }
 0x17c   : > { %3246 = vrcp.f32 %v4314_v9  ;;  %1632 = vmatpush.msrb.mxu1 %v4372_v61  ;;  %1613 = vmatpush.msrb.mxu0 %v4389_v55  ;;  %v1245_v20 = vand.u32 2147483647, %v4314_v9  ;;  %vm1241_vm12 = vweird.f32 %v4314_v9  ;;  %5417 = vst [vmem:[#allocation66_spill] sm:$0xff] %v4451_v39 }
 0x17d   : > { %1673 = vmatpush.msrb.mxu3 %v4397_v12 }
 0x17e   : > { %1633 = vmatpush.msrb.mxu1 %v4391_v51  ;;  %v1229_v51 = vor.u32 1.1754944e-38, %v1228_v46  ;;  %vm1246_vm15 = vcmp.eq.f32.partialorder %v1245_v20, 8.507059e+37 }
 0x17f   : > { %v3243_v48 = vpop.eup %3242  ;;  %1674 = vmatpush.msrb.mxu3 %v4416_v22  ;;  %v789_v22 = vadd.f32 %v4274_v30, %v4230_v56 }
 0x180   : > { %v4358_v0 = vadd.f32 1.0, %v3243_v48  ;;  %v4374_v48 = vld [vmem:[#allocation16 + $0x3d0] sm:$0xff]  ;;  %1634 = vmatpush.msrb.mxu1 %v4407_v47  ;;  %v4441_v47 = vld [vmem:[#allocation16 + $0x378] sm:$0xff] }
 0x181   : > { %v4366_v14 = vpop.eup %3244  ;;  %5402 = vst [vmem:[#allocation53_spill] sm:$0xff] %v4374_v48  ;;  %1652 = vmatpush.msrb.mxu2 %v4374_v48  ;;  %v899_v48 = vld [vmem:[#allocation5] sm:$0xff]  ;;  %1675 = vmatpush.msrb.mxu3 %v4441_v47 }
 0x182   : > { %v4376_v59 = vpop.eup %3246  ;;  %v1218_v54 = vmul.f32 %v4366_v14, %v4310_v25  ;;  %3248 = vrcp.f32 %v4358_v0  ;;  %vm1223_vm8 = vweird.f32 %v4366_v14  ;;  %5416 = vst [vmem:[#allocation65_spill] sm:$0xff] %v4441_v47  ;;  %1635 = vmatpush.msrb.mxu1 %v4426_v16  ;;  %v4468_v16 = vld [vmem:[#allocation16 + $0x358] sm:$0xff]  ;;  %v818_v47 = vadd.f32 %v4276_v32, %v4232_v57  ;;  %v4492_v57 = vld [vmem:[#allocation16 + $0x308] sm:$0xff]  ;;  %v4494_v32 = vld [vmem:[#allocation16 + $0x310] sm:$0xff] }
 0x183   : > { %v1237_v49 = vmul.f32 %v4376_v59, %v4314_v9  ;;  %3250 = vtanh.f32 %v1062_v28  ;;  %v1226_v28 = vand.u32 2147483647, %v4310_v25  ;;  %1653 = vmatpush.msrb.mxu2 %v4395_v10  ;;  %vm1242_vm10 = vweird.f32 %v4376_v59  ;;  %v4428_v10 = vld [vmem:[#allocation16 + $0x370] sm:$0xff]  ;;  %vm4435_vm11 = vmor %vm1222_vm9, %vm1223_vm8  ;;  %1676 = vmatpush.msrb.mxu3 %v4468_v16  ;;  %5424 = vst [vmem:[#allocation71_spill] sm:$0xff] %v4492_v57 }
 0x184   : > { %v1219_v50 = vsub.f32 1.0, %v1218_v54  ;;  %v4405_v54 = vld [vmem:[#allocation16 + $0x380] sm:$0xff]  ;;  %5413 = vst [vmem:[#allocation64_spill] sm:$0xff] %v4428_v10  ;;  %vm4462_vm14 = vmor %vm1241_vm12, %vm1242_vm10  ;;  %1636 = vmatpush.msrb.mxu1 %v4451_v39  ;;  %vm1261_vm1 = vweird.f32 %v4358_v0 }
 0x185   : > { %v1238_v5 = vsub.f32 1.0, %v1237_v49  ;;  %v4399_v8 = vpop.permute.xlu0 %1282  ;;  %5408 = vst [vmem:[#allocation59_spill] sm:$0xff] %v4405_v54  ;;  %v1247_v49 = vand.u32 2147483648, %v4314_v9  ;;  %1614 = vmatpush.msrb.mxu0 %v4405_v54  ;;  %1654 = vmatpush.msrb.mxu2 %v4409_v41  ;;  %v4453_v41 = vld [vmem:[#allocation16 + $0x350] sm:$0xff]  ;;  %vm1227_vm13 = vcmp.eq.f32.partialorder %v1226_v28, 8.507059e+37  ;;  %v4490_v39 = vld [vmem:[#allocation16 + $0x300] sm:$0xff] }
 0x186   : > { %v1220_v40 = vmul.f32 %v4366_v14, %v1219_v50  ;;  %v4424_v50 = vld [vmem:[#allocation16 + $0x360] sm:$0xff]  ;;  %5423 = vst [vmem:[#allocation70_spill] sm:$0xff] %v4490_v39 }
 0x187   : > { %v1239_v27 = vmul.f32 %v4376_v59, %v1238_v5  ;;  %1615 = vmatpush.msrb.mxu0 %v4424_v50  ;;  %v1248_v9 = vor.u32 1.1754944e-38, %v1247_v49  ;;  %1655 = vmatpush.msrb.mxu2 %v4428_v10  ;;  %v4477_v49 = vld [vmem:[#allocation16 + $0x328] sm:$0xff]  ;;  %v4479_v5 = vld [vmem:[#allocation16 + $0x330] sm:$0xff]  ;;  %5425 = vst [vmem:[#allocation72_spill] sm:$0xff] %v4494_v32 }
 0x188   : > { %v4430_v12 = vpop.eup %3248  ;;  %v1221_v25 = vadd.f32 %v4366_v14, %v1220_v40  ;;  %v4449_v40 = vld [vmem:[#allocation16 + $0x340] sm:$0xff]  ;;  %5420 = vst [vmem:[#allocation67_spill] sm:$0xff] %v4477_v49  ;;  %1637 = vmatpush.msrb.mxu1 %v4477_v49 }
 0x189   : > { %v1257_v54 = vmul.f32 %v4430_v12, %v4358_v0  ;;  %v1240_v55 = vadd.f32 %v4376_v59, %v1239_v27  ;;  %v3251_v56 = vpop.eup %3250  ;;  %1616 = vmatpush.msrb.mxu0 %v4449_v40  ;;  %5421 = vst [vmem:[#allocation68_spill] sm:$0xff] %v4479_v5  ;;  %1656 = vmatpush.msrb.mxu2 %v4453_v41  ;;  %vm1262_vm0 = vweird.f32 %v4430_v12 }
 0x18a   : > { %v1225_v46 = vsel %vm4435_vm11, %v4366_v14, %v1221_v25  ;;  %v4475_v25 = vld [vmem:[#allocation16 + $0x320] sm:$0xff]  ;;  %1638 = vmatpush.msrb.mxu1 %v4492_v57  ;;  %vm4530_vm2 = vmor %vm1261_vm1, %vm1262_vm0 }
 0x18b   : > { %v1230_v30 = vsel %vm1227_vm13, %v1229_v51, %v1225_v46  ;;  %v1244_v14 = vsel %vm4462_vm14, %v4376_v59, %v1240_v55  ;;  %v1258_v28 = vsub.f32 1.0, %v1257_v54  ;;  %v4485_v55 = vld [vmem:[#allocation16 + $0x338] sm:$0xff]  ;;  %1617 = vmatpush.msrb.mxu0 %v4475_v25  ;;  %1657 = vmatpush.msrb.mxu2 %v4479_v5  ;;  %v4545_v57 = vld [vmem:[#allocation16 + $0x2a0] sm:$0xff] }
 0x18c   : > { %v1249_v51 = vsel %vm1246_vm15, %v1248_v9, %v1244_v14  ;;  %v1272_v46 = vmul.f32 %v3251_v56, %v1230_v30  ;;  %v1146_v10 = vpop.f32.mrf.mxu0  ;;  %5422 = vst [vmem:[#allocation69_spill] sm:$0xff] %v4485_v55  ;;  %1677 = vmatpush.msrb.mxu3 %v4485_v55  ;;  %v4500_v30 = vld [vmem:[#allocation16 + $0x318] sm:$0xff] }
 0x18d   : > { %v1259_v59 = vmul.f32 %v4430_v12, %v1258_v28  ;;  %v1271_v20 = vmul.f32 %v1249_v51, %v899_v48  ;;  %v1209_v54 = vadd.f32 %v1146_v10, %v789_v22  ;;  %v1166_v27 = vpop.f32.mrf.mxu1  ;;  %v4496_v56 = vpop.permute.xlu0 %1289  ;;  %5426 = vst [vmem:[#allocation73_spill] sm:$0xff] %v4500_v30  ;;  %1618 = vmatpush.msrb.mxu0 %v4490_v39  ;;  %v4506_v28 = vld [vmem:[#allocation16 + $0x2e0] sm:$0xff]  ;;  %v4510_v51 = vld [vmem:[#allocation16 + $0x2f0] sm:$0xff] }
 0x18e   : > { %v1210_v9 = vadd.f32 %v1166_v27, %v818_v47  ;;  %v1295_v14 = vmul.f32 %v4496_v56, %v899_v48  ;;  %5427 = vst [vmem:[#allocation74_spill] sm:$0xff] %v4506_v28  ;;  %v4508_v47 = vld [vmem:[#allocation16 + $0x2e8] sm:$0xff]  ;;  %1658 = vmatpush.msrb.mxu2 %v4494_v32  ;;  %1678 = vmatpush.msrb.mxu3 %v4500_v30  ;;  %v1267_v48 = vand.u32 2147483648, %v4358_v0  ;;  %v1265_v32 = vand.u32 2147483647, %v4358_v0 }
 0x18f   : > { %v1273_v10 = vadd.f32 %v1272_v46, %v1271_v20  ;;  %v3064_v22 = vmul.f32 -1.442695, %v1209_v54  ;;  %5428 = vst [vmem:[#allocation75_spill] sm:$0xff] %v4508_v47  ;;  %v1260_v27 = vadd.f32 %v4430_v12, %v1259_v59  ;;  %v4515_v46 = vld [vmem:[#allocation16 + $0x2f8] sm:$0xff]  ;;  %1619 = vmatpush.msrb.mxu0 %v4506_v28  ;;  %1639 = vmatpush.msrb.mxu1 %v4508_v47  ;;  %v4522_v54 = vld [vmem:[#allocation16 + $0x2c0] sm:$0xff]  ;;  %v4524_v59 = vld [vmem:[#allocation16 + $0x2c8] sm:$0xff] }
 0x190   : > { %5429 = vst [vmem:[#allocation76_spill] sm:$0xff] %v4510_v51  ;;  %v3065_v55 = vmul.f32 -1.442695, %v1210_v9  ;;  %v4526_v9 = vld [vmem:[#allocation16 + $0x2d0] sm:$0xff]  ;;  %1659 = vmatpush.msrb.mxu2 %v4510_v51  ;;  %1679 = vmatpush.msrb.mxu3 %v4515_v46  ;;  %v876_v47 = vadd.f32 %v4278_v33, %v4242_v63  ;;  %v4547_v0 = vld [vmem:[#allocation16 + $0x2a8] sm:$0xff]  ;;  %v4556_v63 = vld [vmem:[#allocation16 + $0x2b8] sm:$0xff] }
 0x191   : > { %5430 = vst [vmem:[#allocation77_spill] sm:$0xff] %v4515_v46  ;;  %3252 = vtanh.f32 %v1273_v10  ;;  %v1294_v20 = vmul.f32 %v4399_v8, %v1273_v10  ;;  %v4537_v10 = vld [vmem:[#allocation16 + $0x2d8] sm:$0xff]  ;;  %1620 = vmatpush.msrb.mxu0 %v4522_v54  ;;  %1640 = vmatpush.msrb.mxu1 %v4524_v59  ;;  %v1264_v46 = vsel %vm4530_vm2, %v4430_v12, %v1260_v27  ;;  %v1268_v33 = vor.u32 1.1754944e-38, %v1267_v48  ;;  %v4574_v48 = vld [vmem:[#allocation16 + $0x268] sm:$0xff] }
 0x192   : > { %5431 = vst [vmem:[#allocation78_spill] sm:$0xff] %v4522_v54  ;;  %3254 = vpow2.f32 %v3064_v22  ;;  %v4549_v22 = vld [vmem:[#allocation16 + $0x2b0] sm:$0xff]  ;;  %1660 = vmatpush.msrb.mxu2 %v4526_v9  ;;  %1680 = vmatpush.msrb.mxu3 %v4537_v10  ;;  %vm1266_vm3 = vcmp.eq.f32.partialorder %v1265_v32, 8.507059e+37  ;;  %v4568_v12 = vld [vmem:[#allocation16 + $0x298] sm:$0xff] }
 0x193   : > { %5432 = vst [vmem:[#allocation79_spill] sm:$0xff] %v4524_v59  ;;  %3256 = vpow2.f32 %v3065_v55  ;;  %v4541_v28 = vadd.f32 %v1295_v14, %v1294_v20  ;;  %1621 = vmatpush.msrb.mxu0 %v4545_v57  ;;  %1641 = vmatpush.msrb.mxu1 %v4547_v0  ;;  %v4560_v14 = vld [vmem:[#allocation16 + $0x280] sm:$0xff]  ;;  %v4562_v20 = vld [vmem:[#allocation16 + $0x288] sm:$0xff]  ;;  %v4564_v59 = vld [vmem:[#allocation16 + $0x290] sm:$0xff]  ;;  %v1269_v27 = vsel %vm1266_vm3, %v1268_v33, %v1264_v46 }
 0x194   : > { %5433 = vst [vmem:[#allocation80_spill] sm:$0xff] %v4526_v9  ;;  %v1206_v51 = vpop.f32.mrf.mxu3  ;;  %1661 = vmatpush.msrb.mxu2 %v4549_v22  ;;  %1681 = vmatpush.msrb.mxu3 %v4556_v63  ;;  %v4581_v46 = vld [vmem:[#allocation16 + $0x278] sm:$0xff] }
 0x195   : > { %5436 = vst [vmem:[#allocation81_spill] sm:$0xff] %v4537_v10  ;;  %v1212_v55 = vadd.f32 %v1206_v51, %v876_v47  ;;  %1622 = vmatpush.msrb.mxu0 %v4560_v14  ;;  %1642 = vmatpush.msrb.mxu1 %v4562_v20  ;;  %v4572_v51 = vld [vmem:[#allocation16 + $0x260] sm:$0xff] }
 0x196   : > { %5437 = vst [vmem:[#allocation82_spill] sm:$0xff] %v4545_v57  ;;  %1662 = vmatpush.msrb.mxu2 %v4564_v59  ;;  %1682 = vmatpush.msrb.mxu3 %v4568_v12 }
 0x197   : > { %5438 = vst [vmem:[#allocation83_spill] sm:$0xff] %v4547_v0  ;;  %v3253_v30 = vpop.eup %3252  ;;  %v3066_v47 = vmul.f32 -1.442695, %v1212_v55  ;;  %v4576_v0 = vld [vmem:[#allocation16 + $0x270] sm:$0xff]  ;;  %1623 = vmatpush.msrb.mxu0 %v4572_v51  ;;  %1643 = vmatpush.msrb.mxu1 %v4574_v48 }
 0x198   : > { %5439 = vst [vmem:[#allocation84_spill] sm:$0xff] %v4549_v22  ;;  %v3255_v32 = vpop.eup %3254  ;;  %v1275_v57 = vmul.f32 %v3253_v30, %v1269_v27  ;;  %v3366_v22 = vld [vmem:[#allocation4] sm:$0xff]  ;;  %v4589_v30 = vld [vmem:[#allocation16 + $0x248] sm:$0xff]  ;;  %1663 = vmatpush.msrb.mxu2 %v4576_v0  ;;  %1683 = vmatpush.msrb.mxu3 %v4581_v46 }
 0x199   : > { %5440 = vst [vmem:[#allocation85_spill] sm:$0xff] %v4556_v63  ;;  %v1292_v63 = vmul.f32 %v3366_v22, %v4496_v56  ;;  %v3257_v33 = vpop.eup %3256  ;;  %v4583_v55 = vadd.f32 1.0, %v3255_v32  ;;  %3258 = vpow2.f32 %v3066_v47  ;;  %v4591_v56 = vld [vmem:[#allocation16 + $0x250] sm:$0xff]  ;;  %v4598_v47 = vld [vmem:[#allocation16 + $0x258] sm:$0xff]  ;;  %1644 = vmatpush.msrb.mxu1 %v4589_v30  ;;  %v4603_v32 = vld [vmem:[#allocation16 + $0x220] sm:$0xff] }
 0x19a   : > { %5441 = vst [vmem:[#allocation86_spill] sm:$0xff] %v4560_v14  ;;  %v1285_v22 = vmul.f32 %v4399_v8, %v1275_v57  ;;  %v4594_v27 = vadd.f32 1.0, %v3257_v33  ;;  %1664 = vmatpush.msrb.mxu2 %v4591_v56  ;;  %1684 = vmatpush.msrb.mxu3 %v4598_v47  ;;  %v847_v57 = vadd.f32 %v4286_v42, %v4240_v62  ;;  %v4617_v33 = vld [vmem:[#allocation16 + $0x230] sm:$0xff]  ;;  %v4631_v42 = vld [vmem:[#allocation16 + $0x218] sm:$0xff] }
 0x19b   : > { %5442 = vst [vmem:[#allocation87_spill] sm:$0xff] %v4562_v20  ;;  %v4587_v20 = vld [vmem:[#allocation16 + $0x240] sm:$0xff]  ;;  %3260 = vrcp.f32 %v4583_v55  ;;  %v4629_v62 = vld [vmem:[#allocation16 + $0x210] sm:$0xff]  ;;  %vm1307_vm6 = vweird.f32 %v4583_v55 }
 0x19c   : > { %5443 = vst [vmem:[#allocation88_spill] sm:$0xff] %v4564_v59  ;;  %1624 = vmatpush.msrb.mxu0 %v4587_v20  ;;  %3262 = vrcp.f32 %v4594_v27  ;;  %v4609_v8 = vadd.f32 %v1292_v63, %v1285_v22  ;;  %v4623_v63 = vld [vmem:[#allocation16 + $0x200] sm:$0xff]  ;;  %1665 = vmatpush.msrb.mxu2 %v4617_v33  ;;  %vm1326_vm8 = vweird.f32 %v4594_v27 }
 0x19d   : > { %5444 = vst [vmem:[#allocation89_spill] sm:$0xff] %v4568_v12 }
 0x19e   : > { %5445 = vst [vmem:[#allocation90_spill] sm:$0xff] %v4572_v51  ;;  %1625 = vmatpush.msrb.mxu0 %v4603_v32  ;;  %1499 = vmatmul.f32.vlgmr.msra.gmra.mxu1 %v4609_v8 }
 0x19f   : > { %5446 = vst [vmem:[#allocation91_spill] sm:$0xff] %v4574_v48  ;;  %v4605_v48 = vld [vmem:[#allocation16 + $0x228] sm:$0xff]  ;;  %1479 = vmatmul.f32.vlgmr.msra.gmra.mxu0 %v4609_v8  ;;  %1519 = vmatmul.f32.vlgmr.msra.gmra.mxu2 %v4609_v8 }
 0x1a0   : > { %5447 = vst [vmem:[#allocation92_spill] sm:$0xff] %v4576_v0  ;;  %1645 = vmatpush.msrb.mxu1 %v4605_v48  ;;  %1539 = vmatmul.f32.vlgmr.msra.gmra.mxu3 %v4609_v8 }
 0x1a1   : > { %5448 = vst [vmem:[#allocation93_spill] sm:$0xff] %v4581_v46  ;;  %1626 = vmatpush.msrb.mxu0 %v4623_v63  ;;  %1666 = vmatpush.msrb.mxu2 %v4629_v62 }
 0x1a2   : > { %5449 = vst [vmem:[#allocation94_spill] sm:$0xff] %v4587_v20  ;;  %v1186_v20 = vpop.f32.mrf.mxu2 }
 0x1a3   : > { %5450 = vst [vmem:[#allocation95_spill] sm:$0xff] %v4589_v30  ;;  %v4619_v30 = vld [vmem:[#allocation16 + $0x238] sm:$0xff]  ;;  %v1211_v46 = vadd.f32 %v1186_v20, %v847_v57  ;;  %v1313_v20 = vand.u32 2147483648, %v4583_v55 }
 0x1a4   : > { %5451 = vst [vmem:[#allocation96_spill] sm:$0xff] %v4591_v56  ;;  %1685 = vmatpush.msrb.mxu3 %v4619_v30 }
 0x1a5   : > { %5452 = vst [vmem:[#allocation97_spill] sm:$0xff] %v4598_v47  ;;  %v3259_v47 = vpop.eup %3258 }
 0x1a6   : > { %5453 = vst [vmem:[#allocation98_spill] sm:$0xff] %v4603_v32  ;;  %v1340_v32 = vadd.f32 1.0, %v3259_v47  ;;  %v3261_v56 = vpop.eup %3260  ;;  %1686 = vmatpush.msrb.mxu3 %v4631_v42 }
 0x1a7   : > { %5454 = vst [vmem:[#allocation99_spill] sm:$0xff] %v4605_v48  ;;  %v2817_v48 = vsub.f32 1.0, %v4189_v31  ;;  %v3263_v0 = vpop.eup %3262  ;;  %vm1308_vm4 = vweird.f32 %v3261_v56 }
 0x1a8   : > { %1382 = vst [vmem:[%s3942_s4] sm:$0xff] %v1285_v22  ;;  %v4625_v22 = vld [vmem:[#allocation16 + $0x208] sm:$0xff]  ;;  %3264 = vrcp.f32 %v1340_v32  ;;  %v1322_v31 = vmul.f32 %v3263_v0, %v4594_v27  ;;  %vm1327_vm5 = vweird.f32 %v3263_v0  ;;  %vm1309_vm7 = vmor %vm1307_vm6, %vm1308_vm4  ;;  %vm1346_vm13 = vweird.f32 %v1340_v32 }
 0x1a9   : > { %5455 = vst [vmem:[#allocation100_spill] sm:$0xff] %v4609_v8  ;;  %1646 = vmatpush.msrb.mxu1 %v4625_v22  ;;  %v1303_v8 = vmul.f32 %v3261_v56, %v4583_v55  ;;  %2820 = vperm.xlu2 %3232, %v2817_v48   ;;  %3266 = vtanh.f32 %v1211_v46  ;;  %vm1328_vm10 = vmor %vm1326_vm8, %vm1327_vm5 }
 0x1aa   : > { %5456 = vst [vmem:[#allocation101_spill] sm:$0xff] %v4617_v33  ;;  %v1368_v33 = vpop.permute.xlu1 %1367 }
 0x1ab   : > { %5457 = vst [vmem:[#allocation102_spill] sm:$0xff] %v4619_v30  ;;  %v1304_v47 = vsub.f32 1.0, %v1303_v8  ;;  %v1323_v30 = vsub.f32 1.0, %v1322_v31  ;;  %v1314_v8 = vor.u32 1.1754944e-38, %v1313_v20 }
 0x1ac   : > { %5458 = vst [vmem:[#allocation103_spill] sm:$0xff] %v4623_v63  ;;  %v1332_v63 = vand.u32 2147483648, %v4594_v27 }
 0x1ad   : > { %5459 = vst [vmem:[#allocation104_spill] sm:$0xff] %v4625_v22  ;;  %v1305_v57 = vmul.f32 %v3261_v56, %v1304_v47  ;;  %v1311_v22 = vand.u32 2147483647, %v4583_v55  ;;  %v1324_v51 = vmul.f32 %v3263_v0, %v1323_v30  ;;  %v901_v47 = vld [vmem:[#allocation7] sm:$0xff] }
 0x1ae   : > { %5460 = vst [vmem:[#allocation105_spill] sm:$0xff] %v4629_v62  ;;  %v1330_v62 = vand.u32 2147483647, %v4594_v27  ;;  %v1333_v59 = vor.u32 1.1754944e-38, %v1332_v63  ;;  %v1352_v27 = vand.u32 2147483648, %v1340_v32 }
 0x1af   : > { %5461 = vst [vmem:[#allocation106_spill] sm:$0xff] %v4631_v42  ;;  %v3265_v42 = vpop.eup %3264  ;;  %v1306_v12 = vadd.f32 %v3261_v56, %v1305_v57  ;;  %v1325_v31 = vadd.f32 %v3263_v0, %v1324_v51  ;;  %vm1312_vm9 = vcmp.eq.f32.partialorder %v1311_v22, 8.507059e+37 }
 0x1b0   : > { %v1342_v48 = vmul.f32 %v3265_v42, %v1340_v32  ;;  %v3267_v14 = vpop.eup %3266  ;;  %vm1331_vm11 = vcmp.eq.f32.partialorder %v1330_v62, 8.507059e+37  ;;  %vm1347_vm12 = vweird.f32 %v3265_v42  ;;  %v1353_v22 = vor.u32 1.1754944e-38, %v1352_v27  ;;  %v4701_v27 = vld [vmem:[#allocation16 + $0x198] sm:$0xff] }
 0x1b1   : > { %v1310_v46 = vsel %vm1309_vm7, %v3261_v56, %v1306_v12  ;;  %v1329_v9 = vsel %vm1328_vm10, %v3263_v0, %v1325_v31  ;;  %v1350_v56 = vand.u32 2147483647, %v1340_v32  ;;  %vm1348_vm14 = vmor %vm1346_vm13, %vm1347_vm12  ;;  %v4659_v32 = vld [vmem:[#allocation16 + $0x1e8] sm:$0xff]  ;;  %v4677_v31 = vld [vmem:[#allocation16 + $0x1d8] sm:$0xff] }
 0x1b2   : > { %v1343_v30 = vsub.f32 1.0, %v1342_v48  ;;  %v1315_v10 = vsel %vm1312_vm9, %v1314_v8, %v1310_v46  ;;  %v1334_v57 = vsel %vm1331_vm11, %v1333_v59, %v1329_v9  ;;  %v1375_v5 = vpop.permute.xlu1 %1374  ;;  %1965 = vmatpush.msra.mxu1 %v4659_v32  ;;  %v4671_v48 = vld [vmem:[#allocation16 + $0x1c8] sm:$0xff]  ;;  %v4673_v8 = vld [vmem:[#allocation16 + $0x1d0] sm:$0xff]  ;;  %v4681_v46 = vld [vmem:[#allocation16 + $0x1a0] sm:$0xff] }
 0x1b3   : > { %v1357_v54 = vmul.f32 %v3267_v14, %v1315_v10  ;;  %v1356_v55 = vmul.f32 %v1334_v57, %v901_v47  ;;  %v1380_v20 = vmul.f32 %v1375_v5, %v901_v47  ;;  %vm1351_vm15 = vcmp.eq.f32.partialorder %v1350_v56, 8.507059e+37  ;;  %v4683_v47 = vld [vmem:[#allocation16 + $0x1a8] sm:$0xff]  ;;  %v4689_v57 = vld [vmem:[#allocation16 + $0x1b8] sm:$0xff] }
 0x1b4   : > { %v1344_v39 = vmul.f32 %v3265_v42, %v1343_v30  ;;  %1966 = vmatpush.msra.mxu1 %v4671_v48  ;;  %v4685_v30 = vld [vmem:[#allocation16 + $0x1b0] sm:$0xff]  ;;  %v4707_v56 = vld [vmem:[#allocation16 + $0x168] sm:$0xff] }
 0x1b5   : > { %v1358_v49 = vadd.f32 %v1357_v54, %v1356_v55  ;;  %v3367_v54 = vld [vmem:[#allocation6] sm:$0xff]  ;;  %v4693_v55 = vld [vmem:[#allocation16 + $0x180] sm:$0xff]  ;;  %5465 = vst [vmem:[#allocation110_spill] sm:$0xff] %v4707_v56 }
 0x1b6   : > { %v1345_v51 = vadd.f32 %v3265_v42, %v1344_v39  ;;  %v1377_v62 = vmul.f32 %v3367_v54, %v1375_v5  ;;  %v4665_v5 = vld [vmem:[#allocation16 + $0x1f8] sm:$0xff]  ;;  %1967 = vmatpush.msra.mxu1 %v4683_v47  ;;  %v4729_v54 = vld [vmem:[#allocation16 + $0x120] sm:$0xff] }
 0x1b7   : > { %3268 = vtanh.f32 %v1358_v49  ;;  %v1379_v12 = vmul.f32 %v1368_v33, %v1358_v49  ;;  %v4657_v49 = vld [vmem:[#allocation16 + $0x1e0] sm:$0xff]  ;;  %2005 = vmatpush.msra.mxu3 %v4665_v5  ;;  %5472 = vst [vmem:[#allocation117_spill] sm:$0xff] %v4729_v54 }
 0x1b8   : > { %v1349_v0 = vsel %vm1348_vm14, %v3265_v42, %v1345_v51  ;;  %v4661_v42 = vld [vmem:[#allocation16 + $0x1f0] sm:$0xff]  ;;  %1945 = vmatpush.msra.mxu0 %v4657_v49 }
 0x1b9   : > { %v4648_v63 = vadd.f32 %v1380_v20, %v1379_v12  ;;  %v1354_v9 = vsel %vm1351_vm15, %v1353_v22, %v1349_v0  ;;  %1985 = vmatpush.msra.mxu2 %v4661_v42  ;;  %2006 = vmatpush.msra.mxu3 %v4677_v31  ;;  %v4695_v20 = vld [vmem:[#allocation16 + $0x188] sm:$0xff]  ;;  %v4697_v51 = vld [vmem:[#allocation16 + $0x190] sm:$0xff]  ;;  %v4705_v12 = vld [vmem:[#allocation16 + $0x160] sm:$0xff] }
 0x1ba   : > { %1968 = vmatpush.msra.mxu1 %v4695_v20  ;;  %5464 = vst [vmem:[#allocation109_spill] sm:$0xff] %v4705_v12  ;;  %v4709_v0 = vld [vmem:[#allocation16 + $0x170] sm:$0xff]  ;;  %v4713_v22 = vld [vmem:[#allocation16 + $0x178] sm:$0xff] }
 0x1bb   : > { %5462 = vst [vmem:[#allocation107_spill] sm:$0xff] %v4648_v63  ;;  %1986 = vmatpush.msra.mxu2 %v4673_v8  ;;  %2007 = vmatpush.msra.mxu3 %v4689_v57  ;;  %v4737_v63 = vld [vmem:[#allocation16 + $0x138] sm:$0xff] }
 0x1bc   : > { %5466 = vst [vmem:[#allocation111_spill] sm:$0xff] %v4709_v0  ;;  %1969 = vmatpush.msra.mxu1 %v4707_v56  ;;  %v4759_v56 = vld [vmem:[#allocation16 + $0xf0] sm:$0xff] }
 0x1bd   : > { %v3269_v59 = vpop.eup %3268  ;;  %1987 = vmatpush.msra.mxu2 %v4685_v30  ;;  %2008 = vmatpush.msra.mxu3 %v4701_v27  ;;  %5467 = vst [vmem:[#allocation112_spill] sm:$0xff] %v4713_v22 }
 0x1be   : > { %v1360_v10 = vmul.f32 %v3269_v59, %v1354_v9  ;;  %v4717_v59 = vld [vmem:[#allocation16 + $0x140] sm:$0xff]  ;;  %v4719_v9 = vld [vmem:[#allocation16 + $0x148] sm:$0xff]  ;;  %5475 = vst [vmem:[#allocation120_spill] sm:$0xff] %v4737_v63 }
 0x1bf   : > { %1988 = vmatpush.msra.mxu2 %v4697_v51  ;;  %2009 = vmatpush.msra.mxu3 %v4713_v22  ;;  %5468 = vst [vmem:[#allocation113_spill] sm:$0xff] %v4717_v59  ;;  %v4745_v22 = vld [vmem:[#allocation16 + $0x110] sm:$0xff] }
 0x1c0   : > { %v1370_v14 = vmul.f32 %v1368_v33, %v1360_v10  ;;  %v4669_v33 = vld [vmem:[#allocation16 + $0x1c0] sm:$0xff]  ;;  %5469 = vst [vmem:[#allocation114_spill] sm:$0xff] %v4719_v9  ;;  %v4721_v10 = vld [vmem:[#allocation16 + $0x150] sm:$0xff]  ;;  %1970 = vmatpush.msra.mxu1 %v4719_v9 }
 0x1c1   : > { %1946 = vmatpush.msra.mxu0 %v4669_v33  ;;  %1989 = vmatpush.msra.mxu2 %v4709_v0  ;;  %5470 = vst [vmem:[#allocation115_spill] sm:$0xff] %v4721_v10 }
 0x1c2   : > { %v4650_v39 = vadd.f32 %v1377_v62, %v1370_v14  ;;  %3068 = vst [vmem:[%s3944_s24 + $0x18] sm:$0xff] %v1370_v14  ;;  %v4725_v14 = vld [vmem:[#allocation16 + $0x158] sm:$0xff]  ;;  %v4731_v62 = vld [vmem:[#allocation16 + $0x128] sm:$0xff] }
 0x1c3   : > { %1947 = vmatpush.msra.mxu0 %v4681_v46  ;;  %5471 = vst [vmem:[#allocation116_spill] sm:$0xff] %v4725_v14  ;;  %1990 = vmatpush.msra.mxu2 %v4721_v10  ;;  %v4741_v10 = vld [vmem:[#allocation16 + $0x100] sm:$0xff] }
 0x1c4   : > { %5463 = vst [vmem:[#allocation108_spill] sm:$0xff] %v4650_v39  ;;  %1627 = vmatmul.f32.vlgmr.msrb.gmra.mxu0 %v4650_v39  ;;  %1647 = vmatmul.f32.vlgmr.msrb.gmra.mxu1 %v4650_v39 }
 0x1c5   : > { %1667 = vmatmul.f32.vlgmr.msrb.gmra.mxu2 %v4650_v39  ;;  %1687 = vmatmul.f32.vlgmr.msrb.gmra.mxu3 %v4650_v39  ;;  %5473 = vst [vmem:[#allocation118_spill] sm:$0xff] %v4731_v62  ;;  %v4733_v39 = vld [vmem:[#allocation16 + $0x130] sm:$0xff] }
 0x1c6   : > { %1948 = vmatpush.msra.mxu0 %v4693_v55  ;;  %2010 = vmatpush.msra.mxu3 %v4725_v14  ;;  %5474 = vst [vmem:[#allocation119_spill] sm:$0xff] %v4733_v39  ;;  %v4743_v14 = vld [vmem:[#allocation16 + $0x108] sm:$0xff] }
 0x1c7   : > { %1971 = vmatpush.msra.mxu1 %v4731_v62  ;;  %1991 = vmatpush.msra.mxu2 %v4733_v39  ;;  %v4751_v62 = vld [vmem:[#allocation16 + $0x118] sm:$0xff]  ;;  %v4757_v39 = vld [vmem:[#allocation16 + $0xe8] sm:$0xff]  ;;  %5478 = vst [vmem:[#allocation123_spill] sm:$0xff] %v4759_v56 }
 0x1c8   : > { %1949 = vmatpush.msra.mxu0 %v4705_v12  ;;  %2011 = vmatpush.msra.mxu3 %v4737_v63  ;;  %5476 = vst [vmem:[#allocation121_spill] sm:$0xff] %v4751_v62  ;;  %v4755_v63 = vld [vmem:[#allocation16 + $0xe0] sm:$0xff] }
 0x1c9   : > { %1972 = vmatpush.msra.mxu1 %v4743_v14  ;;  %1992 = vmatpush.msra.mxu2 %v4745_v22  ;;  %5477 = vst [vmem:[#allocation122_spill] sm:$0xff] %v4757_v39 }
 0x1ca   : > { %1950 = vmatpush.msra.mxu0 %v4717_v59  ;;  %2012 = vmatpush.msra.mxu3 %v4751_v62  ;;  %v4771_v62 = vld [vmem:[#allocation16 + $0xd0] sm:$0xff] }
 0x1cb   : > { %1973 = vmatpush.msra.mxu1 %v4757_v39  ;;  %1993 = vmatpush.msra.mxu2 %v4759_v56  ;;  %v4781_v56 = vld [vmem:[#allocation16 + $0xa8] sm:$0xff]  ;;  %v4783_v39 = vld [vmem:[#allocation16 + $0xb0] sm:$0xff] }
 0x1cc   : > { %1951 = vmatpush.msra.mxu0 %v4729_v54  ;;  %5482 = vst [vmem:[#allocation127_spill] sm:$0xff] %v4783_v39 }
 0x1cd   : > { %1994 = vmatpush.msra.mxu2 %v4771_v62 }
 0x1ce   : > { %1952 = vmatpush.msra.mxu0 %v4741_v10 }
 0x1cf   : > { %1995 = vmatpush.msra.mxu2 %v4783_v39 }
 0x1d0   : > { %1953 = vmatpush.msra.mxu0 %v4755_v63 }
 0x1d1   : > { %1996 = vmatpush.msra.mxu2 %v4292_v7 }
 0x1d3   : > { %1997 = vmatpush.msra.mxu2 %v4304_v60 }
 0x1d5   : > { %1998 = vmatpush.msra.mxu2 %v4320_v19 }
 0x1d7   : > { %1999 = vmatpush.msra.mxu2 %v4334_v37 }
 0x1d9   : > { %2000 = vmatpush.msra.mxu2 %v4346_v45  ;;  %v5489_v45 = vld [vmem:[#allocation59_spill] sm:$0xff] }
 0x1db   : > { %2133 = vmatpush.msrb.mxu2 %v4362_v4  ;;  %v5491_v4 = vld [vmem:[#allocation61_spill] sm:$0xff] }
 0x21b   : > { %v1500_v9 = vpop.f32.mrf.mxu1 }
 0x21c   : > { %v1480_v59 = vpop.f32.mrf.mxu0  ;;  %v1544_v54 = vadd.f32 %v1500_v9, %v4168_v24  ;;  %v4763_v24 = vld [vmem:[#allocation16 + $0xf8] sm:$0xff]  ;;  %v4769_v9 = vld [vmem:[#allocation16 + $0xc8] sm:$0xff] }
 0x21d   : > { %v1543_v0 = vadd.f32 %v1480_v59, %v4165_v23  ;;  %5479 = vst [vmem:[#allocation124_spill] sm:$0xff] %v4763_v24  ;;  %2013 = vmatpush.msra.mxu3 %v4763_v24  ;;  %v4767_v59 = vld [vmem:[#allocation16 + $0xc0] sm:$0xff]  ;;  %1974 = vmatpush.msra.mxu1 %v4769_v9 }
 0x21e   : > { %v3070_v23 = vmul.f32 -1.442695, %v1544_v54  ;;  %5480 = vst [vmem:[#allocation125_spill] sm:$0xff] %v4769_v9  ;;  %1954 = vmatpush.msra.mxu0 %v4767_v59  ;;  %v4779_v24 = vld [vmem:[#allocation16 + $0xa0] sm:$0xff]  ;;  %v4788_v9 = vld [vmem:[#allocation16 + $0xb8] sm:$0xff] }
 0x21f   : > { %v3069_v12 = vmul.f32 -1.442695, %v1543_v0  ;;  %v4775_v0 = vld [vmem:[#allocation16 + $0xd8] sm:$0xff]  ;;  %1975 = vmatpush.msra.mxu1 %v4781_v56 }
 0x220   : > { %5481 = vst [vmem:[#allocation126_spill] sm:$0xff] %v4775_v0  ;;  %2014 = vmatpush.msra.mxu3 %v4775_v0  ;;  %1955 = vmatpush.msra.mxu0 %v4779_v24 }
 0x221   : > { %3270 = vpow2.f32 %v3069_v12  ;;  %1976 = vmatpush.msra.mxu1 %v4290_v6 }
 0x222   : > { %3272 = vpow2.f32 %v3070_v23  ;;  %2015 = vmatpush.msra.mxu3 %v4788_v9  ;;  %1956 = vmatpush.msra.mxu0 %v4288_v58  ;;  %v1520_v58 = vpop.f32.mrf.mxu2 }
 0x223   : > { %v1540_v54 = vpop.f32.mrf.mxu3  ;;  %1977 = vmatpush.msra.mxu1 %v4302_v29 }
 0x224   : > { %v1546_v12 = vadd.f32 %v1540_v54, %v4197_v35  ;;  %2016 = vmatpush.msra.mxu3 %v4296_v17  ;;  %1957 = vmatpush.msra.mxu0 %v4300_v15  ;;  %v1545_v15 = vadd.f32 %v1520_v58, %v4194_v34  ;;  %v5493_v58 = vld [vmem:[#allocation63_spill] sm:$0xff] }
 0x225   : > { %1978 = vmatpush.msra.mxu1 %v4318_v13  ;;  %v5484_v13 = vld [vmem:[#allocation54_spill] sm:$0xff] }
 0x226   : > { %v3071_v23 = vmul.f32 -1.442695, %v1546_v12  ;;  %2017 = vmatpush.msra.mxu3 %v4308_v2  ;;  %1958 = vmatpush.msra.mxu0 %v4316_v11  ;;  %v5483_v11 = vld [vmem:[#allocation53_spill] sm:$0xff] }
 0x227   : > { %v3271_v0 = vpop.eup %3270  ;;  %1979 = vmatpush.msra.mxu1 %v4332_v36  ;;  %2134 = vmatpush.msrb.mxu2 %v5483_v11  ;;  %v5486_v36 = vld [vmem:[#allocation56_spill] sm:$0xff] }
 0x228   : > { %v3273_v35 = vpop.eup %3272  ;;  %v4796_v54 = vadd.f32 1.0, %v3271_v0  ;;  %3274 = vpow2.f32 %v3071_v23  ;;  %2018 = vmatpush.msra.mxu3 %v4325_v21  ;;  %1959 = vmatpush.msra.mxu0 %v4330_v26  ;;  %v5485_v26 = vld [vmem:[#allocation55_spill] sm:$0xff]  ;;  %v5492_v0 = vld [vmem:[#allocation62_spill] sm:$0xff] }
 0x229   : > { %v4800_v39 = vadd.f32 1.0, %v3273_v35  ;;  %1980 = vmatpush.msra.mxu1 %v4344_v44 }
 0x22a   : > { %3276 = vrcp.f32 %v4796_v54  ;;  %2019 = vmatpush.msra.mxu3 %v4338_v38  ;;  %1960 = vmatpush.msra.mxu0 %v4342_v43  ;;  %v1711_v21 = vand.u32 2147483648, %v4796_v54  ;;  %v5488_v38 = vld [vmem:[#allocation58_spill] sm:$0xff]  ;;  %vm1705_vm2 = vweird.f32 %v4796_v54 }
 0x22b   : > { %3278 = vrcp.f32 %v4800_v39  ;;  %2113 = vmatpush.msrb.mxu1 %v4356_v18  ;;  %v1728_v44 = vand.u32 2147483647, %v4800_v39  ;;  %vm1724_vm3 = vweird.f32 %v4800_v39 }
 0x22c   : > { %2020 = vmatpush.msra.mxu3 %v4352_v52  ;;  %2093 = vmatpush.msrb.mxu0 %v4354_v53  ;;  %v5490_v52 = vld [vmem:[#allocation60_spill] sm:$0xff]  ;;  %v1712_v12 = vor.u32 1.1754944e-38, %v1711_v21 }
 0x22d   : > { %2114 = vmatpush.msrb.mxu1 %v4372_v61  ;;  %v5487_v61 = vld [vmem:[#allocation57_spill] sm:$0xff]  ;;  %vm1729_vm7 = vcmp.eq.f32.partialorder %v1728_v44, 8.507059e+37  ;;  %v4872_v44 = vpop.permute.xlu2 %1765 }
 0x22e   : > { %v3275_v6 = vpop.eup %3274  ;;  %2153 = vmatpush.msrb.mxu3 %v4364_v1  ;;  %2094 = vmatpush.msrb.mxu0 %v4370_v3  ;;  %v1730_v1 = vand.u32 2147483648, %v4800_v39  ;;  %v1709_v3 = vand.u32 2147483647, %v4796_v54 }
 0x22f   : > { %v4816_v7 = vadd.f32 1.0, %v3275_v6  ;;  %2115 = vmatpush.msrb.mxu1 %v5486_v36  ;;  %2135 = vmatpush.msrb.mxu2 %v5487_v61  ;;  %v5500_v61 = vld [vmem:[#allocation68_spill] sm:$0xff] }
 0x230   : > { %v3277_v17 = vpop.eup %3276  ;;  %2154 = vmatpush.msrb.mxu3 %v5484_v13  ;;  %2095 = vmatpush.msrb.mxu0 %v5485_v26  ;;  %vm1710_vm6 = vcmp.eq.f32.partialorder %v1709_v3, 8.507059e+37  ;;  %v5496_v13 = vld [vmem:[#allocation66_spill] sm:$0xff] }
 0x231   : > { %v3279_v29 = vpop.eup %3278  ;;  %v1701_v60 = vmul.f32 %v3277_v17, %v4796_v54  ;;  %3280 = vrcp.f32 %v4816_v7  ;;  %vm1706_vm0 = vweird.f32 %v3277_v17  ;;  %2116 = vmatpush.msrb.mxu1 %v5490_v52  ;;  %2136 = vmatpush.msrb.mxu2 %v5491_v4  ;;  %v1731_v54 = vor.u32 1.1754944e-38, %v1730_v1  ;;  %v5498_v1 = vld [vmem:[#allocation49_spill] sm:$0xff] }
 0x232   : > { %v1720_v2 = vmul.f32 %v3279_v29, %v4800_v39  ;;  %3282 = vtanh.f32 %v1545_v15  ;;  %2155 = vmatpush.msrb.mxu3 %v5488_v38  ;;  %vm1725_vm1 = vweird.f32 %v3279_v29  ;;  %2096 = vmatpush.msrb.mxu0 %v5489_v45  ;;  %vm1707_vm4 = vmor %vm1705_vm2, %vm1706_vm0  ;;  %v5494_v15 = vld [vmem:[#allocation64_spill] sm:$0xff]  ;;  %v5501_v38 = vld [vmem:[#allocation69_spill] sm:$0xff]  ;;  %vm1744_vm9 = vweird.f32 %v4816_v7 }
 0x233   : > { %v1702_v34 = vsub.f32 1.0, %v1701_v60  ;;  %2117 = vmatpush.msrb.mxu1 %v5493_v58  ;;  %vm1726_vm5 = vmor %vm1724_vm3, %vm1725_vm1  ;;  %2137 = vmatpush.msrb.mxu2 %v5494_v15  ;;  %v5495_v60 = vld [vmem:[#allocation65_spill] sm:$0xff]  ;;  %v5508_v58 = vld [vmem:[#allocation76_spill] sm:$0xff] }
 0x234   : > { %v1721_v19 = vsub.f32 1.0, %v1720_v2  ;;  %2156 = vmatpush.msrb.mxu3 %v5492_v0  ;;  %2097 = vmatpush.msrb.mxu0 %v4424_v50  ;;  %v5505_v4 = vld [vmem:[#allocation73_spill] sm:$0xff]  ;;  %v1750_v0 = vand.u32 2147483648, %v4816_v7  ;;  %v5512_v15 = vld [vmem:[#allocation78_spill] sm:$0xff] }
 0x235   : > { %v1703_v37 = vmul.f32 %v3277_v17, %v1702_v34  ;;  %2118 = vmatpush.msrb.mxu1 %v5496_v13  ;;  %2138 = vmatpush.msrb.mxu2 %v4453_v41  ;;  %v5516_v13 = vld [vmem:[#allocation52_spill] sm:$0xff] }
 0x236   : > { %v1722_v43 = vmul.f32 %v3279_v29, %v1721_v19  ;;  %2157 = vmatpush.msrb.mxu3 %v5495_v60  ;;  %2098 = vmatpush.msrb.mxu0 %v4449_v40  ;;  %v5513_v60 = vld [vmem:[#allocation79_spill] sm:$0xff] }
 0x237   : > { %v4842_v53 = vpop.eup %3280  ;;  %v1704_v18 = vadd.f32 %v3277_v17, %v1703_v37  ;;  %v5499_v37 = vld [vmem:[#allocation50_spill] sm:$0xff]  ;;  %2139 = vmatpush.msrb.mxu2 %v5500_v61  ;;  %v5523_v61 = vld [vmem:[#allocation88_spill] sm:$0xff] }
 0x238   : > { %v1723_v23 = vadd.f32 %v3279_v29, %v1722_v43  ;;  %v1740_v35 = vmul.f32 %v4842_v53, %v4816_v7  ;;  %v3283_v39 = vpop.eup %3282  ;;  %2158 = vmatpush.msrb.mxu3 %v4468_v16  ;;  %2099 = vmatpush.msrb.mxu0 %v4475_v25  ;;  %v5502_v16 = vld [vmem:[#allocation70_spill] sm:$0xff]  ;;  %v5503_v43 = vld [vmem:[#allocation71_spill] sm:$0xff]  ;;  %vm1745_vm8 = vweird.f32 %v4842_v53 }
 0x239   : > { %v1708_v6 = vsel %vm1707_vm4, %v3277_v17, %v1704_v18  ;;  %v5504_v18 = vld [vmem:[#allocation72_spill] sm:$0xff]  ;;  %vm4886_vm10 = vmor %vm1744_vm9, %vm1745_vm8 }
 0x23a   : > { %v1713_v2 = vsel %vm1710_vm6, %v1712_v12, %v1708_v6  ;;  %v1727_v34 = vsel %vm1726_vm5, %v3279_v29, %v1723_v23  ;;  %v1741_v11 = vsub.f32 1.0, %v1740_v35  ;;  %v5497_v29 = vld [vmem:[#allocation67_spill] sm:$0xff]  ;;  %2159 = vmatpush.msrb.mxu3 %v5501_v38  ;;  %2100 = vmatpush.msrb.mxu0 %v5502_v16  ;;  %v5506_v12 = vld [vmem:[#allocation74_spill] sm:$0xff]  ;;  %v1748_v35 = vand.u32 2147483647, %v4816_v7  ;;  %v5514_v7 = vld [vmem:[#allocation80_spill] sm:$0xff] }
 0x23b   : > { %v1732_v50 = vsel %vm1729_vm7, %v1731_v54, %v1727_v34  ;;  %v1755_v19 = vmul.f32 %v3283_v39, %v1713_v2  ;;  %2119 = vmatpush.msrb.mxu1 %v5497_v29  ;;  %2140 = vmatpush.msrb.mxu2 %v5504_v18  ;;  %v5507_v23 = vld [vmem:[#allocation75_spill] sm:$0xff]  ;;  %v5509_v54 = vld [vmem:[#allocation77_spill] sm:$0xff]  ;;  %v5532_v6 = vld [vmem:[#allocation96_spill] sm:$0xff] }
 0x23c   : > { %v1754_v17 = vmul.f32 %v1732_v50, %v4541_v28  ;;  %v1742_v21 = vmul.f32 %v4842_v53, %v1741_v11  ;;  %2160 = vmatpush.msrb.mxu3 %v5505_v4  ;;  %2101 = vmatpush.msrb.mxu0 %v5506_v12  ;;  %v5515_v34 = vld [vmem:[#allocation81_spill] sm:$0xff]  ;;  %v1751_v11 = vor.u32 1.1754944e-38, %v1750_v0  ;;  %vm1749_vm11 = vcmp.eq.f32.partialorder %v1748_v35, 8.507059e+37  ;;  %v5527_v0 = vld [vmem:[#allocation92_spill] sm:$0xff] }
 0x23d   : > { %2120 = vmatpush.msrb.mxu1 %v5503_v43  ;;  %2141 = vmatpush.msrb.mxu2 %v5508_v58  ;;  %v5524_v38 = vld [vmem:[#allocation89_spill] sm:$0xff]  ;;  %v5530_v58 = vld [vmem:[#allocation94_spill] sm:$0xff] }
 0x23e   : > { %v4868_v41 = vadd.f32 %v1755_v19, %v1754_v17  ;;  %v1743_v25 = vadd.f32 %v4842_v53, %v1742_v21  ;;  %2161 = vmatpush.msrb.mxu3 %v5509_v54  ;;  %2102 = vmatpush.msrb.mxu0 %v5512_v15  ;;  %v5517_v19 = vld [vmem:[#allocation82_spill] sm:$0xff]  ;;  %v5518_v17 = vld [vmem:[#allocation83_spill] sm:$0xff]  ;;  %v5519_v21 = vld [vmem:[#allocation84_spill] sm:$0xff] }
 0x23f   : > { %2121 = vmatpush.msrb.mxu1 %v5507_v23  ;;  %2142 = vmatpush.msrb.mxu2 %v5514_v7  ;;  %v5528_v12 = vld [vmem:[#allocation93_spill] sm:$0xff]  ;;  %v5529_v23 = vld [vmem:[#allocation100_spill] sm:$0xff]  ;;  %v5531_v54 = vld [vmem:[#allocation95_spill] sm:$0xff] }
 0x240   : > { %3284 = vtanh.f32 %v4868_v41  ;;  %v1747_v39 = vsel %vm4886_vm10, %v4842_v53, %v1743_v25  ;;  %2162 = vmatpush.msrb.mxu3 %v5515_v34  ;;  %2103 = vmatpush.msrb.mxu0 %v5517_v19  ;;  %v5525_v25 = vld [vmem:[#allocation90_spill] sm:$0xff]  ;;  %v5533_v15 = vld [vmem:[#allocation97_spill] sm:$0xff] }
 0x241   : > { %v1628_v26 = vpop.f32.mrf.mxu0  ;;  %v1648_v36 = vpop.f32.mrf.mxu1  ;;  %2122 = vmatpush.msrb.mxu1 %v5513_v60  ;;  %2143 = vmatpush.msrb.mxu2 %v5519_v21  ;;  %v1752_v53 = vsel %vm1749_vm11, %v1751_v11, %v1747_v39  ;;  %v5534_v39 = vld [vmem:[#allocation98_spill] sm:$0xff]  ;;  %v5536_v34 = vld [vmem:[#allocation101_spill] sm:$0xff] }
 0x242   : > { %v1691_v40 = vadd.f32 %v1628_v26, %v5498_v1  ;;  %v1692_v3 = vadd.f32 %v1648_v36, %v5499_v37  ;;  %v5520_v26 = vld [vmem:[#allocation85_spill] sm:$0xff]  ;;  %v5521_v1 = vld [vmem:[#allocation86_spill] sm:$0xff] }
 0x243   : > { %2123 = vmatpush.msrb.mxu1 %v5518_v17  ;;  %2163 = vmatpush.msrb.mxu3 %v5520_v26  ;;  %v5537_v11 = vld [vmem:[#allocation102_spill] sm:$0xff]  ;;  %v5538_v17 = vld [vmem:[#allocation51_spill] sm:$0xff] }
 0x244   : > { %v3073_v45 = vmul.f32 -1.442695, %v1691_v40  ;;  %v3074_v52 = vmul.f32 -1.442695, %v1692_v3  ;;  %2104 = vmatpush.msrb.mxu0 %v5521_v1  ;;  %v5522_v40 = vld [vmem:[#allocation87_spill] sm:$0xff]  ;;  %2144 = vmatpush.msrb.mxu2 %v5523_v61  ;;  %v5541_v1 = vld [vmem:[#allocation105_spill] sm:$0xff] }
 0x245   : > { %2124 = vmatpush.msrb.mxu1 %v5522_v40  ;;  %2164 = vmatpush.msrb.mxu3 %v5524_v38  ;;  %v5539_v26 = vld [vmem:[#allocation103_spill] sm:$0xff]  ;;  %v5542_v40 = vld [vmem:[#allocation106_spill] sm:$0xff] }
 0x246   : > { %3286 = vpow2.f32 %v3073_v45  ;;  %v3285_v36 = vpop.eup %3284  ;;  %2105 = vmatpush.msrb.mxu0 %v5525_v25  ;;  %v5526_v45 = vld [vmem:[#allocation91_spill] sm:$0xff]  ;;  %2145 = vmatpush.msrb.mxu2 %v5527_v0 }
 0x247   : > { %3288 = vpow2.f32 %v3074_v52  ;;  %v1758_v3 = vmul.f32 %v3285_v36, %v1752_v53  ;;  %2125 = vmatpush.msrb.mxu1 %v5526_v45  ;;  %v4910_v52 = vpop.permute.xlu2 %1772  ;;  %2165 = vmatpush.msrb.mxu3 %v5528_v12  ;;  %v5540_v36 = vld [vmem:[#allocation104_spill] sm:$0xff]  ;;  %v5545_v0 = vld [vmem:[#allocation111_spill] sm:$0xff] }
 0x248   : > { %v1688_v2 = vpop.f32.mrf.mxu3  ;;  %v1775_v35 = vmul.f32 %v4910_v52, %v5529_v23  ;;  %2106 = vmatpush.msrb.mxu0 %v5530_v58  ;;  %2146 = vmatpush.msrb.mxu2 %v5532_v6  ;;  %v1668_v7 = vpop.f32.mrf.mxu2  ;;  %v5546_v12 = vld [vmem:[#allocation112_spill] sm:$0xff]  ;;  %v5549_v58 = vld [vmem:[#allocation114_spill] sm:$0xff] }
 0x249   : > { %v1694_v50 = vadd.f32 %v1688_v2, %v5516_v13  ;;  %v1768_v4 = vmul.f32 %v4872_v44, %v1758_v3  ;;  %2126 = vmatpush.msrb.mxu1 %v5531_v54  ;;  %2166 = vmatpush.msrb.mxu3 %v5533_v15  ;;  %v5535_v2 = vld [vmem:[#allocation99_spill] sm:$0xff]  ;;  %v1693_v21 = vadd.f32 %v1668_v7, %v5538_v17  ;;  %v5551_v6 = vld [vmem:[#allocation116_spill] sm:$0xff]  ;;  %v1851_v7 = vpop.permute.xlu0 %1850 }
 0x24a   : > { %2107 = vmatpush.msrb.mxu0 %v5534_v39  ;;  %2147 = vmatpush.msrb.mxu2 %v5536_v34  ;;  %v5550_v54 = vld [vmem:[#allocation115_spill] sm:$0xff]  ;;  %v5552_v39 = vld [vmem:[#allocation117_spill] sm:$0xff]  ;;  %v1858_v34 = vpop.permute.xlu1 %1857 }
 0x24b   : > { %v3075_v29 = vmul.f32 -1.442695, %v1694_v50  ;;  %3077 = vst [vmem:[%s3942_s4 + $0x8] sm:$0xff] %v1768_v4  ;;  %v4926_v60 = vadd.f32 %v1775_v35, %v1768_v4  ;;  %2127 = vmatpush.msrb.mxu1 %v5535_v2  ;;  %2167 = vmatpush.msrb.mxu3 %v5537_v11  ;;  %v5544_v4 = vld [vmem:[#allocation110_spill] sm:$0xff] }
 0x24c   : > { %v3287_v37 = vpop.eup %3286  ;;  %2108 = vmatpush.msrb.mxu0 %v5539_v26  ;;  %2148 = vmatpush.msrb.mxu2 %v5541_v1  ;;  %v5553_v2 = vld [vmem:[#allocation118_spill] sm:$0xff] }
 0x24d   : > { %v3289_v16 = vpop.eup %3288  ;;  %v4906_v43 = vadd.f32 1.0, %v3287_v37  ;;  %3290 = vpow2.f32 %v3075_v29  ;;  %1961 = vmatmul.f32.vlgmr.msra.gmra.mxu0 %v4926_v60  ;;  %1981 = vmatmul.f32.vlgmr.msra.gmra.mxu1 %v4926_v60  ;;  %v5557_v1 = vld [vmem:[#allocation122_spill] sm:$0xff] }
 0x24e   : > { %v4912_v18 = vadd.f32 1.0, %v3289_v16  ;;  %2001 = vmatmul.f32.vlgmr.msra.gmra.mxu2 %v4926_v60  ;;  %2021 = vmatmul.f32.vlgmr.msra.gmra.mxu3 %v4926_v60 }
 0x24f   : > { %3292 = vrcp.f32 %v4906_v43  ;;  %2128 = vmatpush.msrb.mxu1 %v5540_v36  ;;  %2168 = vmatpush.msrb.mxu3 %v5542_v40  ;;  %v1796_v38 = vand.u32 2147483648, %v4906_v43  ;;  %v1794_v25 = vand.u32 2147483647, %v4906_v43  ;;  %vm1790_vm14 = vweird.f32 %v4906_v43 }
 0x250   : > { %3294 = vrcp.f32 %v4912_v18  ;;  %2427 = vmatpush.msra.mxu0 %v4657_v49  ;;  %2467 = vmatpush.msra.mxu2 %v4661_v42  ;;  %v1815_v49 = vand.u32 2147483648, %v4912_v18  ;;  %v1813_v42 = vand.u32 2147483647, %v4912_v18  ;;  %vm1809_vm15 = vweird.f32 %v4912_v18 }
 0x251   : > { %2447 = vmatpush.msra.mxu1 %v4659_v32  ;;  %2487 = vmatpush.msra.mxu3 %v4665_v5  ;;  %vm1795_vm1 = vcmp.eq.f32.partialorder %v1794_v25, 8.507059e+37 }
 0x252   : > { %2428 = vmatpush.msra.mxu0 %v4669_v33  ;;  %2468 = vmatpush.msra.mxu2 %v4673_v8  ;;  %vm1814_vm3 = vcmp.eq.f32.partialorder %v1813_v42, 8.507059e+37  ;;  %v5565_v42 = vld [vmem:[#allocation34_spill] sm:$0xff] }
 0x253   : > { %v3291_v13 = vpop.eup %3290  ;;  %2448 = vmatpush.msra.mxu1 %v4671_v48  ;;  %2488 = vmatpush.msra.mxu3 %v4677_v31  ;;  %v1797_v48 = vor.u32 1.1754944e-38, %v1796_v38  ;;  %v5562_v38 = vld [vmem:[#allocation127_spill] sm:$0xff] }
 0x254   : > { %v4934_v50 = vadd.f32 1.0, %v3291_v13  ;;  %2429 = vmatpush.msra.mxu0 %v4681_v46  ;;  %2469 = vmatpush.msra.mxu2 %v4685_v30  ;;  %v5554_v13 = vld [vmem:[#allocation119_spill] sm:$0xff] }
 0x255   : > { %v3293_v19 = vpop.eup %3292  ;;  %2449 = vmatpush.msra.mxu1 %v4683_v47  ;;  %2489 = vmatpush.msra.mxu3 %v4689_v57  ;;  %v1816_v47 = vor.u32 1.1754944e-38, %v1815_v49 }
 0x256   : > { %v3295_v29 = vpop.eup %3294  ;;  %v1786_v53 = vmul.f32 %v3293_v19, %v4906_v43  ;;  %3296 = vrcp.f32 %v4934_v50  ;;  %vm1791_vm12 = vweird.f32 %v3293_v19  ;;  %2430 = vmatpush.msra.mxu0 %v4693_v55  ;;  %2470 = vmatpush.msra.mxu2 %v4697_v51  ;;  %v5547_v51 = vld [vmem:[#allocation107_spill] sm:$0xff]  ;;  %vm1829_vm5 = vweird.f32 %v4934_v50 }
 0x257   : > { %v1805_v37 = vmul.f32 %v3295_v29, %v4912_v18  ;;  %3298 = vtanh.f32 %v1693_v21  ;;  %vm1810_vm13 = vweird.f32 %v3295_v29  ;;  %vm1792_vm0 = vmor %vm1790_vm14, %vm1791_vm12  ;;  %2450 = vmatpush.msra.mxu1 %v4695_v20  ;;  %2490 = vmatpush.msra.mxu3 %v4701_v27  ;;  %v5543_v18 = vld [vmem:[#allocation109_spill] sm:$0xff]  ;;  %v1863_v17 = vmul.f32 %v1858_v34, %v5547_v51 }
 0x258   : > { %v1787_v3 = vsub.f32 1.0, %v1786_v53  ;;  %vm1811_vm2 = vmor %vm1809_vm15, %vm1810_vm13  ;;  %2431 = vmatpush.msra.mxu0 %v5543_v18  ;;  %2471 = vmatpush.msra.mxu2 %v5545_v0  ;;  %v5548_v27 = vld [vmem:[#allocation113_spill] sm:$0xff]  ;;  %v1835_v21 = vand.u32 2147483648, %v4934_v50  ;;  %v1833_v36 = vand.u32 2147483647, %v4934_v50  ;;  %v2376_v18 = vld [vmem:[#allocation16 + $0x68] sm:$0xff] }
 0x259   : > { %v1806_v61 = vsub.f32 1.0, %v1805_v37  ;;  %2451 = vmatpush.msra.mxu1 %v5544_v4  ;;  %2491 = vmatpush.msra.mxu3 %v5546_v12  ;;  %v2377_v4 = vld [vmem:[#allocation16 + $0x70] sm:$0xff] }
 0x25a   : > { %v1788_v16 = vmul.f32 %v3293_v19, %v1787_v3  ;;  %2432 = vmatpush.msra.mxu0 %v5548_v27  ;;  %2472 = vmatpush.msra.mxu2 %v5550_v54  ;;  %v1836_v37 = vor.u32 1.1754944e-38, %v1835_v21  ;;  %vm1834_vm7 = vcmp.eq.f32.partialorder %v1833_v36, 8.507059e+37  ;;  %v2367_v54 = vld [vmem:[#allocation16 + $0x20] sm:$0xff]  ;;  %v2574_v36 = vld [vmem:[#allocation16 + $0x3f8] sm:$0xff] }
 0x25b   : > { %v1807_v32 = vmul.f32 %v3295_v29, %v1806_v61  ;;  %2452 = vmatpush.msra.mxu1 %v5549_v58  ;;  %2492 = vmatpush.msra.mxu3 %v5551_v6  ;;  %v2374_v58 = vld [vmem:[#allocation16 + $0x58] sm:$0xff]  ;;  %v2368_v6 = vld [vmem:[#allocation16 + $0x28] sm:$0xff] }
 0x25c   : > { %v4960_v5 = vpop.eup %3296  ;;  %v1789_v33 = vadd.f32 %v3293_v19, %v1788_v16  ;;  %2433 = vmatpush.msra.mxu0 %v5552_v39  ;;  %2473 = vmatpush.msra.mxu2 %v5554_v13  ;;  %v5563_v16 = vld [vmem:[#allocation108_spill] sm:$0xff] }
 0x25d   : > { %v1825_v8 = vmul.f32 %v4960_v5, %v4934_v50  ;;  %v1808_v31 = vadd.f32 %v3295_v29, %v1807_v32  ;;  %v3299_v30 = vpop.eup %3298  ;;  %2453 = vmatpush.msra.mxu1 %v5553_v2  ;;  %vm1830_vm4 = vweird.f32 %v4960_v5  ;;  %v5561_v50 = vld [vmem:[#allocation126_spill] sm:$0xff]  ;;  %v2370_v39 = vld [vmem:[#allocation16 + $0x38] sm:$0xff]  ;;  %v2363_v2 = vld [vmem:[#allocation16] sm:$0xff] }
 0x25e   : > { %v1793_v46 = vsel %vm1792_vm0, %v3293_v19, %v1789_v33  ;;  %v5555_v19 = vld [vmem:[#allocation120_spill] sm:$0xff]  ;;  %2434 = vmatpush.msra.mxu0 %v4741_v10  ;;  %2474 = vmatpush.msra.mxu2 %v4745_v22  ;;  %vm1831_vm6 = vmor %vm1829_vm5, %vm1830_vm4  ;;  %v5558_v10 = vld [vmem:[#allocation123_spill] sm:$0xff] }
 0x25f   : > { %v1798_v57 = vsel %vm1795_vm1, %v1797_v48, %v1793_v46  ;;  %v1826_v43 = vsub.f32 1.0, %v1825_v8  ;;  %v1812_v45 = vsel %vm1811_vm2, %v3295_v29, %v1808_v31  ;;  %2493 = vmatpush.msra.mxu3 %v5555_v19  ;;  %2454 = vmatpush.msra.mxu1 %v4743_v14  ;;  %v5556_v29 = vld [vmem:[#allocation121_spill] sm:$0xff]  ;;  %v5559_v14 = vld [vmem:[#allocation124_spill] sm:$0xff] }
 0x260   : > { %v1840_v55 = vmul.f32 %v3299_v30, %v1798_v57  ;;  %v1817_v20 = vsel %vm1814_vm3, %v1816_v47, %v1812_v45  ;;  %2435 = vmatpush.msra.mxu0 %v4755_v63  ;;  %2475 = vmatpush.msra.mxu2 %v5558_v10  ;;  %v5560_v22 = vld [vmem:[#allocation125_spill] sm:$0xff]  ;;  %v5566_v8 = vld [vmem:[#allocation36_spill] sm:$0xff]  ;;  %v2380_v47 = vld [vmem:[#allocation16 + $0x88] sm:$0xff] }
 0x261   : > { %v1827_v23 = vmul.f32 %v4960_v5, %v1826_v43  ;;  %v1839_v35 = vmul.f32 %v1817_v20, %v5547_v51  ;;  %2494 = vmatpush.msra.mxu3 %v5556_v29  ;;  %2455 = vmatpush.msra.mxu1 %v5557_v1  ;;  %v2379_v46 = vld [vmem:[#allocation16 + $0x80] sm:$0xff]  ;;  %v2381_v30 = vld [vmem:[#allocation16 + $0x90] sm:$0xff]  ;;  %v2382_v57 = vld [vmem:[#allocation16 + $0x98] sm:$0xff] }
 0x262   : > { %2436 = vmatpush.msra.mxu0 %v4767_v59  ;;  %2476 = vmatpush.msra.mxu2 %v4771_v62  ;;  %v1860_v59 = vmul.f32 %v1858_v34, %v5563_v16  ;;  %v2375_v45 = vld [vmem:[#allocation16 + $0x60] sm:$0xff]  ;;  %v2378_v20 = vld [vmem:[#allocation16 + $0x78] sm:$0xff]  ;;  %v2372_v51 = vld [vmem:[#allocation16 + $0x48] sm:$0xff] }
 0x263   : > { %v1841_v15 = vadd.f32 %v1840_v55, %v1839_v35  ;;  %v1828_v11 = vadd.f32 %v4960_v5, %v1827_v23  ;;  %2495 = vmatpush.msra.mxu3 %v5559_v14  ;;  %2456 = vmatpush.msra.mxu1 %v5560_v22  ;;  %v2371_v23 = vld [vmem:[#allocation16 + $0x40] sm:$0xff]  ;;  %v2373_v35 = vld [vmem:[#allocation16 + $0x50] sm:$0xff]  ;;  %v2366_v13 = vld [vmem:[#allocation16 + $0x18] sm:$0xff] }
 0x264   : > { %2437 = vmatpush.msra.mxu0 %v4779_v24  ;;  %2477 = vmatpush.msra.mxu2 %v5562_v38  ;;  %v5564_v24 = vld [vmem:[#allocation33_spill] sm:$0xff]  ;;  %v2365_v34 = vld [vmem:[#allocation16 + $0x10] sm:$0xff]  ;;  %v2564_v38 = vld [vmem:[#allocation16 + $0x3a8] sm:$0xff] }
 0x265   : > { %3300 = vtanh.f32 %v1841_v15  ;;  %v1862_v26 = vmul.f32 %v1851_v7, %v1841_v15  ;;  %v1832_v40 = vsel %vm1831_vm6, %v4960_v5, %v1828_v11  ;;  %2496 = vmatpush.msra.mxu3 %v5561_v50  ;;  %2457 = vmatpush.msra.mxu1 %v4781_v56  ;;  %v2369_v15 = vld [vmem:[#allocation16 + $0x30] sm:$0xff]  ;;  %v2571_v19 = vld [vmem:[#allocation16 + $0x3e0] sm:$0xff]  ;;  %v2570_v50 = vld [vmem:[#allocation16 + $0x3d8] sm:$0xff] }
 0x266   : > { %v1837_v3 = vsel %vm1834_vm7, %v1836_v37, %v1832_v40  ;;  %2438 = vmatpush.msra.mxu0 %v2379_v46  ;;  %2478 = vmatpush.msra.mxu2 %v2381_v30  ;;  %v2567_v1 = vld [vmem:[#allocation16 + $0x3c0] sm:$0xff]  ;;  %v2568_v40 = vld [vmem:[#allocation16 + $0x3c8] sm:$0xff]  ;;  %v2569_v10 = vld [vmem:[#allocation16 + $0x3d0] sm:$0xff] }
 0x267   : > { %v4998_v53 = vadd.f32 %v1863_v17, %v1862_v26  ;;  %2497 = vmatpush.msra.mxu3 %v4788_v9  ;;  %2458 = vmatpush.msra.mxu1 %v2380_v47  ;;  %v2572_v17 = vld [vmem:[#allocation16 + $0x3e8] sm:$0xff]  ;;  %v2573_v26 = vld [vmem:[#allocation16 + $0x3f0] sm:$0xff]  ;;  %v2555_v46 = vld [vmem:[#allocation16 + $0x360] sm:$0xff] }
 0x268   : > { %2439 = vmatpush.msra.mxu0 %v2375_v45  ;;  %2479 = vmatpush.msra.mxu2 %v2377_v4  ;;  %v5567_v37 = vld [vmem:[#allocation35_spill] sm:$0xff]  ;;  %v1778_v45 = vmul.f32 %v4910_v52, %v4541_v28  ;;  %v2551_v4 = vld [vmem:[#allocation16 + $0x340] sm:$0xff] }
 0x269   : > { %2498 = vmatpush.msra.mxu3 %v2382_v57  ;;  %2459 = vmatpush.msra.mxu1 %v2376_v18  ;;  %v2565_v16 = vld [vmem:[#allocation16 + $0x3b0] sm:$0xff]  ;;  %v2558_v57 = vld [vmem:[#allocation16 + $0x378] sm:$0xff] }
 0x26a   : > { %2440 = vmatpush.msra.mxu0 %v2371_v23  ;;  %2480 = vmatpush.msra.mxu2 %v2373_v35 }
 0x26b   : > { %v3301_v63 = vpop.eup %3300  ;;  %2499 = vmatpush.msra.mxu3 %v2378_v20  ;;  %2460 = vmatpush.msra.mxu1 %v2372_v51  ;;  %v2553_v20 = vld [vmem:[#allocation16 + $0x350] sm:$0xff]  ;;  %v2519_v51 = vld [vmem:[#allocation16 + $0x240] sm:$0xff] }
 0x26c   : > { %v1843_v61 = vmul.f32 %v3301_v63, %v1837_v3  ;;  %2441 = vmatpush.msra.mxu0 %v2367_v54  ;;  %2481 = vmatpush.msra.mxu2 %v2369_v15  ;;  %v2547_v54 = vld [vmem:[#allocation16 + $0x320] sm:$0xff] }
 0x26d   : > { %2500 = vmatpush.msra.mxu3 %v2374_v58  ;;  %2461 = vmatpush.msra.mxu1 %v2368_v6  ;;  %v2548_v6 = vld [vmem:[#allocation16 + $0x328] sm:$0xff] }
 0x26e   : > { %v1853_v25 = vmul.f32 %v1851_v7, %v1843_v61  ;;  %v2364_v7 = vld [vmem:[#allocation16 + $0x8] sm:$0xff]  ;;  %2442 = vmatpush.msra.mxu0 %v2363_v2  ;;  %2482 = vmatpush.msra.mxu2 %v2365_v34  ;;  %v2563_v61 = vld [vmem:[#allocation16 + $0x3a0] sm:$0xff]  ;;  %v2549_v34 = vld [vmem:[#allocation16 + $0x330] sm:$0xff] }
 0x26f   : > { %2501 = vmatpush.msra.mxu3 %v2370_v39  ;;  %2462 = vmatpush.msra.mxu1 %v2364_v7 }
 0x270   : > { %v5014_v49 = vadd.f32 %v1860_v59, %v1853_v25  ;;  %3078 = vst [vmem:[%s3944_s24 + $0x10] sm:$0xff] %v1853_v25  ;;  %v2566_v25 = vld [vmem:[#allocation16 + $0x3b8] sm:$0xff] }
 0x271   : > { %2502 = vmatpush.msra.mxu3 %v2366_v13 }
 0x272   : > { %2109 = vmatmul.f32.vlgmr.msrb.gmra.mxu0 %v5014_v49  ;;  %2129 = vmatmul.f32.vlgmr.msrb.gmra.mxu1 %v5014_v49 }
 0x273   : > { %2149 = vmatmul.f32.vlgmr.msrb.gmra.mxu2 %v5014_v49  ;;  %2169 = vmatmul.f32.vlgmr.msrb.gmra.mxu3 %v5014_v49 }
 0x274   : > { %2575 = vmatpush.msrb.mxu0 %v2571_v19  ;;  %2595 = vmatpush.msrb.mxu1 %v2572_v17 }
 0x275   : > { %2615 = vmatpush.msrb.mxu2 %v2573_v26  ;;  %2635 = vmatpush.msrb.mxu3 %v2574_v36  ;;  %v2543_v26 = vld [vmem:[#allocation16 + $0x300] sm:$0xff]  ;;  %v2544_v36 = vld [vmem:[#allocation16 + $0x308] sm:$0xff] }
 0x276   : > { %2576 = vmatpush.msrb.mxu0 %v2567_v1  ;;  %2596 = vmatpush.msrb.mxu1 %v2568_v40  ;;  %v2545_v1 = vld [vmem:[#allocation16 + $0x310] sm:$0xff] }
 0x277   : > { %2616 = vmatpush.msrb.mxu2 %v2569_v10  ;;  %2636 = vmatpush.msrb.mxu3 %v2570_v50 }
 0x278   : > { %2577 = vmatpush.msrb.mxu0 %v2563_v61  ;;  %2597 = vmatpush.msrb.mxu1 %v2564_v38  ;;  %v2540_v61 = vld [vmem:[#allocation16 + $0x2e8] sm:$0xff]  ;;  %v2541_v38 = vld [vmem:[#allocation16 + $0x2f0] sm:$0xff] }
 0x279   : > { %2617 = vmatpush.msrb.mxu2 %v2565_v16  ;;  %2637 = vmatpush.msrb.mxu3 %v2566_v25 }
 0x2ca   : > { %v1962_v56 = vpop.f32.mrf.mxu0  ;;  %v1982_v62 = vpop.f32.mrf.mxu1 }
 0x2cb   : > { %v2025_v32 = vadd.f32 %v1962_v56, %v5564_v24  ;;  %v2026_v9 = vadd.f32 %v1982_v62, %v5565_v42  ;;  %v2559_v62 = vld [vmem:[#allocation16 + $0x380] sm:$0xff]  ;;  %v2560_v24 = vld [vmem:[#allocation16 + $0x388] sm:$0xff] }
 0x2cc   : > { %2578 = vmatpush.msrb.mxu0 %v2559_v62  ;;  %2598 = vmatpush.msrb.mxu1 %v2560_v24  ;;  %v2535_v24 = vld [vmem:[#allocation16 + $0x2c0] sm:$0xff] }
 0x2cd   : > { %v3079_v5 = vmul.f32 -1.442695, %v2025_v32  ;;  %v3080_v33 = vmul.f32 -1.442695, %v2026_v9  ;;  %v1777_v32 = vmul.f32 %v4872_v44, %v4868_v41  ;;  %v2556_v41 = vld [vmem:[#allocation16 + $0x368] sm:$0xff]  ;;  %v2557_v44 = vld [vmem:[#allocation16 + $0x370] sm:$0xff] }
 0x2ce   : > { %2579 = vmatpush.msrb.mxu0 %v2555_v46  ;;  %2599 = vmatpush.msrb.mxu1 %v2556_v41 }
 0x2cf   : > { %3302 = vpow2.f32 %v3079_v5  ;;  %v2561_v5 = vld [vmem:[#allocation16 + $0x390] sm:$0xff] }
 0x2d0   : > { %3304 = vpow2.f32 %v3080_v33  ;;  %v2562_v33 = vld [vmem:[#allocation16 + $0x398] sm:$0xff]  ;;  %2618 = vmatpush.msrb.mxu2 %v2561_v5  ;;  %2580 = vmatpush.msrb.mxu0 %v2551_v4 }
 0x2d1   : > { %v2022_v48 = vpop.f32.mrf.mxu3  ;;  %v2002_v11 = vpop.f32.mrf.mxu2  ;;  %2638 = vmatpush.msrb.mxu3 %v2562_v33  ;;  %v2538_v5 = vld [vmem:[#allocation16 + $0x2d8] sm:$0xff]  ;;  %v2531_v33 = vld [vmem:[#allocation16 + $0x2a0] sm:$0xff] }
 0x2d2   : > { %v2028_v31 = vadd.f32 %v2022_v48, %v5566_v8  ;;  %v2027_v22 = vadd.f32 %v2002_v11, %v5567_v37  ;;  %2619 = vmatpush.msrb.mxu2 %v2557_v44  ;;  %v2550_v11 = vld [vmem:[#allocation16 + $0x338] sm:$0xff]  ;;  %2581 = vmatpush.msrb.mxu0 %v2547_v54  ;;  %v2520_v54 = vld [vmem:[#allocation16 + $0x248] sm:$0xff] }
 0x2d3   : > { %2639 = vmatpush.msrb.mxu3 %v2558_v57  ;;  %v2534_v44 = vld [vmem:[#allocation16 + $0x2b8] sm:$0xff] }
 0x2d4   : > { %v3081_v43 = vmul.f32 -1.442695, %v2028_v31  ;;  %2620 = vmatpush.msrb.mxu2 %v2553_v20  ;;  %2582 = vmatpush.msrb.mxu0 %v2543_v26  ;;  %v2523_v20 = vld [vmem:[#allocation16 + $0x260] sm:$0xff] }
 0x2d5   : > { %v3303_v55 = vpop.eup %3302 }
 0x2d6   : > { %v3305_v0 = vpop.eup %3304  ;;  %v5024_v12 = vadd.f32 1.0, %v3303_v55  ;;  %3306 = vpow2.f32 %v3081_v43  ;;  %v2552_v55 = vld [vmem:[#allocation16 + $0x348] sm:$0xff]  ;;  %2621 = vmatpush.msrb.mxu2 %v2549_v34  ;;  %v2515_v34 = vld [vmem:[#allocation16 + $0x220] sm:$0xff] }
 0x2d7   : > { %v5026_v27 = vadd.f32 1.0, %v3305_v0  ;;  %2600 = vmatpush.msrb.mxu1 %v2552_v55  ;;  %v2530_v55 = vld [vmem:[#allocation16 + $0x298] sm:$0xff] }
 0x2d8   : > { %3308 = vrcp.f32 %v5024_v12  ;;  %v2193_v9 = vand.u32 2147483648, %v5024_v12  ;;  %v2191_v31 = vand.u32 2147483647, %v5024_v12  ;;  %vm2187_vm10 = vweird.f32 %v5024_v12  ;;  %2622 = vmatpush.msrb.mxu2 %v2545_v1  ;;  %v2511_v1 = vld [vmem:[#allocation16 + $0x200] sm:$0xff] }
 0x2d9   : > { %3310 = vrcp.f32 %v5026_v27  ;;  %v2212_v48 = vand.u32 2147483648, %v5026_v27  ;;  %v2210_v30 = vand.u32 2147483647, %v5026_v27  ;;  %vm2206_vm11 = vweird.f32 %v5026_v27  ;;  %2601 = vmatpush.msrb.mxu1 %v2548_v6  ;;  %v2521_v6 = vld [vmem:[#allocation16 + $0x250] sm:$0xff] }
 0x2da   : > { %v2194_v23 = vor.u32 1.1754944e-38, %v2193_v9  ;;  %vm2192_vm14 = vcmp.eq.f32.partialorder %v2191_v31, 8.507059e+37  ;;  %2623 = vmatpush.msrb.mxu2 %v2541_v38  ;;  %v2533_v31 = vld [vmem:[#allocation16 + $0x2b0] sm:$0xff] }
 0x2db   : > { %v2213_v35 = vor.u32 1.1754944e-38, %v2212_v48  ;;  %vm2211_vm15 = vcmp.eq.f32.partialorder %v2210_v30, 8.507059e+37  ;;  %2602 = vmatpush.msrb.mxu1 %v2544_v36  ;;  %v5576_v30 = vld [vmem:[#allocation48_spill] sm:$0xff] }
 0x2dc   : > { %v3307_v21 = vpop.eup %3306  ;;  %v2518_v36 = vld [vmem:[#allocation16 + $0x238] sm:$0xff] }
 0x2dd   : > { %v5030_v29 = vadd.f32 1.0, %v3307_v21  ;;  %2603 = vmatpush.msrb.mxu1 %v2540_v61 }
 0x2de   : > { %v5032_v14 = vpop.eup %3308 }
 0x2df   : > { %v5035_v63 = vpop.eup %3310  ;;  %v2183_v3 = vmul.f32 %v5032_v14, %v5024_v12  ;;  %3312 = vrcp.f32 %v5030_v29  ;;  %vm2188_vm8 = vweird.f32 %v5032_v14  ;;  %v2554_v12 = vld [vmem:[#allocation16 + $0x358] sm:$0xff]  ;;  %v2232_v9 = vand.u32 2147483648, %v5030_v29 }
 0x2e0   : > { %v2202_v59 = vmul.f32 %v5035_v63, %v5026_v27  ;;  %3314 = vtanh.f32 %v2027_v22  ;;  %vm2207_vm9 = vweird.f32 %v5035_v63  ;;  %vm5061_vm12 = vmor %vm2187_vm10, %vm2188_vm8  ;;  %v5074_v27 = vadd.f32 %v1778_v45, %v1777_v32  ;;  %2640 = vmatpush.msrb.mxu3 %v2554_v12  ;;  %v5573_v22 = vld [vmem:[#allocation46_spill] sm:$0xff] }
 0x2e1   : > { %v2184_v56 = vsub.f32 1.0, %v2183_v3  ;;  %vm5070_vm13 = vmor %vm2206_vm11, %vm2207_vm9  ;;  %v2539_v3 = vld [vmem:[#allocation16 + $0x2e0] sm:$0xff]  ;;  %v2536_v32 = vld [vmem:[#allocation16 + $0x2c8] sm:$0xff]  ;;  %vm2226_vm1 = vweird.f32 %v5030_v29  ;;  %v2230_v48 = vand.u32 2147483647, %v5030_v29  ;;  %v2233_v4 = vor.u32 1.1754944e-38, %v2232_v9 }
 0x2e2   : > { %v2203_v42 = vsub.f32 1.0, %v2202_v59  ;;  %2641 = vmatpush.msrb.mxu3 %v2550_v11  ;;  %2583 = vmatpush.msrb.mxu0 %v2539_v3  ;;  %v2528_v45 = vld [vmem:[#allocation16 + $0x288] sm:$0xff]  ;;  %v5108_v11 = vpop.permute.xlu0 %2254  ;;  %v5577_v3 = vld [vmem:[#allocation47_spill] sm:$0xff] }
 0x2e3   : > { %v2185_v8 = vmul.f32 %v5032_v14, %v2184_v56  ;;  %v2542_v56 = vld [vmem:[#allocation16 + $0x2f8] sm:$0xff]  ;;  %2604 = vmatpush.msrb.mxu1 %v2536_v32  ;;  %vm2231_vm3 = vcmp.eq.f32.partialorder %v2230_v48, 8.507059e+37  ;;  %v2257_v26 = vmul.f32 %v5108_v11, %v4926_v60 }
 0x2e4   : > { %v2204_v47 = vmul.f32 %v5035_v63, %v2203_v42  ;;  %v2537_v42 = vld [vmem:[#allocation16 + $0x2d0] sm:$0xff]  ;;  %2584 = vmatpush.msrb.mxu0 %v2535_v24 }
 0x2e5   : > { %v5052_v43 = vpop.eup %3312  ;;  %v2186_v18 = vadd.f32 %v5032_v14, %v2185_v8  ;;  %v2532_v8 = vld [vmem:[#allocation16 + $0x2a8] sm:$0xff]  ;;  %2624 = vmatpush.msrb.mxu2 %v2537_v42 }
 0x2e6   : > { %v2205_v28 = vadd.f32 %v5035_v63, %v2204_v47  ;;  %v2222_v52 = vmul.f32 %v5052_v43, %v5030_v29  ;;  %v3315_v15 = vpop.eup %3314  ;;  %vm2227_vm0 = vweird.f32 %v5052_v43  ;;  %v2527_v47 = vld [vmem:[#allocation16 + $0x280] sm:$0xff]  ;;  %2585 = vmatpush.msrb.mxu0 %v2531_v33  ;;  %2605 = vmatpush.msrb.mxu1 %v2532_v8 }
 0x2e7   : > { %v2190_v58 = vsel %vm5061_vm12, %v5032_v14, %v2186_v18  ;;  %v5572_v14 = vld [vmem:[#allocation45_spill] sm:$0xff]  ;;  %vm5096_vm2 = vmor %vm2226_vm1, %vm2227_vm0  ;;  %v2529_v18 = vld [vmem:[#allocation16 + $0x290] sm:$0xff]  ;;  %2625 = vmatpush.msrb.mxu2 %v2533_v31 }
 0x2e8   : > { %v2195_v39 = vsel %vm2192_vm14, %v2194_v23, %v2190_v58  ;;  %v2209_v2 = vsel %vm5070_vm13, %v5035_v63, %v2205_v28  ;;  %v2223_v7 = vsub.f32 1.0, %v2222_v52  ;;  %v2546_v63 = vld [vmem:[#allocation16 + $0x318] sm:$0xff]  ;;  %2586 = vmatpush.msrb.mxu0 %v2527_v47  ;;  %v2524_v23 = vld [vmem:[#allocation16 + $0x268] sm:$0xff]  ;;  %v2525_v28 = vld [vmem:[#allocation16 + $0x270] sm:$0xff]  ;;  %2606 = vmatpush.msrb.mxu1 %v2528_v45 }
 0x2e9   : > { %v2214_v13 = vsel %vm2211_vm15, %v2213_v35, %v2209_v2  ;;  %v2237_v19 = vmul.f32 %v3315_v15, %v2195_v39  ;;  %2642 = vmatpush.msrb.mxu3 %v2546_v63  ;;  %2626 = vmatpush.msrb.mxu2 %v2529_v18  ;;  %v5104_v39 = vpop.permute.xlu2 %2247 }
 0x2ea   : > { %v2236_v40 = vmul.f32 %v2214_v13, %v5074_v27  ;;  %v2224_v10 = vmul.f32 %v5052_v43, %v2223_v7  ;;  %2587 = vmatpush.msrb.mxu0 %v2523_v20  ;;  %2607 = vmatpush.msrb.mxu1 %v2524_v23  ;;  %v2522_v7 = vld [vmem:[#allocation16 + $0x258] sm:$0xff]  ;;  %v2333_v23 = vpop.permute.xlu1 %2332 }
 0x2eb   : > { %2643 = vmatpush.msrb.mxu3 %v2542_v56  ;;  %2627 = vmatpush.msrb.mxu2 %v2525_v28 }
 0x2ec   : > { %v5086_v16 = vadd.f32 %v2237_v19, %v2236_v40  ;;  %v2225_v62 = vadd.f32 %v5052_v43, %v2224_v10  ;;  %2588 = vmatpush.msrb.mxu0 %v2519_v51  ;;  %2608 = vmatpush.msrb.mxu1 %v2520_v54 }
 0x2ed   : > { %2644 = vmatpush.msrb.mxu3 %v2538_v5  ;;  %2628 = vmatpush.msrb.mxu2 %v2521_v6 }
 0x2ee   : > { %3316 = vtanh.f32 %v5086_v16  ;;  %v2229_v29 = vsel %vm5096_vm2, %v5052_v43, %v2225_v62  ;;  %v2526_v43 = vld [vmem:[#allocation16 + $0x278] sm:$0xff]  ;;  %2589 = vmatpush.msrb.mxu0 %v2515_v34 }
 0x2ef   : > { %v2110_v17 = vpop.f32.mrf.mxu0  ;;  %v2130_v21 = vpop.f32.mrf.mxu1  ;;  %2645 = vmatpush.msrb.mxu3 %v2534_v44  ;;  %v2234_v12 = vsel %vm2231_vm3, %v2233_v4, %v2229_v29 }
 0x2f0   : > { %v2173_v37 = vadd.f32 %v2110_v17, %v5572_v14  ;;  %v2174_v50 = vadd.f32 %v2130_v21, %v5573_v22  ;;  %v2516_v17 = vld [vmem:[#allocation16 + $0x228] sm:$0xff]  ;;  %v2517_v21 = vld [vmem:[#allocation16 + $0x230] sm:$0xff]  ;;  %2590 = vmatpush.msrb.mxu0 %v2511_v1 }
 0x2f1   : > { %2646 = vmatpush.msrb.mxu3 %v2530_v55  ;;  %2609 = vmatpush.msrb.mxu1 %v2516_v17  ;;  %v2513_v22 = vld [vmem:[#allocation16 + $0x210] sm:$0xff]  ;;  %v2340_v28 = vpop.permute.xlu2 %2339 }
 0x2f2   : > { %v3083_v59 = vmul.f32 -1.442695, %v2173_v37  ;;  %v3084_v25 = vmul.f32 -1.442695, %v2174_v50  ;;  %2629 = vmatpush.msrb.mxu2 %v2517_v21  ;;  %v2512_v37 = vld [vmem:[#allocation16 + $0x208] sm:$0xff]  ;;  %v2514_v50 = vld [vmem:[#allocation16 + $0x218] sm:$0xff]  ;;  %v2342_v34 = vmul.f32 %v2340_v28, %v5014_v49 }
 0x2f3   : > { %2647 = vmatpush.msrb.mxu3 %v2526_v43  ;;  %2610 = vmatpush.msrb.mxu1 %v2512_v37  ;;  %v5578_v21 = vld [vmem:[#allocation37_spill] sm:$0xff]  ;;  %v5580_v37 = vld [vmem:[#allocation40_spill] sm:$0xff] }
 0x2f4   : > { %3318 = vpow2.f32 %v3083_v59  ;;  %v3317_v52 = vpop.eup %3316  ;;  %2630 = vmatpush.msrb.mxu2 %v2513_v22 }
 0x2f5   : > { %3320 = vpow2.f32 %v3084_v25  ;;  %v2240_v58 = vmul.f32 %v3317_v52, %v2234_v12  ;;  %2648 = vmatpush.msrb.mxu3 %v2522_v7  ;;  %v2345_v12 = vmul.f32 %v2340_v28, %v4998_v53 }
 0x2f6   : > { %v2170_v41 = vpop.f32.mrf.mxu3  ;;  %v2150_v14 = vpop.f32.mrf.mxu2 }
 0x2f7   : > { %v2176_v57 = vadd.f32 %v2170_v41, %v5576_v30  ;;  %v2250_v19 = vmul.f32 %v5104_v39, %v2240_v58  ;;  %2649 = vmatpush.msrb.mxu3 %v2518_v36  ;;  %v2175_v61 = vadd.f32 %v2150_v14, %v5577_v3  ;;  %v5579_v36 = vld [vmem:[#allocation38_spill] sm:$0xff] }
 0x2f9   : > { %v3085_v0 = vmul.f32 -1.442695, %v2176_v57  ;;  %3087 = vst [vmem:[%s3942_s4 + $0x10] sm:$0xff] %v2250_v19  ;;  %v5118_v40 = vadd.f32 %v2257_v26, %v2250_v19  ;;  %2650 = vmatpush.msrb.mxu3 %v2514_v50 }
 0x2fa   : > { %v3319_v35 = vpop.eup %3318 }
 0x2fb   : > { %3322 = vpow2.f32 %v3085_v0  ;;  %v3321_v15 = vpop.eup %3320  ;;  %v5106_v2 = vadd.f32 1.0, %v3319_v35  ;;  %2443 = vmatmul.f32.vlgmr.msra.gmra.mxu0 %v5118_v40  ;;  %2463 = vmatmul.f32.vlgmr.msra.gmra.mxu1 %v5118_v40 }
 0x2fc   : > { %v5110_v13 = vadd.f32 1.0, %v3321_v15  ;;  %2483 = vmatmul.f32.vlgmr.msra.gmra.mxu2 %v5118_v40  ;;  %2503 = vmatmul.f32.vlgmr.msra.gmra.mxu3 %v5118_v40 }
 0x2fd   : > { %3324 = vrcp.f32 %v5106_v2  ;;  %v2278_v24 = vand.u32 2147483648, %v5106_v2  ;;  %v2276_v9 = vand.u32 2147483647, %v5106_v2  ;;  %vm2272_vm6 = vweird.f32 %v5106_v2 }
 0x2fe   : > { %3326 = vrcp.f32 %v5110_v13  ;;  %v2297_v32 = vand.u32 2147483648, %v5110_v13  ;;  %v2295_v48 = vand.u32 2147483647, %v5110_v13  ;;  %vm2291_vm7 = vweird.f32 %v5110_v13 }
 0x2ff   : > { %v2279_v46 = vor.u32 1.1754944e-38, %v2278_v24  ;;  %vm2277_vm10 = vcmp.eq.f32.partialorder %v2276_v9, 8.507059e+37 }
 0x300   : > { %v2298_v44 = vor.u32 1.1754944e-38, %v2297_v32  ;;  %vm2296_vm11 = vcmp.eq.f32.partialorder %v2295_v48, 8.507059e+37 }
 0x301   : > { %v3323_v10 = vpop.eup %3322 }
 0x302   : > { %v2305_v60 = vadd.f32 1.0, %v3323_v10 }
 0x303   : > { %v3325_v63 = vpop.eup %3324 }
 0x304   : > { %3328 = vrcp.f32 %v2305_v60  ;;  %v3327_v38 = vpop.eup %3326  ;;  %v2268_v59 = vmul.f32 %v3325_v63, %v5106_v2  ;;  %vm2273_vm4 = vweird.f32 %v3325_v63  ;;  %v2317_v51 = vand.u32 2147483648, %v2305_v60 }
 0x305   : > { %v2287_v25 = vmul.f32 %v3327_v38, %v5110_v13  ;;  %3330 = vtanh.f32 %v2175_v61  ;;  %vm2292_vm5 = vweird.f32 %v3327_v38  ;;  %vm2274_vm8 = vmor %vm2272_vm6, %vm2273_vm4  ;;  %vm2311_vm13 = vweird.f32 %v2305_v60 }
 0x306   : > { %v2269_v56 = vsub.f32 1.0, %v2268_v59  ;;  %vm2293_vm9 = vmor %vm2291_vm7, %vm2292_vm5  ;;  %v2315_v35 = vand.u32 2147483647, %v2305_v60  ;;  %v2318_v6 = vor.u32 1.1754944e-38, %v2317_v51 }
 0x307   : > { %v2288_v62 = vsub.f32 1.0, %v2287_v25 }
 0x308   : > { %v2270_v42 = vmul.f32 %v3325_v63, %v2269_v56  ;;  %vm2316_vm15 = vcmp.eq.f32.partialorder %v2315_v35, 8.507059e+37 }
 0x309   : > { %v2289_v33 = vmul.f32 %v3327_v38, %v2288_v62  ;;  %v5581_v62 = vld [vmem:[#allocation39_spill] sm:$0xff] }
 0x30a   : > { %v3329_v5 = vpop.eup %3328  ;;  %v2271_v8 = vadd.f32 %v3325_v63, %v2270_v42 }
 0x30b   : > { %v2307_v31 = vmul.f32 %v3329_v5, %v2305_v60  ;;  %v2290_v41 = vadd.f32 %v3327_v38, %v2289_v33  ;;  %v3331_v30 = vpop.eup %3330  ;;  %vm2312_vm12 = vweird.f32 %v3329_v5  ;;  %v2259_v33 = vmul.f32 %v5104_v39, %v5086_v16 }
 0x30c   : > { %v2275_v47 = vsel %vm2274_vm8, %v3325_v63, %v2271_v8  ;;  %vm2313_vm14 = vmor %vm2311_vm13, %vm2312_vm12 }
 0x30d   : > { %v2308_v29 = vsub.f32 1.0, %v2307_v31  ;;  %v2280_v57 = vsel %vm2277_vm10, %v2279_v46, %v2275_v47  ;;  %v2294_v45 = vsel %vm2293_vm9, %v3327_v38, %v2290_v41 }
 0x30e   : > { %v2299_v18 = vsel %vm2296_vm11, %v2298_v44, %v2294_v45  ;;  %v2322_v4 = vmul.f32 %v3331_v30, %v2280_v57  ;;  %v2260_v30 = vmul.f32 %v5108_v11, %v5074_v27 }
 0x30f   : > { %v2309_v55 = vmul.f32 %v3329_v5, %v2308_v29  ;;  %v2321_v20 = vmul.f32 %v2299_v18, %v4998_v53 }
 0x311   : > { %v2323_v0 = vadd.f32 %v2322_v4, %v2321_v20  ;;  %v2310_v52 = vadd.f32 %v3329_v5, %v2309_v55  ;;  %v2261_v4 = vadd.f32 %v2260_v30, %v2259_v33 }
 0x313   : > { %3332 = vtanh.f32 %v2323_v0  ;;  %v2344_v43 = vmul.f32 %v2333_v23, %v2323_v0  ;;  %v2314_v54 = vsel %vm2313_vm14, %v3329_v5, %v2310_v52  ;;  %v5157_v0 = vpop.permute.xlu0 %3234 }
 0x314   : > { %v2319_v2 = vsel %vm2316_vm15, %v2318_v6, %v2314_v54  ;;  %v5582_v54 = vld [vmem:[#allocation41_spill] sm:$0xff] }
 0x315   : > { %v5135_v58 = vadd.f32 %v2345_v12, %v2344_v43 }
 0x319   : > { %v3333_v15 = vpop.eup %3332 }
 0x31a   : > { %v2325_v7 = vmul.f32 %v3333_v15, %v2319_v2  ;;  %v5583_v15 = vld [vmem:[#allocation42_spill] sm:$0xff] }
 0x31c   : > { %v2335_v13 = vmul.f32 %v2333_v23, %v2325_v7  ;;  %v3236_v7 = vunpack.i.l.bf16 %v5157_v0 }
 0x31e   : > { %v5138_v19 = vadd.f32 %v2342_v34, %v2335_v13  ;;  %3088 = vst [vmem:[%s3944_s24 + $0x8] sm:$0xff] %v2335_v13 }
 0x320   : > { %2591 = vmatmul.f32.vlgmr.msrb.gmra.mxu0 %v5138_v19  ;;  %2611 = vmatmul.f32.vlgmr.msrb.gmra.mxu1 %v5138_v19 }
 0x321   : > { %2631 = vmatmul.f32.vlgmr.msrb.gmra.mxu2 %v5138_v19  ;;  %2651 = vmatmul.f32.vlgmr.msrb.gmra.mxu3 %v5138_v19 }
 0x378   : > { %v2444_v53 = vpop.f32.mrf.mxu0  ;;  %v2464_v17 = vpop.f32.mrf.mxu1 }
 0x379   : > { %v2507_v26 = vadd.f32 %v2444_v53, %v5578_v21  ;;  %v2508_v1 = vadd.f32 %v2464_v17, %v5579_v36  ;;  %v2737_v17 = vpop.permute.xlu1 %2736 }
 0x37a   : > { %v2742_v36 = vmul.f32 %v2737_v17, %v2261_v4 }
 0x37b   : > { %v3089_v10 = vmul.f32 -1.442695, %v2507_v26  ;;  %v3090_v49 = vmul.f32 -1.442695, %v2508_v1 }
 0x37d   : > { %3334 = vpow2.f32 %v3089_v10 }
 0x37e   : > { %3336 = vpow2.f32 %v3090_v49 }
 0x37f   : > { %v2504_v14 = vpop.f32.mrf.mxu3  ;;  %v2484_v38 = vpop.f32.mrf.mxu2 }
 0x380   : > { %v2510_v22 = vadd.f32 %v2504_v14, %v5580_v37  ;;  %v2509_v24 = vadd.f32 %v2484_v38, %v5581_v62  ;;  %v2739_v62 = vmul.f32 %v2737_v17, %v5118_v40 }
 0x382   : > { %v3091_v60 = vmul.f32 -1.442695, %v2510_v22  ;;  %v5584_v22 = vld [vmem:[#allocation44_spill] sm:$0xff] }
 0x383   : > { %v3335_v50 = vpop.eup %3334 }
 0x384   : > { %v3337_v63 = vpop.eup %3336  ;;  %v2663_v3 = vadd.f32 1.0, %v3335_v50  ;;  %3338 = vpow2.f32 %v3091_v60 }
 0x385   : > { %v2682_v61 = vadd.f32 1.0, %v3337_v63 }
 0x386   : > { %3340 = vrcp.f32 %v2663_v3  ;;  %v2675_v8 = vand.u32 2147483648, %v2663_v3  ;;  %v2673_v41 = vand.u32 2147483647, %v2663_v3  ;;  %vm2669_vm2 = vweird.f32 %v2663_v3 }
 0x387   : > { %3342 = vrcp.f32 %v2682_v61  ;;  %v2694_v31 = vand.u32 2147483648, %v2682_v61  ;;  %v2692_v47 = vand.u32 2147483647, %v2682_v61  ;;  %vm2688_vm3 = vweird.f32 %v2682_v61 }
 0x388   : > { %v2676_v45 = vor.u32 1.1754944e-38, %v2675_v8  ;;  %vm2674_vm6 = vcmp.eq.f32.partialorder %v2673_v41, 8.507059e+37 }
 0x389   : > { %v2695_v18 = vor.u32 1.1754944e-38, %v2694_v31  ;;  %vm2693_vm7 = vcmp.eq.f32.partialorder %v2692_v47, 8.507059e+37 }
 0x38a   : > { %v3339_v59 = vpop.eup %3338 }
 0x38b   : > { %v5148_v25 = vadd.f32 1.0, %v3339_v59 }
 0x38c   : > { %v3341_v56 = vpop.eup %3340 }
 0x38d   : > { %v3343_v32 = vpop.eup %3342  ;;  %v2665_v42 = vmul.f32 %v3341_v56, %v2663_v3  ;;  %3344 = vrcp.f32 %v5148_v25  ;;  %vm2670_vm0 = vweird.f32 %v3341_v56  ;;  %v2714_v1 = vand.u32 2147483648, %v5148_v25 }
 0x38e   : > { %v2684_v9 = vmul.f32 %v3343_v32, %v2682_v61  ;;  %3346 = vtanh.f32 %v2509_v24  ;;  %vm2689_vm1 = vweird.f32 %v3343_v32  ;;  %vm2671_vm4 = vmor %vm2669_vm2, %vm2670_vm0  ;;  %vm2708_vm9 = vweird.f32 %v5148_v25 }
 0x38f   : > { %v2666_v5 = vsub.f32 1.0, %v2665_v42  ;;  %vm2690_vm5 = vmor %vm2688_vm3, %vm2689_vm1  ;;  %v2712_v10 = vand.u32 2147483647, %v5148_v25  ;;  %v2715_v50 = vor.u32 1.1754944e-38, %v2714_v1 }
 0x390   : > { %v2685_v48 = vsub.f32 1.0, %v2684_v9 }
 0x391   : > { %v2667_v46 = vmul.f32 %v3341_v56, %v2666_v5  ;;  %vm2713_vm11 = vcmp.eq.f32.partialorder %v2712_v10, 8.507059e+37 }
 0x392   : > { %v2686_v44 = vmul.f32 %v3343_v32, %v2685_v48 }
 0x393   : > { %v3345_v29 = vpop.eup %3344  ;;  %v2668_v57 = vadd.f32 %v3341_v56, %v2667_v46 }
 0x394   : > { %v2687_v16 = vadd.f32 %v3343_v32, %v2686_v44  ;;  %v2704_v39 = vmul.f32 %v3345_v29, %v5148_v25  ;;  %v3347_v20 = vpop.eup %3346  ;;  %vm2709_vm8 = vweird.f32 %v3345_v29 }
 0x395   : > { %v2672_v55 = vsel %vm2671_vm4, %v3341_v56, %v2668_v57  ;;  %vm2710_vm10 = vmor %vm2708_vm9, %vm2709_vm8 }
 0x396   : > { %v2677_v23 = vsel %vm2674_vm6, %v2676_v45, %v2672_v55  ;;  %v2691_v28 = vsel %vm2690_vm5, %v3343_v32, %v2687_v16  ;;  %v2705_v27 = vsub.f32 1.0, %v2704_v39 }
 0x397   : > { %v2696_v11 = vsel %vm2693_vm7, %v2695_v18, %v2691_v28  ;;  %v2719_v52 = vmul.f32 %v3347_v20, %v2677_v23 }
 0x398   : > { %v2718_v51 = vmul.f32 %v2696_v11, %v2261_v4  ;;  %v2706_v35 = vmul.f32 %v3345_v29, %v2705_v27 }
 0x39a   : > { %v2720_v34 = vadd.f32 %v2719_v52, %v2718_v51  ;;  %v2707_v21 = vadd.f32 %v3345_v29, %v2706_v35 }
 0x39c   : > { %3348 = vtanh.f32 %v2720_v34  ;;  %v2741_v26 = vmul.f32 %v3236_v7, %v2720_v34  ;;  %v2711_v37 = vsel %vm2710_vm10, %v3345_v29, %v2707_v21 }
 0x39d   : > { %v2592_v12 = vpop.f32.mrf.mxu0  ;;  %v2612_v43 = vpop.f32.mrf.mxu1  ;;  %v2716_v61 = vsel %vm2713_vm11, %v2715_v50, %v2711_v37 }
 0x39e   : > { %v2655_v6 = vadd.f32 %v2592_v12, %v5582_v54  ;;  %v2656_v2 = vadd.f32 %v2612_v43, %v5583_v15  ;;  %v2743_v49 = vadd.f32 %v2742_v36, %v2741_v26 }
 0x3a0   : > { %v3093_v13 = vmul.f32 -1.442695, %v2655_v6  ;;  %v3094_v53 = vmul.f32 -1.442695, %v2656_v2  ;;  %2832 = vst [vmem:[#allocation5] sm:$0xff] %v2743_v49 }
 0x3a2   : > { %3350 = vpow2.f32 %v3093_v13  ;;  %v3349_v3 = vpop.eup %3348 }
 0x3a3   : > { %3352 = vpow2.f32 %v3094_v53  ;;  %v2722_v59 = vmul.f32 %v3349_v3, %v2716_v61 }
 0x3a4   : > { %v2652_v14 = vpop.f32.mrf.mxu3 }
 0x3a5   : > { %v2658_v60 = vadd.f32 %v2652_v14, %v5584_v22  ;;  %v2732_v24 = vmul.f32 %v3236_v7, %v2722_v59 }
 0x3a7   : > { %v3095_v63 = vmul.f32 -1.442695, %v2658_v60  ;;  %v2740_v42 = vadd.f32 %v2739_v62, %v2732_v24  ;;  %3097 = vst [vmem:[%s3942_s4 + $0x18] sm:$0xff] %v2732_v24 }
 0x3a8   : > { %v3351_v38 = vpop.eup %3350 }
 0x3a9   : > { %3354 = vpow2.f32 %v3095_v63  ;;  %v3353_v25 = vpop.eup %3352  ;;  %v2747_v56 = vadd.f32 1.0, %v3351_v38 }
 0x3aa   : > { %v2766_v32 = vadd.f32 1.0, %v3353_v25 }
 0x3ab   : > { %3356 = vrcp.f32 %v2747_v56 }
 0x3ac   : > { %3358 = vrcp.f32 %v2766_v32 }
 0x3ad   : > { %3545 = shalt.err (!%p3542_p3)
}
 0x3ae   : > { %s3664_s23 = smov 128   ;;  %s3665_s4 = smov 8   ;;  %2831 = vst [vmem:[#allocation4] sm:$0xff] %v2740_v42  ;;  %v2632_v9 = vpop.f32.mrf.mxu2  ;;  %v5585_v48 = vld [vmem:[#allocation43_spill] sm:$0xff]  ;;  %v2759_v29 = vand.u32 2147483648, %v2747_v56  ;;  %v2778_v30 = vand.u32 2147483648, %v2766_v32  ;;  %vm2753_vm14 = vweird.f32 %v2747_v56  ;;  %vm2772_vm15 = vweird.f32 %v2766_v32  ;;  %v2821_v7 = vpop.permute.xlu2 %2820 }
 0x3af   : > { %3126 = dma.vmem_to_hbm [thread:$0]  (%p3813_p8), %s2854_s7, 512, %s2856_s29, %s2836_s14, %s3664_s23, %s3664_s23, %s3665_s4   ;;  %v3355_v40 = vpop.eup %3354  ;;  %v2657_v8 = vadd.f32 %v2632_v9, %v5585_v48  ;;  %v2757_v45 = vand.u32 2147483647, %v2747_v56  ;;  %v2776_v18 = vand.u32 2147483647, %v2766_v32  ;;  %v3237_v15 = vunpack.i.h.bf16 %v5157_v0 }
 0x3b0   : > { %v2786_v5 = vadd.f32 1.0, %v3355_v40  ;;  %v2760_v20 = vor.u32 1.1754944e-38, %v2759_v29  ;;  %v2779_v28 = vor.u32 1.1754944e-38, %v2778_v30  ;;  %s3109_s27 = sshll.u32 %s896_s17, 5  ;;  %v2826_v53 = vmul.f32 %v2821_v7, %v5135_v58  ;;  %s2871_s17 = sshll.u32 %s3944_s24, 4  ;;  %s2872_s17 = int_to_ptr.vmem [resolvable:$true] %s2871_s17 }
 0x3b1   : > { %v3357_v33 = vpop.eup %3356  ;;  %vm2758_vm2 = vcmp.eq.f32.partialorder %v2757_v45, 8.507059e+37  ;;  %vm2777_vm3 = vcmp.eq.f32.partialorder %v2776_v18, 8.507059e+37  ;;  %s2870_s7 = scalar_lea.hbm %s5258_s9, %s3109_s27  ;;  %v2823_v49 = vmul.f32 %v2821_v7, %v5138_v19  ;;  %s2841_s29 = scalar_lea.sflag [#allocation19], %s397_s18 }
 0x3b2   : > { %3360 = vrcp.f32 %v2786_v5  ;;  %v3359_v31 = vpop.eup %3358  ;;  %v2749_v46 = vmul.f32 %v3357_v33, %v2747_v56  ;;  %vm2754_vm12 = vweird.f32 %v3357_v33  ;;  %v2798_v17 = vand.u32 2147483648, %v2786_v5  ;;  %s5196_s16 = sshll.u32 %s2870_s7, 4  ;;  %s3566_s25 = scalar_lea.hbm %s5258_s9, 64  ;;  %s2874_s16 = int_to_ptr.hbm [resolvable:$true] %s5196_s16 }
 0x3b3   : > { %v2768_v41 = vmul.f32 %v3359_v31, %v2766_v32  ;;  %3362 = vtanh.f32 %v2657_v8  ;;  %vm2773_vm13 = vweird.f32 %v3359_v31  ;;  %vm2755_vm0 = vmor %vm2753_vm14, %vm2754_vm12  ;;  %vm2792_vm5 = vweird.f32 %v2786_v5  ;;  %s3560_s14 = sshra.s32 %s2874_s16, 4  ;;  %s3561_s14 = int_to_ptr.hbm [resolvable:$true] %s3560_s14 }
 0x3b4   : > { %v2750_v44 = vsub.f32 1.0, %v2749_v46  ;;  %vm2774_vm1 = vmor %vm2772_vm15, %vm2773_vm13  ;;  %v2796_v21 = vand.u32 2147483647, %v2786_v5  ;;  %v2799_v36 = vor.u32 1.1754944e-38, %v2798_v17  ;;  %s3562_s22 = scalar_lea.hbm %s3561_s14, 32  ;;  %p3567_p9 = scmp.lt.s32.totalorder %s3561_s14, %s5258_s9 }
 0x3b5   : > { %v2769_v47 = vsub.f32 1.0, %v2768_v41  ;;  %p3563_p8 = scmp.ne.s32.totalorder %s3561_s14, %s3562_s22  ;;  %p3568_p4 = scmp.lt.s32.totalorder %s3566_s25, %s3562_s22 }
 0x3b6   : > { %v2751_v57 = vmul.f32 %v3357_v33, %v2750_v44  ;;  %vm2797_vm7 = vcmp.eq.f32.partialorder %v2796_v21, 8.507059e+37 }
 0x3b7   : > { %v2770_v39 = vmul.f32 %v3359_v31, %v2769_v47  ;;  %p3564_p7 = pnand %p3563_p8, %p3885_p13  ;;  %p3569_p1 = por %p3568_p4, %p3567_p9 }
 0x3b8   : > { %v3361_v16 = vpop.eup %3360  ;;  %v2752_v4 = vadd.f32 %v3357_v33, %v2751_v57 }
 0x3b9   : > { %v2788_v55 = vmul.f32 %v3361_v16, %v2786_v5  ;;  %v2771_v23 = vadd.f32 %v3359_v31, %v2770_v39  ;;  %v3363_v52 = vpop.eup %3362  ;;  %vm2793_vm4 = vweird.f32 %v3361_v16  ;;  %p3565_p10 = pneg %p3564_p7 }
 0x3ba   : > { %v2756_v27 = vsel %vm2755_vm0, %v3357_v33, %v2752_v4  ;;  %vm2794_vm6 = vmor %vm2792_vm5, %vm2793_vm4 }
 0x3bb   : > { %v2789_v11 = vsub.f32 1.0, %v2788_v55  ;;  %v2761_v12 = vsel %vm2758_vm2, %v2760_v20, %v2756_v27  ;;  %v2775_v43 = vsel %vm2774_vm1, %v3359_v31, %v2771_v23  ;;  %p3570_p5 = pnand %p3569_p1, %p3565_p10 }
 0x3bc   : > { %v2780_v51 = vsel %vm2777_vm3, %v2779_v28, %v2775_v43  ;;  %v2803_v35 = vmul.f32 %v3363_v52, %v2761_v12 }
 0x3bd   : > { %v2790_v54 = vmul.f32 %v3361_v16, %v2789_v11  ;;  %v2802_v6 = vmul.f32 %v2780_v51, %v5135_v58 }
 0x3bf   : > { %v2804_v2 = vadd.f32 %v2803_v35, %v2802_v6  ;;  %v2791_v34 = vadd.f32 %v3361_v16, %v2790_v54 }
 0x3c1   : > { %3364 = vtanh.f32 %v2804_v2  ;;  %v2825_v13 = vmul.f32 %v3237_v15, %v2804_v2  ;;  %v2795_v0 = vsel %vm2794_vm6, %v3361_v16, %v2791_v34 }
 0x3c2   : > { %v2800_v1 = vsel %vm2797_vm7, %v2799_v36, %v2795_v0 }
 0x3c3   : > { %v2827_v26 = vadd.f32 %v2826_v53, %v2825_v13 }
 0x3c5   : > { %2834 = vst [vmem:[#allocation7] sm:$0xff] %v2827_v26 }
 0x3c7   : > { %v3365_v58 = vpop.eup %3364 }
 0x3c8   : > { %v2806_v10 = vmul.f32 %v3365_v58, %v2800_v1 }
 0x3ca   : > { %v2816_v14 = vmul.f32 %v3237_v15, %v2806_v10 }
 0x3cc   : > { %v2824_v37 = vadd.f32 %v2823_v49, %v2816_v14  ;;  %2830 = vst [vmem:[%s3944_s24] sm:$0xff] %v2816_v14 }
 0x3cd   : > { %3573 = shalt.err (!%p3570_p5)
}
 0x3ce   : > { %3127 = dma.vmem_to_hbm [thread:$0]  (%p3885_p13), %s2872_s17, 512, %s2874_s16, %s2841_s29, %s3664_s23, %s3664_s23, %s3665_s4   ;;  %2833 = vst [vmem:[#allocation6] sm:$0xff] %v2824_v37 }
 0x3cf PF: > { %s5586_s18 = sld [smem:[#allocation27_spill]]  ;;  %p5589_p6 = scmp.ge.s32.totalorder %s3652_s15, 2 }
 0x3d0   : > { %s5587_s24 = sld [smem:[#allocation29_spill]] }
 0x3d5   : > { %s2888_s1 = sand.u32 1, %s5586_s18  }
 0x3d6   : > { %p5588_p2 = scmp.ne.s32.totalorder %s5587_s24, 0  ;;  %s2889_s27 = scalar_lea.sflag [#allocation10], %s2888_s1 }
 0x3d8   : > { %p3148_p12 = pnand %p5589_p6, %p5588_p2 }
 0x3da   : > { %p3149_p11 = pneg %p3148_p12 }
 0x3dc   : > { %3619 = dma.done.wait (%p3149_p11), %s2889_s27, 512  }
 0x3dd   : > { %3621 = vsyncadd (%p3149_p11), %s2889_s27, 4294966784  ;;  %s5590_s19 = sld [smem:[#allocation26_spill]]  ;;  %p5593_p3 = pmov %p5589_p6 }
 0x3de   : > { %s5591_s30 = sld [smem:[#allocation30_spill]] }
 0x3e3   : > { %s2898_s28 = sand.u32 1, %s5590_s19  }
 0x3e4   : > { %p5592_p0 = scmp.ne.s32.totalorder %s5591_s30, 0  ;;  %s2899_s23 = scalar_lea.sflag [#allocation19], %s2898_s28 }
 0x3e6   : > { %p3151_p13 = pnand %p5593_p3, %p5592_p0 }
 0x3e8   : > { %p3152_p8 = pneg %p3151_p13 }
 0x3ea   : > { %3623 = dma.done.wait (%p3152_p8), %s2899_s23, 512  }
 0x3eb   : > { %3625 = vsyncadd (%p3152_p8), %s2899_s23, 4294966784  ;;  %s5594_s4 = sld [smem:[#allocation32_spill]]  ;;  %s5597_s16 = smov %s3862_s12 }
 0x3ec   : > { %s5595_s7 = sld [smem:[#allocation28_spill]]  ;;  %p30_p7 = scmp.ge.s32.totalorder %s3862_s12, 4  }
 0x3ed   : > { %s5596_s14 = sld [smem:[#allocation31_spill]]  ;;  %s5598_s30 = smov %s3632_s10 }
 0x3ee   : > { %s5599_s10 = smov %s3636_s11  ;;  %s5601_s12 = smov %s3644_s13 }
 0x3ef   : > { %s5603_s15 = smov %s5597_s16  ;;  %32 = sbr.rel (!%p30_p7) target bundleno = 17 (0x11), region = 158 }
 0x3f1   : > { %s5600_s11 = smov %s5594_s4 }
 0x3f2   : > { %s5602_s13 = smov %s5595_s7 }
 0x3f4   :  { %2905 = vsyncpa [#allocation9], 1 }
 0x3f5   :  { %2907 = vsyncpa [#allocation9 + $0x1], 1 }
 0x3f6   :  { %2908 = vsyncpa [#allocation12], 1 }
 0x3f7   :  { %2910 = vsyncpa [#allocation12 + $0x1], 1 }
 0x3f8   :  { %2911 = vsyncpa [#allocation15], 1 }
 0x3f9   :  { %2912 = vsyncpa [#allocation10], 1 }
 0x3fa   :  { %2914 = vsyncpa [#allocation10 + $0x1], 1 }
 0x3fb   :  { %2915 = vsyncpa [#allocation19], 1 }
 0x3fc   :  { %2917 = vsyncpa [#allocation19 + $0x1], 1 }

</bundles_post_ra>
